<compile_context>
chip_gen: v7x
topology: tpu7x:2x2x1
jax: 0.10.0
libtpu: 0.0.40
codegen_flags: <defaults>
</compile_context>

<pallas_src>
import functools

import jax
import jax.numpy as jnp
from jax.experimental import pallas as pl
from jax.experimental.pallas import tpu as pltpu

EPS = 1e-5
LANE = 128


def mlp_kernel(x_ref,
               w1_ref, g1_ref, be1_ref,
               w2_ref, g2_ref, be2_ref,
               w3_ref, g3_ref, be3_ref,
               w4_ref, b4_ref,
               out_ref,
               act_ref, sum_ref, sq_ref, scale_ref, shift_ref,
               *, batch, tile_b, f1, f2, f3):
    l = pl.program_id(0)            # layer pass: 0..3
    t = pl.program_id(1)            # batch tile
    nt = pl.num_programs(1)
    inv_b = 1.0 / batch

    start = t * tile_b
    if tile_b % 8 == 0:
        start = pl.multiple_of(start, 8)
    rows = pl.ds(start, tile_b)

    def matmul(a, w_ref):
        # MXU: bf16 x bf16 with f32 accumulation.
        return jnp.dot(a.astype(jnp.bfloat16), w_ref[...],
                       preferred_element_type=jnp.float32)

    def consume_prev(width):
        # Lazily apply previous layer's BatchNorm affine + ReLU to this tile.
        y = act_ref[rows, :width]
        return jnp.maximum(y * scale_ref[:, :width] + shift_ref[:, :width], 0.0)

    def produce(y, width, g_ref, be_ref):
        # Stash pre-activation, accumulate batch stats, finalize affine on last tile.
        act_ref[rows, :width] = y

        @pl.when(t == 0)
        def _():
            sum_ref[:, :width] = jnp.zeros((1, width), jnp.float32)
            sq_ref[:, :width] = jnp.zeros((1, width), jnp.float32)

        sum_ref[:, :width] += jnp.sum(y, axis=0, keepdims=True)
        sq_ref[:, :width] += jnp.sum(y * y, axis=0, keepdims=True)

        @pl.when(t == nt - 1)
        def _():
            mean = sum_ref[:, :width] * inv_b
            var = sq_ref[:, :width] * inv_b - mean * mean       # biased var (train mode)
            sc = g_ref[...] * jax.lax.rsqrt(var + EPS)           # rsqrt -> EUP slot
            scale_ref[:, :width] = sc
            shift_ref[:, :width] = be_ref[...] - mean * sc

    @pl.when(l == 0)
    def _():
        produce(matmul(x_ref[...], w1_ref), f1, g1_ref, be1_ref)

    @pl.when(l == 1)
    def _():
        produce(matmul(consume_prev(f1), w2_ref), f2, g2_ref, be2_ref)

    @pl.when(l == 2)
    def _():
        produce(matmul(consume_prev(f2), w3_ref), f3, g3_ref, be3_ref)

    @pl.when(l == 3)
    def _():
        out_ref[...] = (matmul(consume_prev(f3), w4_ref)
                        + b4_ref[...]).astype(out_ref.dtype)


def mlp_forward(x, params):
    B, n_in = x.shape
    classes = params["classes"]
    f1 = params["w1"].shape[1]
    f2 = params["w2"].shape[1]
    f3 = params["w3"].shape[1]
    c_pad = params["w4"].shape[1]
    wmax = max(f1, f2, f3)

    # Largest MXU-friendly batch tile that divides B; otherwise take the whole batch.
    tile_b = B
    for cand in (256, 128, 64, 32, 16, 8):
        if B % cand == 0:
            tile_b = cand
            break
    num_tiles = B // tile_b

    # Weights / BN params: constant block index -> DMA'd once, VMEM-resident for all steps.
    def resident(a):
        return pl.BlockSpec(a.shape, lambda l, t: (0,) * a.ndim)

    x_spec = pl.BlockSpec((tile_b, n_in), lambda l, t: (jnp.where(l == 0, t, 0), 0))
    out_spec = pl.BlockSpec((tile_b, c_pad), lambda l, t: (jnp.where(l == 3, t, 0), 0))

    weight_args = (params["w1"], params["g1"], params["be1"],
                   params["w2"], params["g2"], params["be2"],
                   params["w3"], params["g3"], params["be3"],
                   params["w4"], params["b4"])
    in_specs = [x_spec] + [resident(a) for a in weight_args]

    w_bytes = sum(int(params[k].size) * params[k].dtype.itemsize
                  for k in ("w1", "w2", "w3", "w4"))
    act_bytes = B * wmax * 4
    vmem_limit = int(min(56 << 20, 2 * w_bytes + act_bytes + (8 << 20)))

    kernel = functools.partial(mlp_kernel, batch=B, tile_b=tile_b, f1=f1, f2=f2, f3=f3)

    out_padded = pl.pallas_call(
        kernel,
        out_shape=jax.ShapeDtypeStruct((B, c_pad), jnp.float32),
        grid_spec=pltpu.PrefetchScalarGridSpec(
            num_scalar_prefetch=0,
            grid=(4, num_tiles),
            in_specs=in_specs,
            out_specs=out_spec,
            scratch_shapes=[
                pltpu.VMEM((B, wmax), jnp.float32),   # current layer pre-activations (all tiles)
                pltpu.VMEM((1, wmax), jnp.float32),   # sum(y)   accumulator
                pltpu.VMEM((1, wmax), jnp.float32),   # sum(y*y) accumulator
                pltpu.VMEM((1, wmax), jnp.float32),   # BN scale = gamma * rsqrt(var+eps)
                pltpu.VMEM((1, wmax), jnp.float32),   # BN shift = beta - mean*scale
            ]),
        compiler_params=pltpu.CompilerParams(
            dimension_semantics=("arbitrary", "arbitrary"),
            vmem_limit_bytes=vmem_limit),
    )(x, *weight_args)
    return out_padded[:, :classes]


def init_params(key, n_inputs, classes):
    """PyTorch-default init: Linear W,b ~ U(-1/sqrt(fan_in), +); BN weight=1, bias=0.
    Weights stored transposed as [in, out] in bf16; head zero-padded to 128 lanes.
    b1..b3 are only used by the reference -- the kernel exploits their exact
    cancellation under BatchNorm's mean subtraction."""
    c_pad = ((classes + LANE - 1) // LANE) * LANE
    dims = [(n_inputs, 512), (512, 1024), (1024, 512), (512, classes)]
    params = {"classes": classes}
    for i, (fi, fo) in enumerate(dims, start=1):
        key, kw, kb = jax.random.split(key, 3)
        bound = 1.0 / (fi ** 0.5)
        w = jax.random.uniform(kw, (fi, fo), jnp.float32, -bound, bound)
        b = jax.random.uniform(kb, (1, fo), jnp.float32, -bound, bound)
        if i == 4:                                   # lane-pad the head
            w = jnp.pad(w, ((0, 0), (0, c_pad - fo)))
            b = jnp.pad(b, ((0, 0), (0, c_pad - fo)))
        params[f"w{i}"] = w.astype(jnp.bfloat16)
        params[f"b{i}"] = b                          # biases / BN params stay f32 (tiny)
        if i < 4:
            params[f"g{i}"] = jnp.ones((1, fo), jnp.float32)    # BN weight
            params[f"be{i}"] = jnp.zeros((1, fo), jnp.float32)  # BN bias
    return params


def mlp_reference(x, p):
    """Pure-JAX reference with full PyTorch semantics (Linear biases included,
    two-pass biased variance), using the same bf16 weight / bf16 activation rounding."""
    def dot_bf16(h, w):
        return jnp.dot(h.astype(jnp.bfloat16).astype(jnp.float32),
                       w.astype(jnp.float32))

    def lbr(h, w, b, g, be):
        y = dot_bf16(h, w) + b
        m = y.mean(0, keepdims=True)
        v = ((y - m) ** 2).mean(0, keepdims=True)     # biased var, training mode
        return jnp.maximum((y - m) / jnp.sqrt(v + EPS) * g + be, 0.0)

    h = lbr(x, p["w1"], p["b1"], p["g1"], p["be1"])
    h = lbr(h, p["w2"], p["b2"], p["g2"], p["be2"])
    h = lbr(h, p["w3"], p["b3"], p["g3"], p["be3"])
    out = dot_bf16(h, p["w4"]) + p["b4"]
    return out[:, :p["classes"]]


if __name__ == "__main__":
    B, N_INPUTS, CLASSES = 8, 32, 10
    key = jax.random.PRNGKey(0)
    key, kx = jax.random.split(key)
    x = jax.random.normal(kx, (B, N_INPUTS), jnp.float32)
    params = init_params(key, N_INPUTS, CLASSES)

    out = mlp_forward(x, params)
    jax.block_until_ready(out)

    ref = mlp_reference(x, params)
    assert out.shape == (B, CLASSES)
    assert jnp.allclose(out, ref, atol=1e-2, rtol=1e-2), (
        f"mismatch vs JAX reference, max abs diff = {jnp.max(jnp.abs(out - ref))}")
    print("KERNEL_OK")
</pallas_src>

<mosaic_0001>
module attributes {stable_mosaic.version = 11 : i64} {
  func.func @mlp_kernel(%arg0: i32, %arg1: i32, %arg2: memref<8x32xf32, #tpu.memory_space<vmem>>, %arg3: memref<32x512xbf16, #tpu.memory_space<vmem>>, %arg4: memref<1x512xf32, #tpu.memory_space<vmem>>, %arg5: memref<1x512xf32, #tpu.memory_space<vmem>>, %arg6: memref<512x1024xbf16, #tpu.memory_space<vmem>>, %arg7: memref<1x1024xf32, #tpu.memory_space<vmem>>, %arg8: memref<1x1024xf32, #tpu.memory_space<vmem>>, %arg9: memref<1024x512xbf16, #tpu.memory_space<vmem>>, %arg10: memref<1x512xf32, #tpu.memory_space<vmem>>, %arg11: memref<1x512xf32, #tpu.memory_space<vmem>>, %arg12: memref<512x128xbf16, #tpu.memory_space<vmem>>, %arg13: memref<1x128xf32, #tpu.memory_space<vmem>>, %arg14: memref<8x128xf32, #tpu.memory_space<vmem>>, %arg15: memref<8x1024xf32, #tpu.memory_space<vmem>>, %arg16: memref<1x1024xf32, #tpu.memory_space<vmem>>, %arg17: memref<1x1024xf32, #tpu.memory_space<vmem>>, %arg18: memref<1x1024xf32, #tpu.memory_space<vmem>>, %arg19: memref<1x1024xf32, #tpu.memory_space<vmem>>) attributes {dimension_semantics = [#tpu.dimension_semantics<arbitrary>, #tpu.dimension_semantics<arbitrary>], iteration_bounds = array<i64: 4, 1>, scalar_prefetch = 0 : i64, scratch_operands = 5 : i64, tpu.core_type = #tpu.core_type<tc>, window_params = [{transform_indices = @transform_0, window_bounds = array<i64: 8, 32>}, {pipeline_mode = #tpu.pipeline_mode<synchronous>, transform_indices = @transform_1, window_bounds = array<i64: 32, 512>}, {pipeline_mode = #tpu.pipeline_mode<synchronous>, transform_indices = @transform_2, window_bounds = array<i64: 1, 512>}, {pipeline_mode = #tpu.pipeline_mode<synchronous>, transform_indices = @transform_3, window_bounds = array<i64: 1, 512>}, {pipeline_mode = #tpu.pipeline_mode<synchronous>, transform_indices = @transform_4, window_bounds = array<i64: 512, 1024>}, {pipeline_mode = #tpu.pipeline_mode<synchronous>, transform_indices = @transform_5, window_bounds = array<i64: 1, 1024>}, {pipeline_mode = #tpu.pipeline_mode<synchronous>, transform_indices = @transform_6, window_bounds = array<i64: 1, 1024>}, {pipeline_mode = #tpu.pipeline_mode<synchronous>, transform_indices = @transform_7, window_bounds = array<i64: 1024, 512>}, {pipeline_mode = #tpu.pipeline_mode<synchronous>, transform_indices = @transform_8, window_bounds = array<i64: 1, 512>}, {pipeline_mode = #tpu.pipeline_mode<synchronous>, transform_indices = @transform_9, window_bounds = array<i64: 1, 512>}, {pipeline_mode = #tpu.pipeline_mode<synchronous>, transform_indices = @transform_10, window_bounds = array<i64: 512, 128>}, {pipeline_mode = #tpu.pipeline_mode<synchronous>, transform_indices = @transform_11, window_bounds = array<i64: 1, 128>}, {transform_indices = @transform_12, window_bounds = array<i64: 8, 128>}]} {
    %c8_i32 = arith.constant 8 : i32
    %0 = arith.muli %arg1, %c8_i32 : i32
    %1 = tpu.assume_multiple %0, 8 : i32
    %c0_i32 = arith.constant 0 : i32
    %2 = arith.cmpi eq, %arg0, %c0_i32 : i32
    %3 = arith.extui %2 : i1 to i32
    %c0_i32_0 = arith.constant 0 : i32
    %4 = arith.cmpi ne, %3, %c0_i32_0 : i32
    scf.if %4 {
      %c0 = arith.constant 0 : index
      %c0_4 = arith.constant 0 : index
      %14 = vector.load %arg2[%c0, %c0_4] : memref<8x32xf32, #tpu.memory_space<vmem>>, vector<8x32xf32>
      %15 = arith.truncf %14 : vector<8x32xf32> to vector<8x32xbf16>
      %c0_5 = arith.constant 0 : index
      %c0_6 = arith.constant 0 : index
      %16 = vector.load %arg3[%c0_5, %c0_6] : memref<32x512xbf16, #tpu.memory_space<vmem>>, vector<32x512xbf16>
      %cst = arith.constant dense<0.000000e+00> : vector<8x512xf32>
      %17 = tpu.matmul %15, %16, %cst {dimension_numbers = #tpu.dot_dimension_numbers<[1], [0], [0], [1], [0, 0, 1, 1], [], []>} : vector<8x32xbf16>, vector<32x512xbf16>, vector<8x512xf32> -> vector<8x512xf32>
      %18 = arith.index_cast %1 : i32 to index
      %c0_7 = arith.constant 0 : index
      %19 = vector.load %arg15[%18, %c0_7] : memref<8x1024xf32, #tpu.memory_space<vmem>>, vector<8x512xf32>
      tpu.vector_store %arg15[%18, %c0_7], %17 {strides = array<i32>} : memref<8x1024xf32, #tpu.memory_space<vmem>>, vector<8x512xf32>,
      %c0_i32_8 = arith.constant 0 : i32
      %20 = arith.cmpi eq, %arg1, %c0_i32_8 : i32
      %21 = arith.extui %20 : i1 to i32
      %c0_i32_9 = arith.constant 0 : i32
      %22 = arith.cmpi ne, %21, %c0_i32_9 : i32
      scf.if %22 {
        %cst_22 = arith.constant 0.000000e+00 : f32
        %37 = vector.broadcast %cst_22 : f32 to vector<1x512xf32>
        %c0_23 = arith.constant 0 : index
        %c0_24 = arith.constant 0 : index
        %38 = vector.load %arg16[%c0_23, %c0_24] : memref<1x1024xf32, #tpu.memory_space<vmem>>, vector<1x512xf32>
        tpu.vector_store %arg16[%c0_23, %c0_24], %37 {strides = array<i32>} : memref<1x1024xf32, #tpu.memory_space<vmem>>, vector<1x512xf32>,
        %cst_25 = arith.constant 0.000000e+00 : f32
        %39 = vector.broadcast %cst_25 : f32 to vector<1x512xf32>
        %c0_26 = arith.constant 0 : index
        %c0_27 = arith.constant 0 : index
        %40 = vector.load %arg17[%c0_26, %c0_27] : memref<1x1024xf32, #tpu.memory_space<vmem>>, vector<1x512xf32>
        tpu.vector_store %arg17[%c0_26, %c0_27], %39 {strides = array<i32>} : memref<1x1024xf32, #tpu.memory_space<vmem>>, vector<1x512xf32>,
      } else {
      }
      %c0_10 = arith.constant 0 : index
      %c0_11 = arith.constant 0 : index
      %23 = vector.load %arg16[%c0_10, %c0_11] : memref<1x1024xf32, #tpu.memory_space<vmem>>, vector<1x512xf32>
      %cst_12 = arith.constant dense<0.000000e+00> : vector<512xf32>
      %24 = vector.multi_reduction <add>, %17, %cst_12 [0] : vector<8x512xf32> to vector<512xf32>
      %25 = vector.shape_cast %24 : vector<512xf32> to vector<1x512xf32>
      %26 = arith.addf %23, %25 : vector<1x512xf32>
      %c0_13 = arith.constant 0 : index
      %c0_14 = arith.constant 0 : index
      %27 = vector.load %arg16[%c0_13, %c0_14] : memref<1x1024xf32, #tpu.memory_space<vmem>>, vector<1x512xf32>
      tpu.vector_store %arg16[%c0_13, %c0_14], %26 {strides = array<i32>} : memref<1x1024xf32, #tpu.memory_space<vmem>>, vector<1x512xf32>,
      %c0_15 = arith.constant 0 : index
      %c0_16 = arith.constant 0 : index
      %28 = vector.load %arg17[%c0_15, %c0_16] : memref<1x1024xf32, #tpu.memory_space<vmem>>, vector<1x512xf32>
      %29 = arith.mulf %17, %17 : vector<8x512xf32>
      %cst_17 = arith.constant dense<0.000000e+00> : vector<512xf32>
      %30 = vector.multi_reduction <add>, %29, %cst_17 [0] : vector<8x512xf32> to vector<512xf32>
      %31 = vector.shape_cast %30 : vector<512xf32> to vector<1x512xf32>
      %32 = arith.addf %28, %31 : vector<1x512xf32>
      %c0_18 = arith.constant 0 : index
      %c0_19 = arith.constant 0 : index
      %33 = vector.load %arg17[%c0_18, %c0_19] : memref<1x1024xf32, #tpu.memory_space<vmem>>, vector<1x512xf32>
      tpu.vector_store %arg17[%c0_18, %c0_19], %32 {strides = array<i32>} : memref<1x1024xf32, #tpu.memory_space<vmem>>, vector<1x512xf32>,
      %c0_i32_20 = arith.constant 0 : i32
      %34 = arith.cmpi eq, %arg1, %c0_i32_20 : i32
      %35 = arith.extui %34 : i1 to i32
      %c0_i32_21 = arith.constant 0 : i32
      %36 = arith.cmpi ne, %35, %c0_i32_21 : i32
      scf.if %36 {
        %c0_22 = arith.constant 0 : index
        %c0_23 = arith.constant 0 : index
        %37 = vector.load %arg16[%c0_22, %c0_23] : memref<1x1024xf32, #tpu.memory_space<vmem>>, vector<1x512xf32>
        %cst_24 = arith.constant 1.250000e-01 : f32
        %38 = vector.broadcast %cst_24 : f32 to vector<1x512xf32>
        %39 = arith.mulf %37, %38 : vector<1x512xf32>
        %c0_25 = arith.constant 0 : index
        %c0_26 = arith.constant 0 : index
        %40 = vector.load %arg17[%c0_25, %c0_26] : memref<1x1024xf32, #tpu.memory_space<vmem>>, vector<1x512xf32>
        %cst_27 = arith.constant 1.250000e-01 : f32
        %41 = vector.broadcast %cst_27 : f32 to vector<1x512xf32>
        %42 = arith.mulf %40, %41 : vector<1x512xf32>
        %43 = arith.mulf %39, %39 : vector<1x512xf32>
        %44 = arith.subf %42, %43 : vector<1x512xf32>
        %c0_28 = arith.constant 0 : index
        %c0_29 = arith.constant 0 : index
        %45 = vector.load %arg4[%c0_28, %c0_29] : memref<1x512xf32, #tpu.memory_space<vmem>>, vector<1x512xf32>
        %cst_30 = arith.constant 9.99999974E-6 : f32
        %46 = vector.broadcast %cst_30 : f32 to vector<1x512xf32>
        %47 = arith.addf %44, %46 : vector<1x512xf32>
        %48 = math.rsqrt %47 : vector<1x512xf32>
        %49 = arith.mulf %45, %48 : vector<1x512xf32>
        %c0_31 = arith.constant 0 : index
        %c0_32 = arith.constant 0 : index
        %50 = vector.load %arg18[%c0_31, %c0_32] : memref<1x1024xf32, #tpu.memory_space<vmem>>, vector<1x512xf32>
        tpu.vector_store %arg18[%c0_31, %c0_32], %49 {strides = array<i32>} : memref<1x1024xf32, #tpu.memory_space<vmem>>, vector<1x512xf32>,
        %c0_33 = arith.constant 0 : index
        %c0_34 = arith.constant 0 : index
        %51 = vector.load %arg5[%c0_33, %c0_34] : memref<1x512xf32, #tpu.memory_space<vmem>>, vector<1x512xf32>
        %52 = arith.mulf %39, %49 : vector<1x512xf32>
        %53 = arith.subf %51, %52 : vector<1x512xf32>
        %c0_35 = arith.constant 0 : index
        %c0_36 = arith.constant 0 : index
        %54 = vector.load %arg19[%c0_35, %c0_36] : memref<1x1024xf32, #tpu.memory_space<vmem>>, vector<1x512xf32>
        tpu.vector_store %arg19[%c0_35, %c0_36], %53 {strides = array<i32>} : memref<1x1024xf32, #tpu.memory_space<vmem>>, vector<1x512xf32>,
      } else {
      }
    } else {
    }
    %c1_i32 = arith.constant 1 : i32
    %5 = arith.cmpi eq, %arg0, %c1_i32 : i32
    %6 = arith.extui %5 : i1 to i32
    %c0_i32_1 = arith.constant 0 : i32
    %7 = arith.cmpi ne, %6, %c0_i32_1 : i32
    scf.if %7 {
      %14 = arith.index_cast %1 : i32 to index
      %c0 = arith.constant 0 : index
      %15 = vector.load %arg15[%14, %c0] : memref<8x1024xf32, #tpu.memory_space<vmem>>, vector<8x512xf32>
      %c0_4 = arith.constant 0 : index
      %c0_5 = arith.constant 0 : index
      %16 = vector.load %arg18[%c0_4, %c0_5] : memref<1x1024xf32, #tpu.memory_space<vmem>>, vector<1x512xf32>
      %17 = vector.broadcast %16 : vector<1x512xf32> to vector<8x512xf32>
      %18 = arith.mulf %15, %17 : vector<8x512xf32>
      %c0_6 = arith.constant 0 : index
      %c0_7 = arith.constant 0 : index
      %19 = vector.load %arg19[%c0_6, %c0_7] : memref<1x1024xf32, #tpu.memory_space<vmem>>, vector<1x512xf32>
      %20 = vector.broadcast %19 : vector<1x512xf32> to vector<8x512xf32>
      %21 = arith.addf %18, %20 : vector<8x512xf32>
      %cst = arith.constant 0.000000e+00 : f32
      %22 = vector.broadcast %cst : f32 to vector<8x512xf32>
      %23 = arith.maximumf %21, %22 : vector<8x512xf32>
      %24 = arith.truncf %23 : vector<8x512xf32> to vector<8x512xbf16>
      %c0_8 = arith.constant 0 : index
      %c0_9 = arith.constant 0 : index
      %25 = vector.load %arg6[%c0_8, %c0_9] : memref<512x1024xbf16, #tpu.memory_space<vmem>>, vector<512x1024xbf16>
      %cst_10 = arith.constant dense<0.000000e+00> : vector<8x1024xf32>
      %26 = tpu.matmul %24, %25, %cst_10 {dimension_numbers = #tpu.dot_dimension_numbers<[1], [0], [0], [1], [0, 0, 1, 1], [], []>} : vector<8x512xbf16>, vector<512x1024xbf16>, vector<8x1024xf32> -> vector<8x1024xf32>
      %27 = arith.index_cast %1 : i32 to index
      %c0_11 = arith.constant 0 : index
      %28 = vector.load %arg15[%27, %c0_11] : memref<8x1024xf32, #tpu.memory_space<vmem>>, vector<8x1024xf32>
      tpu.vector_store %arg15[%27, %c0_11], %26 {strides = array<i32>} : memref<8x1024xf32, #tpu.memory_space<vmem>>, vector<8x1024xf32>,
      %c0_i32_12 = arith.constant 0 : i32
      %29 = arith.cmpi eq, %arg1, %c0_i32_12 : i32
      %30 = arith.extui %29 : i1 to i32
      %c0_i32_13 = arith.constant 0 : i32
      %31 = arith.cmpi ne, %30, %c0_i32_13 : i32
      scf.if %31 {
        %cst_26 = arith.constant 0.000000e+00 : f32
        %46 = vector.broadcast %cst_26 : f32 to vector<1x1024xf32>
        %c0_27 = arith.constant 0 : index
        %c0_28 = arith.constant 0 : index
        %47 = vector.load %arg16[%c0_27, %c0_28] : memref<1x1024xf32, #tpu.memory_space<vmem>>, vector<1x1024xf32>
        tpu.vector_store %arg16[%c0_27, %c0_28], %46 {strides = array<i32>} : memref<1x1024xf32, #tpu.memory_space<vmem>>, vector<1x1024xf32>,
        %cst_29 = arith.constant 0.000000e+00 : f32
        %48 = vector.broadcast %cst_29 : f32 to vector<1x1024xf32>
        %c0_30 = arith.constant 0 : index
        %c0_31 = arith.constant 0 : index
        %49 = vector.load %arg17[%c0_30, %c0_31] : memref<1x1024xf32, #tpu.memory_space<vmem>>, vector<1x1024xf32>
        tpu.vector_store %arg17[%c0_30, %c0_31], %48 {strides = array<i32>} : memref<1x1024xf32, #tpu.memory_space<vmem>>, vector<1x1024xf32>,
      } else {
      }
      %c0_14 = arith.constant 0 : index
      %c0_15 = arith.constant 0 : index
      %32 = vector.load %arg16[%c0_14, %c0_15] : memref<1x1024xf32, #tpu.memory_space<vmem>>, vector<1x1024xf32>
      %cst_16 = arith.constant dense<0.000000e+00> : vector<1024xf32>
      %33 = vector.multi_reduction <add>, %26, %cst_16 [0] : vector<8x1024xf32> to vector<1024xf32>
      %34 = vector.shape_cast %33 : vector<1024xf32> to vector<1x1024xf32>
      %35 = arith.addf %32, %34 : vector<1x1024xf32>
      %c0_17 = arith.constant 0 : index
      %c0_18 = arith.constant 0 : index
      %36 = vector.load %arg16[%c0_17, %c0_18] : memref<1x1024xf32, #tpu.memory_space<vmem>>, vector<1x1024xf32>
      tpu.vector_store %arg16[%c0_17, %c0_18], %35 {strides = array<i32>} : memref<1x1024xf32, #tpu.memory_space<vmem>>, vector<1x1024xf32>,
      %c0_19 = arith.constant 0 : index
      %c0_20 = arith.constant 0 : index
      %37 = vector.load %arg17[%c0_19, %c0_20] : memref<1x1024xf32, #tpu.memory_space<vmem>>, vector<1x1024xf32>
      %38 = arith.mulf %26, %26 : vector<8x1024xf32>
      %cst_21 = arith.constant dense<0.000000e+00> : vector<1024xf32>
      %39 = vector.multi_reduction <add>, %38, %cst_21 [0] : vector<8x1024xf32> to vector<1024xf32>
      %40 = vector.shape_cast %39 : vector<1024xf32> to vector<1x1024xf32>
      %41 = arith.addf %37, %40 : vector<1x1024xf32>
      %c0_22 = arith.constant 0 : index
      %c0_23 = arith.constant 0 : index
      %42 = vector.load %arg17[%c0_22, %c0_23] : memref<1x1024xf32, #tpu.memory_space<vmem>>, vector<1x1024xf32>
      tpu.vector_store %arg17[%c0_22, %c0_23], %41 {strides = array<i32>} : memref<1x1024xf32, #tpu.memory_space<vmem>>, vector<1x1024xf32>,
      %c0_i32_24 = arith.constant 0 : i32
      %43 = arith.cmpi eq, %arg1, %c0_i32_24 : i32
      %44 = arith.extui %43 : i1 to i32
      %c0_i32_25 = arith.constant 0 : i32
      %45 = arith.cmpi ne, %44, %c0_i32_25 : i32
      scf.if %45 {
        %c0_26 = arith.constant 0 : index
        %c0_27 = arith.constant 0 : index
        %46 = vector.load %arg16[%c0_26, %c0_27] : memref<1x1024xf32, #tpu.memory_space<vmem>>, vector<1x1024xf32>
        %cst_28 = arith.constant 1.250000e-01 : f32
        %47 = vector.broadcast %cst_28 : f32 to vector<1x1024xf32>
        %48 = arith.mulf %46, %47 : vector<1x1024xf32>
        %c0_29 = arith.constant 0 : index
        %c0_30 = arith.constant 0 : index
        %49 = vector.load %arg17[%c0_29, %c0_30] : memref<1x1024xf32, #tpu.memory_space<vmem>>, vector<1x1024xf32>
        %cst_31 = arith.constant 1.250000e-01 : f32
        %50 = vector.broadcast %cst_31 : f32 to vector<1x1024xf32>
        %51 = arith.mulf %49, %50 : vector<1x1024xf32>
        %52 = arith.mulf %48, %48 : vector<1x1024xf32>
        %53 = arith.subf %51, %52 : vector<1x1024xf32>
        %c0_32 = arith.constant 0 : index
        %c0_33 = arith.constant 0 : index
        %54 = vector.load %arg7[%c0_32, %c0_33] : memref<1x1024xf32, #tpu.memory_space<vmem>>, vector<1x1024xf32>
        %cst_34 = arith.constant 9.99999974E-6 : f32
        %55 = vector.broadcast %cst_34 : f32 to vector<1x1024xf32>
        %56 = arith.addf %53, %55 : vector<1x1024xf32>
        %57 = math.rsqrt %56 : vector<1x1024xf32>
        %58 = arith.mulf %54, %57 : vector<1x1024xf32>
        %c0_35 = arith.constant 0 : index
        %c0_36 = arith.constant 0 : index
        %59 = vector.load %arg18[%c0_35, %c0_36] : memref<1x1024xf32, #tpu.memory_space<vmem>>, vector<1x1024xf32>
        tpu.vector_store %arg18[%c0_35, %c0_36], %58 {strides = array<i32>} : memref<1x1024xf32, #tpu.memory_space<vmem>>, vector<1x1024xf32>,
        %c0_37 = arith.constant 0 : index
        %c0_38 = arith.constant 0 : index
        %60 = vector.load %arg8[%c0_37, %c0_38] : memref<1x1024xf32, #tpu.memory_space<vmem>>, vector<1x1024xf32>
        %61 = arith.mulf %48, %58 : vector<1x1024xf32>
        %62 = arith.subf %60, %61 : vector<1x1024xf32>
        %c0_39 = arith.constant 0 : index
        %c0_40 = arith.constant 0 : index
        %63 = vector.load %arg19[%c0_39, %c0_40] : memref<1x1024xf32, #tpu.memory_space<vmem>>, vector<1x1024xf32>
        tpu.vector_store %arg19[%c0_39, %c0_40], %62 {strides = array<i32>} : memref<1x1024xf32, #tpu.memory_space<vmem>>, vector<1x1024xf32>,
      } else {
      }
    } else {
    }
    %c2_i32 = arith.constant 2 : i32
    %8 = arith.cmpi eq, %arg0, %c2_i32 : i32
    %9 = arith.extui %8 : i1 to i32
    %c0_i32_2 = arith.constant 0 : i32
    %10 = arith.cmpi ne, %9, %c0_i32_2 : i32
    scf.if %10 {
      %14 = arith.index_cast %1 : i32 to index
      %c0 = arith.constant 0 : index
      %15 = vector.load %arg15[%14, %c0] : memref<8x1024xf32, #tpu.memory_space<vmem>>, vector<8x1024xf32>
      %c0_4 = arith.constant 0 : index
      %c0_5 = arith.constant 0 : index
      %16 = vector.load %arg18[%c0_4, %c0_5] : memref<1x1024xf32, #tpu.memory_space<vmem>>, vector<1x1024xf32>
      %17 = vector.broadcast %16 : vector<1x1024xf32> to vector<8x1024xf32>
      %18 = arith.mulf %15, %17 : vector<8x1024xf32>
      %c0_6 = arith.constant 0 : index
      %c0_7 = arith.constant 0 : index
      %19 = vector.load %arg19[%c0_6, %c0_7] : memref<1x1024xf32, #tpu.memory_space<vmem>>, vector<1x1024xf32>
      %20 = vector.broadcast %19 : vector<1x1024xf32> to vector<8x1024xf32>
      %21 = arith.addf %18, %20 : vector<8x1024xf32>
      %cst = arith.constant 0.000000e+00 : f32
      %22 = vector.broadcast %cst : f32 to vector<8x1024xf32>
      %23 = arith.maximumf %21, %22 : vector<8x1024xf32>
      %24 = arith.truncf %23 : vector<8x1024xf32> to vector<8x1024xbf16>
      %c0_8 = arith.constant 0 : index
      %c0_9 = arith.constant 0 : index
      %25 = vector.load %arg9[%c0_8, %c0_9] : memref<1024x512xbf16, #tpu.memory_space<vmem>>, vector<1024x512xbf16>
      %cst_10 = arith.constant dense<0.000000e+00> : vector<8x512xf32>
      %26 = tpu.matmul %24, %25, %cst_10 {dimension_numbers = #tpu.dot_dimension_numbers<[1], [0], [0], [1], [0, 0, 1, 1], [], []>} : vector<8x1024xbf16>, vector<1024x512xbf16>, vector<8x512xf32> -> vector<8x512xf32>
      %27 = arith.index_cast %1 : i32 to index
      %c0_11 = arith.constant 0 : index
      %28 = vector.load %arg15[%27, %c0_11] : memref<8x1024xf32, #tpu.memory_space<vmem>>, vector<8x512xf32>
      tpu.vector_store %arg15[%27, %c0_11], %26 {strides = array<i32>} : memref<8x1024xf32, #tpu.memory_space<vmem>>, vector<8x512xf32>,
      %c0_i32_12 = arith.constant 0 : i32
      %29 = arith.cmpi eq, %arg1, %c0_i32_12 : i32
      %30 = arith.extui %29 : i1 to i32
      %c0_i32_13 = arith.constant 0 : i32
      %31 = arith.cmpi ne, %30, %c0_i32_13 : i32
      scf.if %31 {
        %cst_26 = arith.constant 0.000000e+00 : f32
        %46 = vector.broadcast %cst_26 : f32 to vector<1x512xf32>
        %c0_27 = arith.constant 0 : index
        %c0_28 = arith.constant 0 : index
        %47 = vector.load %arg16[%c0_27, %c0_28] : memref<1x1024xf32, #tpu.memory_space<vmem>>, vector<1x512xf32>
        tpu.vector_store %arg16[%c0_27, %c0_28], %46 {strides = array<i32>} : memref<1x1024xf32, #tpu.memory_space<vmem>>, vector<1x512xf32>,
        %cst_29 = arith.constant 0.000000e+00 : f32
        %48 = vector.broadcast %cst_29 : f32 to vector<1x512xf32>
        %c0_30 = arith.constant 0 : index
        %c0_31 = arith.constant 0 : index
        %49 = vector.load %arg17[%c0_30, %c0_31] : memref<1x1024xf32, #tpu.memory_space<vmem>>, vector<1x512xf32>
        tpu.vector_store %arg17[%c0_30, %c0_31], %48 {strides = array<i32>} : memref<1x1024xf32, #tpu.memory_space<vmem>>, vector<1x512xf32>,
      } else {
      }
      %c0_14 = arith.constant 0 : index
      %c0_15 = arith.constant 0 : index
      %32 = vector.load %arg16[%c0_14, %c0_15] : memref<1x1024xf32, #tpu.memory_space<vmem>>, vector<1x512xf32>
      %cst_16 = arith.constant dense<0.000000e+00> : vector<512xf32>
      %33 = vector.multi_reduction <add>, %26, %cst_16 [0] : vector<8x512xf32> to vector<512xf32>
      %34 = vector.shape_cast %33 : vector<512xf32> to vector<1x512xf32>
      %35 = arith.addf %32, %34 : vector<1x512xf32>
      %c0_17 = arith.constant 0 : index
      %c0_18 = arith.constant 0 : index
      %36 = vector.load %arg16[%c0_17, %c0_18] : memref<1x1024xf32, #tpu.memory_space<vmem>>, vector<1x512xf32>
      tpu.vector_store %arg16[%c0_17, %c0_18], %35 {strides = array<i32>} : memref<1x1024xf32, #tpu.memory_space<vmem>>, vector<1x512xf32>,
      %c0_19 = arith.constant 0 : index
      %c0_20 = arith.constant 0 : index
      %37 = vector.load %arg17[%c0_19, %c0_20] : memref<1x1024xf32, #tpu.memory_space<vmem>>, vector<1x512xf32>
      %38 = arith.mulf %26, %26 : vector<8x512xf32>
      %cst_21 = arith.constant dense<0.000000e+00> : vector<512xf32>
      %39 = vector.multi_reduction <add>, %38, %cst_21 [0] : vector<8x512xf32> to vector<512xf32>
      %40 = vector.shape_cast %39 : vector<512xf32> to vector<1x512xf32>
      %41 = arith.addf %37, %40 : vector<1x512xf32>
      %c0_22 = arith.constant 0 : index
      %c0_23 = arith.constant 0 : index
      %42 = vector.load %arg17[%c0_22, %c0_23] : memref<1x1024xf32, #tpu.memory_space<vmem>>, vector<1x512xf32>
      tpu.vector_store %arg17[%c0_22, %c0_23], %41 {strides = array<i32>} : memref<1x1024xf32, #tpu.memory_space<vmem>>, vector<1x512xf32>,
      %c0_i32_24 = arith.constant 0 : i32
      %43 = arith.cmpi eq, %arg1, %c0_i32_24 : i32
      %44 = arith.extui %43 : i1 to i32
      %c0_i32_25 = arith.constant 0 : i32
      %45 = arith.cmpi ne, %44, %c0_i32_25 : i32
      scf.if %45 {
        %c0_26 = arith.constant 0 : index
        %c0_27 = arith.constant 0 : index
        %46 = vector.load %arg16[%c0_26, %c0_27] : memref<1x1024xf32, #tpu.memory_space<vmem>>, vector<1x512xf32>
        %cst_28 = arith.constant 1.250000e-01 : f32
        %47 = vector.broadcast %cst_28 : f32 to vector<1x512xf32>
        %48 = arith.mulf %46, %47 : vector<1x512xf32>
        %c0_29 = arith.constant 0 : index
        %c0_30 = arith.constant 0 : index
        %49 = vector.load %arg17[%c0_29, %c0_30] : memref<1x1024xf32, #tpu.memory_space<vmem>>, vector<1x512xf32>
        %cst_31 = arith.constant 1.250000e-01 : f32
        %50 = vector.broadcast %cst_31 : f32 to vector<1x512xf32>
        %51 = arith.mulf %49, %50 : vector<1x512xf32>
        %52 = arith.mulf %48, %48 : vector<1x512xf32>
        %53 = arith.subf %51, %52 : vector<1x512xf32>
        %c0_32 = arith.constant 0 : index
        %c0_33 = arith.constant 0 : index
        %54 = vector.load %arg10[%c0_32, %c0_33] : memref<1x512xf32, #tpu.memory_space<vmem>>, vector<1x512xf32>
        %cst_34 = arith.constant 9.99999974E-6 : f32
        %55 = vector.broadcast %cst_34 : f32 to vector<1x512xf32>
        %56 = arith.addf %53, %55 : vector<1x512xf32>
        %57 = math.rsqrt %56 : vector<1x512xf32>
        %58 = arith.mulf %54, %57 : vector<1x512xf32>
        %c0_35 = arith.constant 0 : index
        %c0_36 = arith.constant 0 : index
        %59 = vector.load %arg18[%c0_35, %c0_36] : memref<1x1024xf32, #tpu.memory_space<vmem>>, vector<1x512xf32>
        tpu.vector_store %arg18[%c0_35, %c0_36], %58 {strides = array<i32>} : memref<1x1024xf32, #tpu.memory_space<vmem>>, vector<1x512xf32>,
        %c0_37 = arith.constant 0 : index
        %c0_38 = arith.constant 0 : index
        %60 = vector.load %arg11[%c0_37, %c0_38] : memref<1x512xf32, #tpu.memory_space<vmem>>, vector<1x512xf32>
        %61 = arith.mulf %48, %58 : vector<1x512xf32>
        %62 = arith.subf %60, %61 : vector<1x512xf32>
        %c0_39 = arith.constant 0 : index
        %c0_40 = arith.constant 0 : index
        %63 = vector.load %arg19[%c0_39, %c0_40] : memref<1x1024xf32, #tpu.memory_space<vmem>>, vector<1x512xf32>
        tpu.vector_store %arg19[%c0_39, %c0_40], %62 {strides = array<i32>} : memref<1x1024xf32, #tpu.memory_space<vmem>>, vector<1x512xf32>,
      } else {
      }
    } else {
    }
    %c3_i32 = arith.constant 3 : i32
    %11 = arith.cmpi eq, %arg0, %c3_i32 : i32
    %12 = arith.extui %11 : i1 to i32
    %c0_i32_3 = arith.constant 0 : i32
    %13 = arith.cmpi ne, %12, %c0_i32_3 : i32
    scf.if %13 {
      %14 = arith.index_cast %1 : i32 to index
      %c0 = arith.constant 0 : index
      %15 = vector.load %arg15[%14, %c0] : memref<8x1024xf32, #tpu.memory_space<vmem>>, vector<8x512xf32>
      %c0_4 = arith.constant 0 : index
      %c0_5 = arith.constant 0 : index
      %16 = vector.load %arg18[%c0_4, %c0_5] : memref<1x1024xf32, #tpu.memory_space<vmem>>, vector<1x512xf32>
      %17 = vector.broadcast %16 : vector<1x512xf32> to vector<8x512xf32>
      %18 = arith.mulf %15, %17 : vector<8x512xf32>
      %c0_6 = arith.constant 0 : index
      %c0_7 = arith.constant 0 : index
      %19 = vector.load %arg19[%c0_6, %c0_7] : memref<1x1024xf32, #tpu.memory_space<vmem>>, vector<1x512xf32>
      %20 = vector.broadcast %19 : vector<1x512xf32> to vector<8x512xf32>
      %21 = arith.addf %18, %20 : vector<8x512xf32>
      %cst = arith.constant 0.000000e+00 : f32
      %22 = vector.broadcast %cst : f32 to vector<8x512xf32>
      %23 = arith.maximumf %21, %22 : vector<8x512xf32>
      %24 = arith.truncf %23 : vector<8x512xf32> to vector<8x512xbf16>
      %c0_8 = arith.constant 0 : index
      %c0_9 = arith.constant 0 : index
      %25 = vector.load %arg12[%c0_8, %c0_9] : memref<512x128xbf16, #tpu.memory_space<vmem>>, vector<512x128xbf16>
      %cst_10 = arith.constant dense<0.000000e+00> : vector<8x128xf32>
      %26 = tpu.matmul %24, %25, %cst_10 {dimension_numbers = #tpu.dot_dimension_numbers<[1], [0], [0], [1], [0, 0, 1, 1], [], []>} : vector<8x512xbf16>, vector<512x128xbf16>, vector<8x128xf32> -> vector<8x128xf32>
      %c0_11 = arith.constant 0 : index
      %c0_12 = arith.constant 0 : index
      %27 = vector.load %arg13[%c0_11, %c0_12] : memref<1x128xf32, #tpu.memory_space<vmem>>, vector<1x128xf32>
      %28 = vector.broadcast %27 : vector<1x128xf32> to vector<8x128xf32>
      %29 = arith.addf %26, %28 : vector<8x128xf32>
      %c0_13 = arith.constant 0 : index
      %c0_14 = arith.constant 0 : index
      %30 = vector.load %arg14[%c0_13, %c0_14] : memref<8x128xf32, #tpu.memory_space<vmem>>, vector<8x128xf32>
      tpu.vector_store %arg14[%c0_13, %c0_14], %29 {strides = array<i32>} : memref<8x128xf32, #tpu.memory_space<vmem>>, vector<8x128xf32>,
    } else {
    }
    return
  }
  func.func @transform_0(%arg0: i32, %arg1: i32) -> (i32, i32) {
    %c0_i32 = arith.constant 0 : i32
    %0 = arith.cmpi eq, %arg0, %c0_i32 : i32
    %c0_i32_0 = arith.constant 0 : i32
    %1 = arith.select %0, %arg1, %c0_i32_0 : i32
    %c0_i32_1 = arith.constant 0 : i32
    %c0_i32_2 = arith.constant 0 : i32
    return %1, %c0_i32_1 : i32, i32
  }
  func.func @transform_1(%arg0: i32, %arg1: i32) -> (i32, i32) {
    %c0_i32 = arith.constant 0 : i32
    %c0_i32_0 = arith.constant 0 : i32
    %c0_i32_1 = arith.constant 0 : i32
    return %c0_i32, %c0_i32_0 : i32, i32
  }
  func.func @transform_2(%arg0: i32, %arg1: i32) -> (i32, i32) {
    %c0_i32 = arith.constant 0 : i32
    %c0_i32_0 = arith.constant 0 : i32
    %c0_i32_1 = arith.constant 0 : i32
    return %c0_i32, %c0_i32_0 : i32, i32
  }
  func.func @transform_3(%arg0: i32, %arg1: i32) -> (i32, i32) {
    %c0_i32 = arith.constant 0 : i32
    %c0_i32_0 = arith.constant 0 : i32
    %c0_i32_1 = arith.constant 0 : i32
    return %c0_i32, %c0_i32_0 : i32, i32
  }
  func.func @transform_4(%arg0: i32, %arg1: i32) -> (i32, i32) {
    %c0_i32 = arith.constant 0 : i32
    %c0_i32_0 = arith.constant 0 : i32
    %c0_i32_1 = arith.constant 0 : i32
    return %c0_i32, %c0_i32_0 : i32, i32
  }
  func.func @transform_5(%arg0: i32, %arg1: i32) -> (i32, i32) {
    %c0_i32 = arith.constant 0 : i32
    %c0_i32_0 = arith.constant 0 : i32
    %c0_i32_1 = arith.constant 0 : i32
    return %c0_i32, %c0_i32_0 : i32, i32
  }
  func.func @transform_6(%arg0: i32, %arg1: i32) -> (i32, i32) {
    %c0_i32 = arith.constant 0 : i32
    %c0_i32_0 = arith.constant 0 : i32
    %c0_i32_1 = arith.constant 0 : i32
    return %c0_i32, %c0_i32_0 : i32, i32
  }
  func.func @transform_7(%arg0: i32, %arg1: i32) -> (i32, i32) {
    %c0_i32 = arith.constant 0 : i32
    %c0_i32_0 = arith.constant 0 : i32
    %c0_i32_1 = arith.constant 0 : i32
    return %c0_i32, %c0_i32_0 : i32, i32
  }
  func.func @transform_8(%arg0: i32, %arg1: i32) -> (i32, i32) {
    %c0_i32 = arith.constant 0 : i32
    %c0_i32_0 = arith.constant 0 : i32
    %c0_i32_1 = arith.constant 0 : i32
    return %c0_i32, %c0_i32_0 : i32, i32
  }
  func.func @transform_9(%arg0: i32, %arg1: i32) -> (i32, i32) {
    %c0_i32 = arith.constant 0 : i32
    %c0_i32_0 = arith.constant 0 : i32
    %c0_i32_1 = arith.constant 0 : i32
    return %c0_i32, %c0_i32_0 : i32, i32
  }
  func.func @transform_10(%arg0: i32, %arg1: i32) -> (i32, i32) {
    %c0_i32 = arith.constant 0 : i32
    %c0_i32_0 = arith.constant 0 : i32
    %c0_i32_1 = arith.constant 0 : i32
    return %c0_i32, %c0_i32_0 : i32, i32
  }
  func.func @transform_11(%arg0: i32, %arg1: i32) -> (i32, i32) {
    %c0_i32 = arith.constant 0 : i32
    %c0_i32_0 = arith.constant 0 : i32
    %c0_i32_1 = arith.constant 0 : i32
    return %c0_i32, %c0_i32_0 : i32, i32
  }
  func.func @transform_12(%arg0: i32, %arg1: i32) -> (i32, i32) {
    %c3_i32 = arith.constant 3 : i32
    %0 = arith.cmpi eq, %arg0, %c3_i32 : i32
    %c0_i32 = arith.constant 0 : i32
    %1 = arith.select %0, %arg1, %c0_i32 : i32
    %c0_i32_0 = arith.constant 0 : i32
    %c0_i32_1 = arith.constant 0 : i32
    return %1, %c0_i32_0 : i32, i32
  }
}

</mosaic_0001>

<bundles_post_ra>
// kernel: tpu_custom_call.1
= control target key start
LH: loop header
LB: loop body
LE: loop exit
PB: predicated region body
PF: predicated region fallthrough
CT: control target
= control target key end

     0   :  { %s7735_s0 = inlined_call_operand.hbm [shape: f32[8,32], index: 0, kind: input, shape index: {}]   ;;  %s7736_s1 = inlined_call_operand.hbm [shape: bf16[32,512], index: 1, kind: input, shape index: {}]   ;;  %s7737_s2 = inlined_call_operand.hbm [shape: f32[1,512], index: 2, kind: input, shape index: {}]   ;;  %s7738_s3 = inlined_call_operand.hbm [shape: f32[1,512], index: 3, kind: input, shape index: {}]   ;;  %s7739_s4 = inlined_call_operand.hbm [shape: bf16[512,1024], index: 4, kind: input, shape index: {}]   ;;  %s7740_s5 = inlined_call_operand.vmem [shape: f32[1,1024], index: 5, kind: input, shape index: {}]   ;;  %s7741_s6 = inlined_call_operand.vmem [shape: f32[1,1024], index: 6, kind: input, shape index: {}]   ;;  %s7742_s7 = inlined_call_operand.hbm [shape: bf16[1024,512], index: 7, kind: input, shape index: {}]   ;;  %s7743_s8 = inlined_call_operand.vmem [shape: f32[1,512], index: 8, kind: input, shape index: {}]   ;;  %s7744_s9 = inlined_call_operand.vmem [shape: f32[1,512], index: 9, kind: input, shape index: {}]   ;;  %s7745_s10 = inlined_call_operand.hbm [shape: bf16[512,128], index: 10, kind: input, shape index: {}]   ;;  %s7746_s11 = inlined_call_operand.vmem [shape: f32[1,128], index: 11, kind: input, shape index: {}]   ;;  %s7747_s12 = inlined_call_operand.hbm [shape: f32[8,128], index: 12, kind: output, shape index: {}]  }
   0x1   :  { %7754 = sst [smem:[#allocation27_spill]] %s7744_s9 }
   0x2   :  { %7755 = sst [smem:[#allocation28_spill]] %s7746_s11 }
   0x3   :  { %7756 = sst [smem:[#allocation29_spill]] %s7747_s12 }
   0x4   :  { %17 = vsyncpa [#allocation8], 0 }
   0x5   :  { %19 = vsyncpa [#allocation8 + $0x1], 0 }
   0x6   :  { %20 = vsyncpa [#allocation11], 0 }
   0x7   :  { %21 = vsyncpa [#allocation14], 0 }
   0x8   :  { %22 = vsyncpa [#allocation17], 0 }
   0x9   :  { %23 = vsyncpa [#allocation9], 0 }
   0xa   :  { %25 = vsyncpa [#allocation9 + $0x1], 0  ;;  %s7332_s21 = smov 0   ;;  %s7334_s22 = smov 0  }
   0xb   :  { %s7336_s23 = smov 0  }
   0xc LB: > { %7757 = sst [smem:[#allocation25_spill]] %s7241_s22  ;;  %s7748_s24 = sadd.s32 4294967295, %s7245_s23   ;;  %s7245_s23 = sphi %s7336_s23, %s31_s23   ;;  %s7241_s22 = sphi %s7334_s22, %s7777_s22   ;;  %s7237_s21 = sphi %s7332_s21, %s7776_s21  }
   0xd   : > { %s43_s26 = sadd.s32 1, %s7241_s22  ;;  %p5759_p0 = scmp.ge.s32.totalorder %s7245_s23, 1 }
   0xe   : > { %p45_p1 = scmp.ge.s32.totalorder %s43_s26, 4  ;;  %p339_p2 = scmp.lt.s32.totalorder %s7245_s23, 5 }
   0xf   : > { %p7354_p3 = scmp.eq.s32.totalorder %s7748_s24, 0  ;;  %s7247_s29 = smov [#allocation10]  }
  0x10   : > { %s7779_s26 = smov (%p45_p1, %s43_s26), 0  ;;  %p7360_p4 = pnand %p5759_p0, %p339_p2 }
  0x11   : > { %s7758_s27 = scalar_select %p7354_p3, 1, 0 }
  0x12   : > { %7759 = sst [smem:[#allocation26_spill]] %s7779_s26  ;;  %s351_s30 = sshll.u32 %s7247_s29, 4  ;;  %s352_s30 = int_to_ptr.vmem [resolvable:$true] %s351_s30 }
  0x13   : > { %s7760_s28 = scalar_select %p7360_p4, 1, 0 }
  0x14   : > { %p6455_p5 = pneg %p7360_p4  ;;  %s7248_s14 = smov [#allocation13]  }
  0x15   : > { %s376_s15 = sshll.u32 %s7248_s14, 4  ;;  %s6981_s18 = scalar_lea.hbm %s7736_s1, 1024  ;;  %s377_s15 = int_to_ptr.vmem [resolvable:$true] %s376_s15 }
  0x16   : > { %p7368_p6 = pnand %p7354_p3, %p6455_p5  ;;  %p6982_p7 = scmp.ne.s32.totalorder %s7736_s1, %s6981_s18 }
  0x17   : > { %p6988_p11 = scmp.lt.u32.totalorder %s6981_s18, %s7736_s1 }
  0x18   : > { %p7380_p8 = pneg %p7368_p6 }
  0x1a   : > { %p6984_p9 = pnand %p7380_p8, %p6982_p7 }
  0x1c   : > { %p6985_p10 = pneg %p6984_p9 }
  0x1e   : > { %p6990_p12 = pnand %p6988_p11, %p6985_p10 }
  0x20   : > { %6993 = shalt.err (!%p6990_p12)
}
  0x21   : > { %s6994_s14 = scalar_lea.vmem %s352_s30, 1024  ;;  %p7002_p2 = scmp.lt.s32.totalorder %s352_s30, %s352_s30 }
  0x22   : > { %p6995_p13 = scmp.ne.s32.totalorder %s352_s30, %s6994_s14  ;;  %p7003_p5 = scmp.lt.s32.totalorder %s6994_s14, %s6994_s14 }
  0x24   : > { %p6997_p0 = pnand %p6995_p13, %p7380_p8  ;;  %p7004_p3 = por %p7003_p5, %p7002_p2 }
  0x26   : > { %p6998_p1 = pneg %p6997_p0 }
  0x28   : > { %p7005_p4 = pnand %p7004_p3, %p6998_p1 }
  0x2a   : > { %7008 = shalt.err (!%p7005_p4)
}
  0x2b   : > { %s7249_s16 = smov 256   ;;  %s7250_s17 = smov 16  }
  0x2c   : > { %6458 = dma.hbm_to_vmem [thread:$0]  (!%p7368_p6), %s7736_s1, 1024, %s352_s30, [#allocation11], %s7249_s16, %s7249_s16, %s7250_s17  }
  0x2d   : > { %s7251_s18 = smov [#allocation16]   ;;  %s7009_s26 = scalar_lea.hbm %s7738_s3, 64 }
  0x2e   : > { %s405_s19 = sshll.u32 %s7251_s18, 4  ;;  %p7010_p3 = scmp.ne.s32.totalorder %s7738_s3, %s7009_s26  ;;  %s406_s19 = int_to_ptr.vmem [resolvable:$true] %s405_s19 }
  0x2f   : > { %p7016_p9 = scmp.lt.u32.totalorder %s7009_s26, %s7738_s3 }
  0x30   : > { %p7012_p4 = pnand %p7010_p3, %p7380_p8 }
  0x32   : > { %p7013_p7 = pneg %p7012_p4 }
  0x34   : > { %p7018_p10 = pnand %p7016_p9, %p7013_p7 }
  0x36   : > { %7021 = shalt.err (!%p7018_p10)
}
  0x37   : > { %s7022_s30 = scalar_lea.vmem %s377_s15, 64  ;;  %p7030_p0 = scmp.lt.s32.totalorder %s377_s15, %s377_s15 }
  0x38   : > { %p7023_p11 = scmp.ne.s32.totalorder %s377_s15, %s7022_s30  ;;  %p7031_p1 = scmp.lt.s32.totalorder %s7022_s30, %s7022_s30 }
  0x3a   : > { %p7025_p12 = pnand %p7023_p11, %p7380_p8  ;;  %p7032_p2 = por %p7031_p1, %p7030_p0 }
  0x3c   : > { %p7026_p13 = pneg %p7025_p12 }
  0x3e   : > { %p7033_p5 = pnand %p7032_p2, %p7026_p13 }
  0x40   : > { %7036 = shalt.err (!%p7033_p5)
}
  0x41   : > { %6464 = dma.hbm_to_vmem [thread:$0]  (!%p7368_p6), %s7738_s3, 64, %s377_s15, [#allocation14]  }
  0x42   : > { %s7037_s26 = scalar_lea.hbm %s7742_s7, 32768 }
  0x43   : > { %p7038_p3 = scmp.ne.s32.totalorder %s7742_s7, %s7037_s26  ;;  %p7044_p9 = scmp.lt.u32.totalorder %s7037_s26, %s7742_s7 }
  0x45   : > { %p7040_p4 = pnand %p7038_p3, %p7380_p8 }
  0x47   : > { %p7041_p7 = pneg %p7040_p4 }
  0x49   : > { %p7046_p10 = pnand %p7044_p9, %p7041_p7 }
  0x4b   : > { %7049 = shalt.err (!%p7046_p10)
}
  0x4c   : > { %s7050_s14 = scalar_lea.vmem %s406_s19, 32768  ;;  %p7058_p0 = scmp.lt.s32.totalorder %s406_s19, %s406_s19 }
  0x4d   : > { %p7051_p11 = scmp.ne.s32.totalorder %s406_s19, %s7050_s14  ;;  %p7059_p1 = scmp.lt.s32.totalorder %s7050_s14, %s7050_s14 }
  0x4f   : > { %p7053_p12 = pnand %p7051_p11, %p7380_p8  ;;  %p7060_p2 = por %p7059_p1, %p7058_p0 }
  0x51   : > { %p7054_p13 = pneg %p7053_p12 }
  0x53   : > { %p7061_p5 = pnand %p7060_p2, %p7054_p13 }
  0x55   : > { %7064 = shalt.err (!%p7061_p5)
}
  0x56   : > { %6470 = dma.hbm_to_vmem [thread:$0]  (!%p7368_p6), %s7742_s7, 32768, %s406_s19, [#allocation17], %s7249_s16, %s7249_s16, %s7250_s17  }
  0x57   : > { %s7252_s12 = smov [#allocation12]   ;;  %s7253_s9 = smov [#allocation15]  }
  0x58   : > { %s365_s22 = sshll.u32 %s7252_s12, 4  ;;  %s386_s11 = sshll.u32 %s7253_s9, 4  ;;  %s366_s22 = int_to_ptr.vmem [resolvable:$true] %s365_s22  ;;  %s387_s11 = int_to_ptr.vmem [resolvable:$true] %s386_s11 }
  0x59   : > { %s7065_s25 = scalar_lea.hbm %s7737_s2, 64 }
  0x5a   : > { %p7066_p3 = scmp.ne.s32.totalorder %s7737_s2, %s7065_s25  ;;  %p7072_p9 = scmp.lt.u32.totalorder %s7065_s25, %s7737_s2 }
  0x5c   : > { %p7068_p4 = pnand %p7066_p3, %p7380_p8 }
  0x5e   : > { %p7069_p7 = pneg %p7068_p4 }
  0x60   : > { %p7074_p10 = pnand %p7072_p9, %p7069_p7 }
  0x62   : > { %7077 = shalt.err (!%p7074_p10)
}
  0x63   : > { %s7078_s16 = scalar_lea.vmem %s366_s22, 64  ;;  %p7086_p0 = scmp.lt.s32.totalorder %s366_s22, %s366_s22 }
  0x64   : > { %p7079_p11 = scmp.ne.s32.totalorder %s366_s22, %s7078_s16  ;;  %p7087_p1 = scmp.lt.s32.totalorder %s7078_s16, %s7078_s16 }
  0x66   : > { %p7081_p12 = pnand %p7079_p11, %p7380_p8  ;;  %p7088_p2 = por %p7087_p1, %p7086_p0 }
  0x68   : > { %p7082_p13 = pneg %p7081_p12 }
  0x6a   : > { %p7089_p5 = pnand %p7088_p2, %p7082_p13 }
  0x6c   : > { %7092 = shalt.err (!%p7089_p5)
}
  0x6d   : > { %6461 = dma.hbm_to_vmem [thread:$0]  (!%p7368_p6), %s7737_s2, 64, %s366_s22, [#allocation11]  }
  0x6e   : > { %s7093_s9 = scalar_lea.hbm %s7739_s4, 32768 }
  0x6f   : > { %p7094_p3 = scmp.ne.s32.totalorder %s7739_s4, %s7093_s9  ;;  %p7100_p9 = scmp.lt.u32.totalorder %s7093_s9, %s7739_s4 }
  0x71   : > { %p7096_p4 = pnand %p7094_p3, %p7380_p8 }
  0x73   : > { %p7097_p7 = pneg %p7096_p4 }
  0x75   : > { %p7102_p10 = pnand %p7100_p9, %p7097_p7 }
  0x77   : > { %7105 = shalt.err (!%p7102_p10)
}
  0x78   : > { %s7106_s20 = scalar_lea.vmem %s387_s11, 32768  ;;  %p7114_p0 = scmp.lt.s32.totalorder %s387_s11, %s387_s11 }
  0x79   : > { %p7107_p11 = scmp.ne.s32.totalorder %s387_s11, %s7106_s20  ;;  %p7115_p1 = scmp.lt.s32.totalorder %s7106_s20, %s7106_s20 }
  0x7b   : > { %p7109_p12 = pnand %p7107_p11, %p7380_p8  ;;  %p7116_p2 = por %p7115_p1, %p7114_p0 }
  0x7d   : > { %p7110_p13 = pneg %p7109_p12 }
  0x7f   : > { %p7117_p5 = pnand %p7116_p2, %p7110_p13 }
  0x81   : > { %7120 = shalt.err (!%p7117_p5)
}
  0x82   : > { %s7254_s22 = smov 512   ;;  %s7255_s14 = smov 32  }
  0x83   : > { %6467 = dma.hbm_to_vmem [thread:$0]  (!%p7368_p6), %s7739_s4, 32768, %s387_s11, [#allocation14], %s7254_s22, %s7254_s22, %s7255_s14  }
  0x84   : > { %s7256_s17 = smov [#allocation18]   ;;  %s7121_s9 = scalar_lea.hbm %s7745_s10, 4096 }
  0x85   : > { %s424_s19 = sshll.u32 %s7256_s17, 4  ;;  %p7122_p3 = scmp.ne.s32.totalorder %s7745_s10, %s7121_s9  ;;  %s425_s19 = int_to_ptr.vmem [resolvable:$true] %s424_s19 }
  0x86   : > { %p7128_p9 = scmp.lt.u32.totalorder %s7121_s9, %s7745_s10 }
  0x87   : > { %p7124_p4 = pnand %p7122_p3, %p7380_p8 }
  0x89   : > { %p7125_p7 = pneg %p7124_p4 }
  0x8b   : > { %p7130_p10 = pnand %p7128_p9, %p7125_p7 }
  0x8d   : > { %7133 = shalt.err (!%p7130_p10)
}
  0x8e   : > { %s7134_s11 = scalar_lea.vmem %s425_s19, 4096  ;;  %p7142_p0 = scmp.lt.s32.totalorder %s425_s19, %s425_s19 }
  0x8f   : > { %p7135_p11 = scmp.ne.s32.totalorder %s425_s19, %s7134_s11  ;;  %p7143_p1 = scmp.lt.s32.totalorder %s7134_s11, %s7134_s11 }
  0x91   : > { %p7137_p12 = pnand %p7135_p11, %p7380_p8  ;;  %p7144_p2 = por %p7143_p1, %p7142_p0 }
  0x93   : > { %p7138_p13 = pneg %p7137_p12 }
  0x95   : > { %p7145_p5 = pnand %p7144_p2, %p7138_p13 }
  0x97   : > { %7148 = shalt.err (!%p7145_p5)
}
  0x98   : > { %s7257_s20 = smov 64   ;;  %s7258_s22 = smov 4  }
  0x99   : > { %6473 = dma.hbm_to_vmem [thread:$0]  (!%p7368_p6), %s7745_s10, 4096, %s425_s19, [#allocation17], %s7257_s20, %s7257_s20, %s7258_s22  }
  0x9a   : > { %p6488_p3 = scmp.lt.s32.totalorder %s7245_s23, 4  ;;  %p6489_p4 = scmp.eq.s32.totalorder %s7245_s23, 0 }
  0x9b   : > { %s7259_s29 = smov [#allocation7]   ;;  %s7149_s9 = scalar_lea.hbm %s7735_s0, 128 }
  0x9c   : > { %s454_s16 = sshll.u32 %s7259_s29, 4  ;;  %p7494_p8 = pnand %p6489_p4, %p6488_p3  ;;  %s455_s16 = int_to_ptr.vmem [resolvable:$true] %s454_s16 }
  0x9d   : > { %p7150_p7 = scmp.ne.s32.totalorder %s7735_s0, %s7149_s9  ;;  %p7156_p11 = scmp.lt.u32.totalorder %s7149_s9, %s7735_s0 }
  0x9e   : > { %p7151_p6 = pneg %p7494_p8 }
  0xa0   : > { %p7152_p9 = pnand %p7151_p6, %p7150_p7 }
  0xa2   : > { %p7153_p10 = pneg %p7152_p9 }
  0xa4   : > { %p7158_p12 = pnand %p7156_p11, %p7153_p10 }
  0xa6   : > { %7161 = shalt.err (!%p7158_p12)
}
  0xa7   : > { %s7162_s25 = scalar_lea.vmem %s455_s16, 128  ;;  %s7169_s18 = scalar_lea.vmem %s455_s16, 256 }
  0xa8   : > { %p7163_p13 = scmp.ne.s32.totalorder %s455_s16, %s7162_s25  ;;  %p7170_p2 = scmp.lt.s32.totalorder %s455_s16, %s455_s16 }
  0xa9   : > { %p7171_p5 = scmp.lt.s32.totalorder %s7169_s18, %s7162_s25 }
  0xaa   : > { %p7165_p0 = pnand %p7163_p13, %p7151_p6 }
  0xab   : > { %p7172_p3 = por %p7171_p5, %p7170_p2 }
  0xac   : > { %p7166_p1 = pneg %p7165_p0 }
  0xae   : > { %p7173_p4 = pnand %p7172_p3, %p7166_p1 }
  0xb0   : > { %7176 = shalt.err (!%p7173_p4)
}
  0xb1   : > { %6477 = dma.hbm_to_vmem [thread:$0]  (!%p7494_p8), %s7735_s0, 128, %s455_s16, [#allocation8]  }
  0xb2   : > { %p7764_p7 = scmp.ne.s32.totalorder %s7760_s28, 0 }
  0xb3   : > { %p7765_p9 = scmp.ne.s32.totalorder (!%p7764_p7), %s7758_s27, 0 }
  0xb4   : > { %463 = sbr.rel (%p7764_p7) target bundleno = 1807 (0x70f), region = 68 }
  0xbb   : > { %7216 = dma.done.wait (%p7765_p9), [#allocation8], 128  }
  0xbc   : > { %7218 = vsyncadd (%p7765_p9), [#allocation8], 4294967168 }
  0xbd   : > { %7220 = dma.done.wait (%p7765_p9), [#allocation11], 1088  }
  0xbe   : > { %7222 = vsyncadd (%p7765_p9), [#allocation11], 4294966208 }
  0xbf   : > { %7224 = dma.done.wait (%p7765_p9), [#allocation14], 32832  }
  0xc0   : > { %7226 = vsyncadd (%p7765_p9), [#allocation14], 4294934464 }
  0xc1   : > { %7228 = dma.done.wait (%p7765_p9), [#allocation17], 36864  }
  0xc2   : > { %7230 = vsyncadd (%p7765_p9), [#allocation17], 4294930432  ;;  %p5776_p8 = scmp.ne.s32.totalorder %s7237_s21, 0 }
  0xc3   : > { %v6545_v0 = vld [vmem:[#allocation10 + $0x4] ss:$16 sps:$4 sm:$0xff] (!%p5776_p8)   ;;  %v6547_v1 = vld [vmem:[#allocation10 + $0xc] ss:$16 sps:$4 sm:$0xff] (!%p5776_p8)   ;;  %v7260_v2 = vmov (!%p5776_p8), 0   ;;  %vm594_vm0 = vcmask (!%p5776_p8), 261120   ;;  %v693_v11 = vlaneseq (!%p5776_p8) }
  0xc4   : > { %543 = sbr.rel (%p5776_p8) target bundleno = 474 (0x1da), region = 100  ;;  %630 = vmatprep.mubr.bf16.mxu0 (!%p5776_p8), %v7260_v2  ;;  %671 = vmatprep.mubr.bf16.mxu1 (!%p5776_p8), %v7260_v2  ;;  %v6549_v3 = vld [vmem:[#allocation10] ss:$16 sps:$4 sm:$0xff] (!%p5776_p8)   ;;  %v6550_v4 = vld [vmem:[#allocation10 + $0x8] ss:$16 sps:$4 sm:$0xff] (!%p5776_p8)   ;;  %v7261_v13 = vmov (!%p5776_p8), 0.0  }
  0xc5   : > { %598 = vmatprep.subr.bf16.mxu0 (!%p5776_p8), %v6545_v0  ;;  %639 = vmatprep.subr.bf16.mxu1 (!%p5776_p8), %v6547_v1  ;;  %v6551_v5 = vld [vmem:[#allocation10 + $0x24] ss:$16 sps:$4 sm:$0xff] (!%p5776_p8)   ;;  %v6553_v6 = vld [vmem:[#allocation10 + $0x2c] ss:$16 sps:$4 sm:$0xff] (!%p5776_p8)   ;;  %v6555_v7 = vld [vmem:[#allocation10 + $0x20] ss:$16 sps:$4 sm:$0xff] (!%p5776_p8)  }
  0xc6   : > { %599 = vmatpush1.bf16.msra.mxu0 (!%p5776_p8), %v6549_v3  ;;  %640 = vmatpush1.bf16.msra.mxu1 (!%p5776_p8), %v6550_v4  ;;  %v6556_v8 = vld [vmem:[#allocation10 + $0x28] ss:$16 sps:$4 sm:$0xff] (!%p5776_p8)   ;;  %v544_v9 = vld [vmem:[#allocation7] sm:$0xff] (!%p5776_p8)  ;;  %vm7533_vm1 = vcmp.lt.s32.totalorder (!%p5776_p8), %v693_v11, 512  ;;  %v7262_v14 = vmov (!%p5776_p8), 1966171168  }
  0xc7   : > { %600 = vmatprep.subr.bf16.mxu0 (!%p5776_p8), %v6551_v5  ;;  %641 = vmatprep.subr.bf16.mxu1 (!%p5776_p8), %v6553_v6  ;;  %v545_v10 = vpack.c.bf16 (!%p5776_p8), %v544_v9, %v544_v9  ;;  %697 = vst.msk [vmem:[#allocation3] sm:$0xf] (!%p5776_p8), %vm7533_vm1, %v7261_v13  ;;  %698 = vst.msk [vmem:[#allocation4] sm:$0xf] (!%p5776_p8), %vm7533_vm1, %v7261_v13  ;;  %v731_v15 = vunpack.c.l.s4 (!%p5776_p8), %v7262_v14  ;;  %v734_v17 = vshrl.u32 (!%p5776_p8), %v693_v11, 7 }
  0xc9   : > { %v732_v16 = vunpack.c.0.s8 (!%p5776_p8), %v731_v15 }
  0xca   : > { %601 = vmatpush1.bf16.msra.mxu0 (!%p5776_p8), %v6555_v7  ;;  %642 = vmatpush1.bf16.msra.mxu1 (!%p5776_p8), %v6556_v8 }
  0xcb   : > { %v7541_v20 = vsub.s32 %v732_v16, %v734_v17 }
  0xcd   : > { %5785 = vmatmul.mubr.msk.bf16.vlgmr.msra.gmra.mrb[0].mxu0 %vm594_vm0, %v545_v10  ;;  %5786 = vmatmul.mubr.msk.bf16.vlgmr.msra.gmra.mrb[0].mxu1 %vm594_vm0, %v545_v10 }
 0x1a0   : > { %v632_v18 = vpop.f32.mrb[0].mxu0  ;;  %v673_v19 = vpop.f32.mrb[0].mxu1 }
 0x1a1   : > { %685 = vst [vmem:[#allocation2] sm:$0xff] %v632_v18  ;;  %v700_v21 = vrot.slane %v632_v18, 4  ;;  %v760_v22 = vmul.f32 %v632_v18, %v632_v18  ;;  %687 = vst [vmem:[#allocation2 + $0x10] sm:$0xff] %v673_v19  ;;  %v712_v23 = vrot.slane %v673_v19, 4  ;;  %v762_v24 = vmul.f32 %v673_v19, %v673_v19  ;;  %v634_v25 = vpop.f32.mrb[1].mxu0  ;;  %v675_v26 = vpop.f32.mrb[1].mxu1 }
 0x1a2   : > { %686 = vst [vmem:[#allocation2 + $0x8] sm:$0xff] %v634_v25  ;;  %v706_v27 = vrot.slane %v634_v25, 4  ;;  %v761_v28 = vmul.f32 %v634_v25, %v634_v25  ;;  %688 = vst [vmem:[#allocation2 + $0x18] sm:$0xff] %v675_v26  ;;  %v718_v29 = vrot.slane %v675_v26, 4  ;;  %v763_v30 = vmul.f32 %v675_v26, %v675_v26  ;;  %v636_v31 = vpop.f32.mrb[2].mxu0  ;;  %v677_v32 = vpop.f32.mrb[2].mxu1 }
 0x1a3   : > { %v701_v33 = vadd.f32 %v700_v21, %v632_v18  ;;  %v764_v34 = vrot.slane %v760_v22, 4  ;;  %v713_v35 = vadd.f32 %v712_v23, %v673_v19  ;;  %v776_v36 = vrot.slane %v762_v24, 4  ;;  %v637_v37 = vpop.f32.mrb[3].mxu0  ;;  %v678_v38 = vpop.f32.mrb[3].mxu1 }
 0x1a4   : > { %v707_v39 = vadd.f32 %v706_v27, %v634_v25  ;;  %v770_v40 = vrot.slane %v761_v28, 4  ;;  %v719_v41 = vadd.f32 %v718_v29, %v675_v26  ;;  %v782_v42 = vrot.slane %v763_v30, 4  ;;  %v699_v26 = vld [vmem:[#allocation3] sm:$0xf]  ;;  %v759_v29 = vld [vmem:[#allocation4] sm:$0xf] }
 0x1a5   : > { %v702_v43 = vrot.slane %v701_v33, 2  ;;  %v765_v44 = vadd.f32 %v764_v34, %v760_v22  ;;  %v714_v45 = vrot.slane %v713_v35, 2  ;;  %v777_v46 = vadd.f32 %v776_v36, %v762_v24 }
 0x1a6   : > { %v708_v47 = vrot.slane %v707_v39, 2  ;;  %v771_v48 = vadd.f32 %v770_v40, %v761_v28  ;;  %v720_v49 = vrot.slane %v719_v41, 2  ;;  %v783_v50 = vadd.f32 %v782_v42, %v763_v30  ;;  %v828_v40 = vld [vmem:[#allocation12] sm:$0xf] }
 0x1a7   : > { %v703_v51 = vadd.f32 %v702_v43, %v701_v33  ;;  %v766_v52 = vrot.slane %v765_v44, 2  ;;  %v715_v53 = vadd.f32 %v714_v45, %v713_v35  ;;  %v778_v54 = vrot.slane %v777_v46, 2  ;;  %v833_v43 = vld [vmem:[#allocation13] sm:$0xf] }
 0x1a8   : > { %v709_v55 = vadd.f32 %v708_v47, %v707_v39  ;;  %v772_v56 = vrot.slane %v771_v48, 2  ;;  %v721_v57 = vadd.f32 %v720_v49, %v719_v41  ;;  %v784_v58 = vrot.slane %v783_v50, 2 }
 0x1a9   : > { %v704_v59 = vrot.slane %v703_v51, 1  ;;  %v767_v60 = vadd.f32 %v766_v52, %v765_v44  ;;  %v716_v61 = vrot.slane %v715_v53, 1  ;;  %v779_v62 = vadd.f32 %v778_v54, %v777_v46 }
 0x1aa   : > { %v710_v63 = vrot.slane %v709_v55, 1  ;;  %v773_v0 = vadd.f32 %v772_v56, %v771_v48  ;;  %v722_v1 = vrot.slane %v721_v57, 1  ;;  %v785_v2 = vadd.f32 %v784_v58, %v783_v50 }
 0x1ab   : > { %v705_v3 = vadd.f32 %v704_v59, %v703_v51  ;;  %v768_v4 = vrot.slane %v767_v60, 1  ;;  %v717_v5 = vadd.f32 %v716_v61, %v715_v53  ;;  %v780_v6 = vrot.slane %v779_v62, 1 }
 0x1ac   : > { %v711_v7 = vadd.f32 %v710_v63, %v709_v55  ;;  %v774_v8 = vrot.slane %v773_v0, 1  ;;  %v723_v9 = vadd.f32 %v722_v1, %v721_v57  ;;  %v786_v10 = vrot.slane %v785_v2, 1 }
 0x1ad   : > { %v769_v11 = vadd.f32 %v768_v4, %v767_v60  ;;  %v781_v13 = vadd.f32 %v780_v6, %v779_v62 }
 0x1ae   : > { %v728_v14 = vcombine.low %v705_v3, %v711_v7  ;;  %v775_v15 = vadd.f32 %v774_v8, %v773_v0  ;;  %v729_v16 = vcombine.low %v717_v5, %v723_v9  ;;  %v787_v17 = vadd.f32 %v786_v10, %v785_v2 }
 0x1b0   : > { %v736_v18 = vrot.slane %v728_v14, %v7541_v20  ;;  %v792_v19 = vcombine.low %v769_v11, %v775_v15  ;;  %v743_v21 = vrot.slane %v729_v16, %v7541_v20  ;;  %v793_v22 = vcombine.low %v781_v13, %v787_v17 }
 0x1b2   : > { %v800_v23 = vrot.slane %v792_v19, %v7541_v20  ;;  %v744_v24 = vcombine.low %v736_v18, %v743_v21  ;;  %v807_v25 = vrot.slane %v793_v22, %v7541_v20 }
 0x1b4   : > { %v751_v27 = vrot.slane %v744_v24, %v7541_v20  ;;  %v808_v28 = vcombine.low %v800_v23, %v807_v25 }
 0x1b6   : > { %v753_v30 = vadd.f32 %v751_v27, %v699_v26  ;;  %v815_v31 = vrot.slane %v808_v28, %v7541_v20 }
 0x1b8   : > { %758 = vst.msk [vmem:[#allocation3] sm:$0xf] %vm7533_vm1, %v753_v30  ;;  %v817_v32 = vadd.f32 %v815_v31, %v759_v29 }
 0x1ba   : > { %818 = vst.msk [vmem:[#allocation4] sm:$0xf] %vm7533_vm1, %v817_v32 }
 0x1bf   : > { %v822_v33 = vld [vmem:[#allocation3] sm:$0xf] }
 0x1c0   : > { %v823_v34 = vmul.f32 0.125, %v822_v33 }
 0x1c1   : > { %v824_v35 = vld [vmem:[#allocation4] sm:$0xf] }
 0x1c2   : > { %v825_v36 = vmul.f32 0.125, %v824_v35  ;;  %v826_v37 = vmul.f32 %v823_v34, %v823_v34 }
 0x1c4   : > { %v827_v38 = vsub.f32 %v825_v36, %v826_v37 }
 0x1c6   : > { %v829_v39 = vadd.f32 1e-05, %v827_v38 }
 0x1c8   : > { %6557 = vrsqrt.f32 %v829_v39 }
 0x1d2   : > { %v6558_v41 = vpop.eup %6557 }
 0x1d3   : > { %v831_v42 = vmul.f32 %v6558_v41, %v828_v40 }
 0x1d5   : > { %832 = vst.msk [vmem:[#allocation5] sm:$0xf] %vm7533_vm1, %v831_v42  ;;  %v834_v20 = vmul.f32 %v831_v42, %v823_v34 }
 0x1d7   : > { %v835_v44 = vsub.f32 %v833_v43, %v834_v20 }
 0x1d9   : > { %836 = vst.msk [vmem:[#allocation6] sm:$0xf] %vm7533_vm1, %v835_v44 }
 0x1da PF: > { %p5787_p6 = scmp.ne.s32.totalorder %s7237_s21, 1 }
 0x1db   : > { %v910_v45 = vld [vmem:[#allocation15] sm:$0xff] (!%p5787_p6)  ;;  %v911_v47 = vld [vmem:[#allocation15 + $0x8] sm:$0xff] (!%p5787_p6)  ;;  %v852_v13 = vlaneseq (!%p5787_p6)  ;;  %v847_v38 = vld [vmem:[#allocation2 + $0x8] sm:$0xff] (!%p5787_p6) }
 0x1dc   : > { %840 = sbr.rel (%p5787_p6) target bundleno = 996 (0x3e4), region = 112  ;;  %v914_v46 = vld [vmem:[#allocation15 + $0x20] sm:$0xff] (!%p5787_p6)  ;;  %v915_v49 = vld [vmem:[#allocation15 + $0x28] sm:$0xff] (!%p5787_p6)  ;;  %v7561_v39 = vld [vmem:[#allocation5] sm:$0xf] (!%p5787_p6) }
 0x1dd   : > { %v5789_v48 = vcombine.high (!%p5787_p6), %v910_v45, %v914_v46  ;;  %v5788_v50 = vcombine.low (!%p5787_p6), %v910_v45, %v914_v46  ;;  %v918_v51 = vld [vmem:[#allocation15 + $0x40] sm:$0xff] (!%p5787_p6)  ;;  %v5791_v53 = vcombine.high (!%p5787_p6), %v911_v47, %v915_v49  ;;  %v5790_v54 = vcombine.low (!%p5787_p6), %v911_v47, %v915_v49  ;;  %v919_v56 = vld [vmem:[#allocation15 + $0x48] sm:$0xff] (!%p5787_p6) }
 0x1de   : > { %v922_v52 = vld [vmem:[#allocation15 + $0x60] sm:$0xff] (!%p5787_p6)  ;;  %v923_v57 = vld [vmem:[#allocation15 + $0x68] sm:$0xff] (!%p5787_p6)  ;;  %v7558_v23 = vshrl.u32 (!%p5787_p6), %v852_v13, 7 }
 0x1df   : > { %v5797_v55 = vcombine.high (!%p5787_p6), %v918_v51, %v922_v52  ;;  %v926_v58 = vld [vmem:[#allocation15 + $0x80] sm:$0xff] (!%p5787_p6)  ;;  %2446 = vmatprep.subr.bf16.mxu0 (!%p5787_p6), %v5789_v48  ;;  %v5799_v12 = vcombine.high (!%p5787_p6), %v919_v56, %v923_v57  ;;  %v927_v60 = vld [vmem:[#allocation15 + $0x88] sm:$0xff] (!%p5787_p6)  ;;  %2528 = vmatprep.subr.bf16.mxu1 (!%p5787_p6), %v5791_v53  ;;  %v5796_v62 = vcombine.low (!%p5787_p6), %v918_v51, %v922_v52 }
 0x1e0   : > { %v930_v59 = vld [vmem:[#allocation15 + $0xa0] sm:$0xff] (!%p5787_p6)  ;;  %v931_v61 = vld [vmem:[#allocation15 + $0xa8] sm:$0xff] (!%p5787_p6)  ;;  %2447 = vmatpush1.bf16.msra.mxu0 (!%p5787_p6), %v5788_v50  ;;  %2529 = vmatpush1.bf16.msra.mxu1 (!%p5787_p6), %v5790_v54  ;;  %v5798_v63 = vcombine.low (!%p5787_p6), %v919_v56, %v923_v57  ;;  %v858_v32 = vsub.s32 (!%p5787_p6), 1, %v7558_v23 }
 0x1e1   : > { %2448 = vmatprep.subr.bf16.mxu0 (!%p5787_p6), %v5797_v55  ;;  %v5805_v0 = vcombine.high (!%p5787_p6), %v926_v58, %v930_v59  ;;  %2530 = vmatprep.subr.bf16.mxu1 (!%p5787_p6), %v5799_v12  ;;  %v5807_v1 = vcombine.high (!%p5787_p6), %v927_v60, %v931_v61  ;;  %v934_v2 = vld [vmem:[#allocation15 + $0xc0] sm:$0xff] (!%p5787_p6)  ;;  %v935_v4 = vld [vmem:[#allocation15 + $0xc8] sm:$0xff] (!%p5787_p6)  ;;  %v5804_v6 = vcombine.low (!%p5787_p6), %v926_v58, %v930_v59 }
 0x1e2   : > { %v938_v3 = vld [vmem:[#allocation15 + $0xe0] sm:$0xff] (!%p5787_p6)  ;;  %v939_v5 = vld [vmem:[#allocation15 + $0xe8] sm:$0xff] (!%p5787_p6)  ;;  %v5806_v7 = vcombine.low (!%p5787_p6), %v927_v60, %v931_v61  ;;  %v859_v43 = vrot.slane (!%p5787_p6), %v7561_v39, %v858_v32 }
 0x1e3   : > { %v5813_v8 = vcombine.high %v934_v2, %v938_v3  ;;  %v5815_v9 = vcombine.high %v935_v4, %v939_v5  ;;  %v942_v10 = vld [vmem:[#allocation15 + $0x100] sm:$0xff]  ;;  %v943_v14 = vld [vmem:[#allocation15 + $0x108] sm:$0xff]  ;;  %v5812_v16 = vcombine.low %v934_v2, %v938_v3  ;;  %v5814_v17 = vcombine.low %v935_v4, %v939_v5 }
 0x1e4   : > { %2449 = vmatpush1.bf16.msra.mxu0 %v5796_v62  ;;  %2531 = vmatpush1.bf16.msra.mxu1 %v5798_v63  ;;  %v946_v11 = vld [vmem:[#allocation15 + $0x120] sm:$0xff]  ;;  %v947_v15 = vld [vmem:[#allocation15 + $0x128] sm:$0xff]  ;;  %v873_v48 = vmul.f32 %v859_v43, %v847_v38 }
 0x1e5   : > { %2450 = vmatprep.subr.bf16.mxu0 %v5805_v0  ;;  %2532 = vmatprep.subr.bf16.mxu1 %v5807_v1  ;;  %v5821_v18 = vcombine.high %v942_v10, %v946_v11  ;;  %v5823_v19 = vcombine.high %v943_v14, %v947_v15  ;;  %v950_v21 = vld [vmem:[#allocation15 + $0x140] sm:$0xff]  ;;  %v951_v24 = vld [vmem:[#allocation15 + $0x148] sm:$0xff]  ;;  %v5820_v26 = vcombine.low %v942_v10, %v946_v11 }
 0x1e6   : > { %v954_v22 = vld [vmem:[#allocation15 + $0x160] sm:$0xff]  ;;  %v955_v25 = vld [vmem:[#allocation15 + $0x168] sm:$0xff]  ;;  %v5822_v27 = vcombine.low %v943_v14, %v947_v15 }
 0x1e7   : > { %v5829_v28 = vcombine.high %v950_v21, %v954_v22  ;;  %v5831_v29 = vcombine.high %v951_v24, %v955_v25  ;;  %v958_v30 = vld [vmem:[#allocation15 + $0x180] sm:$0xff]  ;;  %v959_v33 = vld [vmem:[#allocation15 + $0x188] sm:$0xff]  ;;  %v5828_v35 = vcombine.low %v950_v21, %v954_v22  ;;  %v5830_v36 = vcombine.low %v951_v24, %v955_v25 }
 0x1e8   : > { %2451 = vmatpush1.bf16.msra.mxu0 %v5804_v6  ;;  %2533 = vmatpush1.bf16.msra.mxu1 %v5806_v7  ;;  %v962_v31 = vld [vmem:[#allocation15 + $0x1a0] sm:$0xff]  ;;  %v963_v34 = vld [vmem:[#allocation15 + $0x1a8] sm:$0xff] }
 0x1e9   : > { %2452 = vmatprep.subr.bf16.mxu0 %v5813_v8  ;;  %2534 = vmatprep.subr.bf16.mxu1 %v5815_v9  ;;  %v5837_v37 = vcombine.high %v958_v30, %v962_v31  ;;  %v5839_v40 = vcombine.high %v959_v33, %v963_v34  ;;  %v966_v41 = vld [vmem:[#allocation15 + $0x1c0] sm:$0xff]  ;;  %v967_v44 = vld [vmem:[#allocation15 + $0x1c8] sm:$0xff]  ;;  %v5836_v47 = vcombine.low %v958_v30, %v962_v31 }
 0x1ea   : > { %v970_v42 = vld [vmem:[#allocation15 + $0x1e0] sm:$0xff]  ;;  %v971_v45 = vld [vmem:[#allocation15 + $0x1e8] sm:$0xff]  ;;  %v5838_v49 = vcombine.low %v959_v33, %v963_v34 }
 0x1eb   : > { %v7564_v20 = vld [vmem:[#allocation6] sm:$0xf]  ;;  %v5845_v50 = vcombine.high %v966_v41, %v970_v42  ;;  %v5847_v51 = vcombine.high %v967_v44, %v971_v45  ;;  %v975_v55 = vld [vmem:[#allocation15 + $0x208] sm:$0xff]  ;;  %v5844_v57 = vcombine.low %v966_v41, %v970_v42  ;;  %v5846_v12 = vcombine.low %v967_v44, %v971_v45 }
 0x1ec   : > { %2453 = vmatpush1.bf16.msra.mxu0 %v5812_v16  ;;  %2535 = vmatpush1.bf16.msra.mxu1 %v5814_v17  ;;  %v885_v46 = vrot.slane %v7564_v20, %v858_v32  ;;  %v974_v52 = vld [vmem:[#allocation15 + $0x200] sm:$0xff]  ;;  %v979_v56 = vld [vmem:[#allocation15 + $0x228] sm:$0xff] }
 0x1ed   : > { %2454 = vmatprep.subr.bf16.mxu0 %v5821_v18  ;;  %2536 = vmatprep.subr.bf16.mxu1 %v5823_v19  ;;  %v978_v53 = vld [vmem:[#allocation15 + $0x220] sm:$0xff]  ;;  %v5855_v60 = vcombine.high %v975_v55, %v979_v56  ;;  %v983_v0 = vld [vmem:[#allocation15 + $0x248] sm:$0xff]  ;;  %v5854_v3 = vcombine.low %v975_v55, %v979_v56 }
 0x1ee   : > { %v899_v54 = vadd.f32 %v885_v46, %v873_v48  ;;  %v5853_v59 = vcombine.high %v974_v52, %v978_v53  ;;  %v982_v61 = vld [vmem:[#allocation15 + $0x240] sm:$0xff]  ;;  %v987_v1 = vld [vmem:[#allocation15 + $0x268] sm:$0xff]  ;;  %v5852_v2 = vcombine.low %v974_v52, %v978_v53 }
 0x1ef   : > { %v986_v62 = vld [vmem:[#allocation15 + $0x260] sm:$0xff]  ;;  %v5863_v5 = vcombine.high %v983_v0, %v987_v1  ;;  %v991_v8 = vld [vmem:[#allocation15 + $0x288] sm:$0xff]  ;;  %v5862_v11 = vcombine.low %v983_v0, %v987_v1 }
 0x1f0   : > { %2455 = vmatpush1.bf16.msra.mxu0 %v5820_v26  ;;  %2537 = vmatpush1.bf16.msra.mxu1 %v5822_v27  ;;  %v903_v58 = vmax.f32 %v899_v54, 0.0  ;;  %v5861_v4 = vcombine.high %v982_v61, %v986_v62  ;;  %v990_v6 = vld [vmem:[#allocation15 + $0x280] sm:$0xff]  ;;  %v995_v9 = vld [vmem:[#allocation15 + $0x2a8] sm:$0xff]  ;;  %v5860_v10 = vcombine.low %v982_v61, %v986_v62 }
 0x1f1   : > { %2456 = vmatprep.subr.bf16.mxu0 %v5829_v28  ;;  %2538 = vmatprep.subr.bf16.mxu1 %v5831_v29  ;;  %v994_v7 = vld [vmem:[#allocation15 + $0x2a0] sm:$0xff]  ;;  %v5871_v14 = vcombine.high %v991_v8, %v995_v9  ;;  %v999_v17 = vld [vmem:[#allocation15 + $0x2c8] sm:$0xff]  ;;  %v5870_v21 = vcombine.low %v991_v8, %v995_v9  ;;  %v854_v29 = vsub.s32 0, %v7558_v23 }
 0x1f2   : > { %v7567_v63 = vpack.c.bf16 %v903_v58, %v903_v58  ;;  %v5869_v13 = vcombine.high %v990_v6, %v994_v7  ;;  %v998_v15 = vld [vmem:[#allocation15 + $0x2c0] sm:$0xff]  ;;  %v1003_v18 = vld [vmem:[#allocation15 + $0x2e8] sm:$0xff]  ;;  %v5868_v19 = vcombine.low %v990_v6, %v994_v7 }
 0x1f3   : > { %v1002_v16 = vld [vmem:[#allocation15 + $0x2e0] sm:$0xff]  ;;  %v5879_v24 = vcombine.high %v999_v17, %v1003_v18  ;;  %v1007_v27 = vld [vmem:[#allocation15 + $0x308] sm:$0xff]  ;;  %v5878_v31 = vcombine.low %v999_v17, %v1003_v18  ;;  %v881_v52 = vrot.slane %v7564_v20, %v854_v29 }
 0x1f4   : > { %2457 = vmatpush1.bf16.msra.mxu0 %v5828_v35  ;;  %2539 = vmatpush1.bf16.msra.mxu1 %v5830_v36  ;;  %v5877_v22 = vcombine.high %v998_v15, %v1002_v16  ;;  %v1006_v25 = vld [vmem:[#allocation15 + $0x300] sm:$0xff]  ;;  %v1011_v28 = vld [vmem:[#allocation15 + $0x328] sm:$0xff]  ;;  %v5876_v30 = vcombine.low %v998_v15, %v1002_v16  ;;  %v866_v36 = vsub.s32 3, %v7558_v23 }
 0x1f5   : > { %2458 = vmatprep.subr.bf16.mxu0 %v5837_v37  ;;  %2540 = vmatprep.subr.bf16.mxu1 %v5839_v40  ;;  %v1010_v26 = vld [vmem:[#allocation15 + $0x320] sm:$0xff]  ;;  %v5887_v33 = vcombine.high %v1007_v27, %v1011_v28  ;;  %v1015_v37 = vld [vmem:[#allocation15 + $0x348] sm:$0xff]  ;;  %v855_v40 = vrot.slane %v7561_v39, %v854_v29  ;;  %v5886_v43 = vcombine.low %v1007_v27, %v1011_v28 }
 0x1f6   : > { %2478 = vmatprep.mubr.bf16.mxu0 %v7567_v63  ;;  %2560 = vmatprep.mubr.bf16.mxu1 %v7567_v63  ;;  %v5885_v32 = vcombine.high %v1006_v25, %v1010_v26  ;;  %v1014_v34 = vld [vmem:[#allocation15 + $0x340] sm:$0xff]  ;;  %v1019_v38 = vld [vmem:[#allocation15 + $0x368] sm:$0xff]  ;;  %v5884_v41 = vcombine.low %v1006_v25, %v1010_v26  ;;  %v867_v48 = vrot.slane %v7561_v39, %v866_v36 }
 0x1f7   : > { %v1018_v35 = vld [vmem:[#allocation15 + $0x360] sm:$0xff]  ;;  %v846_v42 = vld [vmem:[#allocation2] sm:$0xff]  ;;  %v5895_v45 = vcombine.high %v1015_v37, %v1019_v38  ;;  %v5894_v55 = vcombine.low %v1015_v37, %v1019_v38 }
 0x1f8   : > { %2459 = vmatpush1.bf16.msra.mxu0 %v5836_v47  ;;  %2541 = vmatpush1.bf16.msra.mxu1 %v5838_v49  ;;  %v5893_v44 = vcombine.high %v1014_v34, %v1018_v35  ;;  %v1022_v46 = vld [vmem:[#allocation15 + $0x380] sm:$0xff]  ;;  %v1023_v49 = vld [vmem:[#allocation15 + $0x388] sm:$0xff]  ;;  %v5892_v54 = vcombine.low %v1014_v34, %v1018_v35 }
 0x1f9   : > { %2460 = vmatprep.subr.bf16.mxu0 %v5845_v50  ;;  %2542 = vmatprep.subr.bf16.mxu1 %v5847_v51  ;;  %v1026_v47 = vld [vmem:[#allocation15 + $0x3a0] sm:$0xff]  ;;  %v1027_v50 = vld [vmem:[#allocation15 + $0x3a8] sm:$0xff]  ;;  %v872_v51 = vmul.f32 %v855_v40, %v846_v42 }
 0x1fa   : > { %v849_v53 = vld [vmem:[#allocation2 + $0x18] sm:$0xff]  ;;  %v5901_v56 = vcombine.high %v1022_v46, %v1026_v47  ;;  %v1031_v61 = vld [vmem:[#allocation15 + $0x3c8] sm:$0xff]  ;;  %v5900_v1 = vcombine.low %v1022_v46, %v1026_v47 }
 0x1fb   : > { %v1030_v58 = vld [vmem:[#allocation15 + $0x3c0] sm:$0xff]  ;;  %v1035_v62 = vld [vmem:[#allocation15 + $0x3e8] sm:$0xff]  ;;  %v898_v0 = vadd.f32 %v881_v52, %v872_v51 }
 0x1fc   : > { %2461 = vmatpush1.bf16.msra.mxu0 %v5844_v57  ;;  %2543 = vmatpush1.bf16.msra.mxu1 %v5846_v12  ;;  %v5903_v57 = vcombine.high %v1023_v49, %v1027_v50  ;;  %v1034_v12 = vld [vmem:[#allocation15 + $0x3e0] sm:$0xff]  ;;  %v1039_v8 = vld [vmem:[#allocation15 + $0x408] sm:$0xff] }
 0x1fd   : > { %2462 = vmatprep.subr.bf16.mxu0 %v5853_v59  ;;  %2544 = vmatprep.subr.bf16.mxu1 %v5855_v60  ;;  %v875_v59 = vmul.f32 %v867_v48, %v849_v53  ;;  %v893_v60 = vrot.slane %v7564_v20, %v866_v36  ;;  %v1042_v6 = vld [vmem:[#allocation15 + $0x420] sm:$0xff]  ;;  %v1043_v9 = vld [vmem:[#allocation15 + $0x428] sm:$0xff] }
 0x1fe   : > { %v5919_v15 = vcombine.high %v1039_v8, %v1043_v9  ;;  %v1046_v16 = vld [vmem:[#allocation15 + $0x440] sm:$0xff]  ;;  %v5918_v25 = vcombine.low %v1039_v8, %v1043_v9  ;;  %v1063_v40 = vld [vmem:[#allocation15 + $0x4c8] sm:$0xff] }
 0x1ff   : > { %v901_v7 = vadd.f32 %v893_v60, %v875_v59  ;;  %v1050_v17 = vld [vmem:[#allocation15 + $0x460] sm:$0xff]  ;;  %v1071_v48 = vld [vmem:[#allocation15 + $0x508] sm:$0xff] }
 0x200   : > { %2463 = vmatpush1.bf16.msra.mxu0 %v5852_v2  ;;  %2545 = vmatpush1.bf16.msra.mxu1 %v5854_v3  ;;  %v5902_v2 = vcombine.low %v1023_v49, %v1027_v50  ;;  %v5909_v3 = vcombine.high %v1030_v58, %v1034_v12  ;;  %v5925_v26 = vcombine.high %v1046_v16, %v1050_v17  ;;  %v1054_v28 = vld [vmem:[#allocation15 + $0x480] sm:$0xff]  ;;  %v1075_v49 = vld [vmem:[#allocation15 + $0x528] sm:$0xff] }
 0x201   : > { %2464 = vmatprep.subr.bf16.mxu0 %v5861_v4  ;;  %2546 = vmatprep.subr.bf16.mxu1 %v5863_v5  ;;  %v5911_v4 = vcombine.high %v1031_v61, %v1035_v62  ;;  %v1038_v5 = vld [vmem:[#allocation15 + $0x400] sm:$0xff]  ;;  %v905_v18 = vmax.f32 %v901_v7, 0.0  ;;  %v5951_v53 = vcombine.high %v1071_v48, %v1075_v49  ;;  %v1095_v8 = vld [vmem:[#allocation15 + $0x5c8] sm:$0xff] }
 0x202   : > { %v1058_v29 = vld [vmem:[#allocation15 + $0x4a0] sm:$0xff]  ;;  %v1099_v9 = vld [vmem:[#allocation15 + $0x5e8] sm:$0xff] }
 0x203   : > { %v5933_v35 = vcombine.high %v1054_v28, %v1058_v29  ;;  %v1062_v37 = vld [vmem:[#allocation15 + $0x4c0] sm:$0xff]  ;;  %v5932_v42 = vcombine.low %v1054_v28, %v1058_v29  ;;  %v1111_v28 = vld [vmem:[#allocation15 + $0x648] sm:$0xff] }
 0x204   : > { %2465 = vmatpush1.bf16.msra.mxu0 %v5860_v10  ;;  %2547 = vmatpush1.bf16.msra.mxu1 %v5862_v11  ;;  %v902_v10 = vmax.f32 %v898_v0, 0.0  ;;  %v5908_v11 = vcombine.low %v1030_v58, %v1034_v12  ;;  %v1066_v38 = vld [vmem:[#allocation15 + $0x4e0] sm:$0xff]  ;;  %v5950_v12 = vcombine.low %v1071_v48, %v1075_v49  ;;  %v1087_v0 = vld [vmem:[#allocation15 + $0x588] sm:$0xff] }
 0x205   : > { %2466 = vmatprep.subr.bf16.mxu0 %v5869_v13  ;;  %2548 = vmatprep.subr.bf16.mxu1 %v5871_v14  ;;  %v5910_v13 = vcombine.low %v1031_v61, %v1035_v62  ;;  %v5917_v14 = vcombine.high %v1038_v5, %v1042_v6  ;;  %v1070_v46 = vld [vmem:[#allocation15 + $0x500] sm:$0xff]  ;;  %v5940_v50 = vcombine.low %v1062_v37, %v1066_v38  ;;  %v1115_v29 = vld [vmem:[#allocation15 + $0x668] sm:$0xff] }
 0x206   : > { %v1074_v47 = vld [vmem:[#allocation15 + $0x520] sm:$0xff] }
 0x207   : > { %v5949_v52 = vcombine.high %v1070_v46, %v1074_v47  ;;  %v5948_v58 = vcombine.low %v1070_v46, %v1074_v47  ;;  %v1086_v61 = vld [vmem:[#allocation15 + $0x580] sm:$0xff]  ;;  %v1127_v46 = vld [vmem:[#allocation15 + $0x6c8] sm:$0xff] }
 0x208   : > { %2467 = vmatpush1.bf16.msra.mxu0 %v5868_v19  ;;  %2549 = vmatpush1.bf16.msra.mxu1 %v5870_v21  ;;  %v7577_v19 = vpack.c.bf16 %v902_v10, %v902_v10  ;;  %v1047_v21 = vld [vmem:[#allocation15 + $0x448] sm:$0xff]  ;;  %v1090_v62 = vld [vmem:[#allocation15 + $0x5a0] sm:$0xff] }
 0x209   : > { %2468 = vmatprep.subr.bf16.mxu0 %v5877_v22  ;;  %2550 = vmatprep.subr.bf16.mxu1 %v5879_v24  ;;  %v1051_v22 = vld [vmem:[#allocation15 + $0x468] sm:$0xff]  ;;  %v5916_v24 = vcombine.low %v1038_v5, %v1042_v6  ;;  %v1094_v6 = vld [vmem:[#allocation15 + $0x5c0] sm:$0xff]  ;;  %v5964_v10 = vcombine.low %v1086_v61, %v1090_v62 }
 0x20a   : > { %v5927_v27 = vcombine.high %v1047_v21, %v1051_v22  ;;  %v5926_v34 = vcombine.low %v1047_v21, %v1051_v22  ;;  %v1098_v7 = vld [vmem:[#allocation15 + $0x5e0] sm:$0xff]  ;;  %v5974_v22 = vcombine.low %v1095_v8, %v1099_v9  ;;  %v1131_v47 = vld [vmem:[#allocation15 + $0x6e8] sm:$0xff] }
 0x20b   : > { %v5972_v21 = vcombine.low %v1094_v6, %v1098_v7 }
 0x20c   : > { %2469 = vmatpush1.bf16.msra.mxu0 %v5876_v30  ;;  %2551 = vmatpush1.bf16.msra.mxu1 %v5878_v31  ;;  %v7579_v30 = vpack.c.bf16 %v905_v18, %v905_v18  ;;  %v1055_v31 = vld [vmem:[#allocation15 + $0x488] sm:$0xff] }
 0x20d   : > { %2470 = vmatprep.subr.bf16.mxu0 %v5885_v32  ;;  %2552 = vmatprep.subr.bf16.mxu1 %v5887_v33  ;;  %v1059_v32 = vld [vmem:[#allocation15 + $0x4a8] sm:$0xff]  ;;  %v5924_v33 = vcombine.low %v1046_v16, %v1050_v17  ;;  %v1106_v16 = vld [vmem:[#allocation15 + $0x620] sm:$0xff] }
 0x20e   : > { %v5935_v36 = vcombine.high %v1055_v31, %v1059_v32  ;;  %v1103_v17 = vld [vmem:[#allocation15 + $0x608] sm:$0xff] }
 0x20f   : > { %v1107_v18 = vld [vmem:[#allocation15 + $0x628] sm:$0xff] }
 0x210   : > { %2471 = vmatpush1.bf16.msra.mxu0 %v5884_v41  ;;  %2553 = vmatpush1.bf16.msra.mxu1 %v5886_v43  ;;  %v1067_v41 = vld [vmem:[#allocation15 + $0x4e8] sm:$0xff]  ;;  %v5934_v43 = vcombine.low %v1055_v31, %v1059_v32  ;;  %v5982_v32 = vcombine.low %v1103_v17, %v1107_v18 }
 0x211   : > { %2472 = vmatprep.subr.bf16.mxu0 %v5893_v44  ;;  %2554 = vmatprep.subr.bf16.mxu1 %v5895_v45  ;;  %v5941_v44 = vcombine.high %v1062_v37, %v1066_v38  ;;  %v5943_v45 = vcombine.high %v1063_v40, %v1067_v41  ;;  %v5942_v51 = vcombine.low %v1063_v40, %v1067_v41  ;;  %v1119_v37 = vld [vmem:[#allocation15 + $0x688] sm:$0xff] }
 0x212   : > { %v1123_v38 = vld [vmem:[#allocation15 + $0x6a8] sm:$0xff]  ;;  %v5990_v41 = vcombine.low %v1111_v28, %v1115_v29 }
 0x213   : > { %v5998_v49 = vcombine.low %v1119_v37, %v1123_v38 }
 0x214   : > { %2473 = vmatpush1.bf16.msra.mxu0 %v5892_v54  ;;  %2555 = vmatpush1.bf16.msra.mxu1 %v5894_v55  ;;  %v1078_v54 = vld [vmem:[#allocation15 + $0x540] sm:$0xff] }
 0x215   : > { %2474 = vmatprep.subr.bf16.mxu0 %v5901_v56  ;;  %2556 = vmatprep.subr.bf16.mxu1 %v5903_v57  ;;  %v1082_v55 = vld [vmem:[#allocation15 + $0x560] sm:$0xff]  ;;  %v1079_v56 = vld [vmem:[#allocation15 + $0x548] sm:$0xff] }
 0x216   : > { %v1083_v57 = vld [vmem:[#allocation15 + $0x568] sm:$0xff]  ;;  %v5957_v59 = vcombine.high %v1078_v54, %v1082_v55 }
 0x217   : > { %v5959_v60 = vcombine.high %v1079_v56, %v1083_v57 }
 0x218   : > { %2475 = vmatpush1.bf16.msra.mxu0 %v5900_v1  ;;  %2557 = vmatpush1.bf16.msra.mxu1 %v5902_v2  ;;  %v1091_v1 = vld [vmem:[#allocation15 + $0x5a8] sm:$0xff]  ;;  %v5956_v2 = vcombine.low %v1078_v54, %v1082_v55 }
 0x219   : > { %2476 = vmatprep.subr.bf16.mxu0 %v5909_v3  ;;  %2558 = vmatprep.subr.bf16.mxu1 %v5911_v4  ;;  %v5958_v3 = vcombine.low %v1079_v56, %v1083_v57  ;;  %v5965_v4 = vcombine.high %v1086_v61, %v1090_v62  ;;  %v5967_v5 = vcombine.high %v1087_v0, %v1091_v1  ;;  %v1135_v54 = vld [vmem:[#allocation15 + $0x708] sm:$0xff]  ;;  %v862_v56 = vsub.s32 2, %v7558_v23  ;;  %v1146_v61 = vld [vmem:[#allocation15 + $0x760] sm:$0xff] }
 0x21a   : > { %v1139_v55 = vld [vmem:[#allocation15 + $0x728] sm:$0xff] }
 0x21b   : > { %v1143_v62 = vld [vmem:[#allocation15 + $0x748] sm:$0xff] }
 0x21c   : > { %2477 = vmatpush1.bf16.msra.mxu0 %v5908_v11  ;;  %2559 = vmatpush1.bf16.msra.mxu1 %v5910_v13  ;;  %v5966_v11 = vcombine.low %v1087_v0, %v1091_v1  ;;  %v5973_v13 = vcombine.high %v1094_v6, %v1098_v7  ;;  %v1147_v0 = vld [vmem:[#allocation15 + $0x768] sm:$0xff]  ;;  %v863_v1 = vrot.slane %v7561_v39, %v862_v56  ;;  %v1150_v7 = vld [vmem:[#allocation15 + $0x780] sm:$0xff] }
 0x21d   : > { %2487 = vmatprep.subr.bf16.mxu0 %v5917_v14  ;;  %2569 = vmatprep.subr.bf16.mxu1 %v5919_v15  ;;  %v5975_v14 = vcombine.high %v1095_v8, %v1099_v9  ;;  %v1102_v15 = vld [vmem:[#allocation15 + $0x600] sm:$0xff]  ;;  %v6023_v6 = vcombine.high %v1143_v62, %v1147_v0  ;;  %v1151_v9 = vld [vmem:[#allocation15 + $0x788] sm:$0xff]  ;;  %v6022_v39 = vcombine.low %v1143_v62, %v1147_v0  ;;  %v944_v0 = vld [vmem:[#allocation15 + $0x110] sm:$0xff] }
 0x21e   : > { %v5980_v31 = vcombine.low %v1102_v15, %v1106_v16  ;;  %v1154_v8 = vld [vmem:[#allocation15 + $0x7a0] sm:$0xff] }
 0x21f   : > { %2479 = vmatmul.mubr.bf16.vlgmr.msra.gmra.mrb[0].mxu0 %v7577_v19  ;;  %2561 = vmatmul.mubr.bf16.vlgmr.msra.gmra.mrb[0].mxu1 %v7577_v19 }
 0x220   : > { %2488 = vmatpush1.bf16.msra.mxu0 %v5916_v24  ;;  %2570 = vmatpush1.bf16.msra.mxu1 %v5918_v25  ;;  %v5981_v24 = vcombine.high %v1102_v15, %v1106_v16  ;;  %v5983_v25 = vcombine.high %v1103_v17, %v1107_v18  ;;  %v6029_v15 = vcombine.high %v1150_v7, %v1154_v8  ;;  %v1158_v17 = vld [vmem:[#allocation15 + $0x7c0] sm:$0xff] }
 0x221   : > { %2489 = vmatprep.subr.bf16.mxu0 %v5925_v26  ;;  %2571 = vmatprep.subr.bf16.mxu1 %v5927_v27  ;;  %v1110_v26 = vld [vmem:[#allocation15 + $0x640] sm:$0xff] }
 0x222   : > { %2519 = vmatprep.mubr.bf16.mxu0 %v7579_v30  ;;  %2601 = vmatprep.mubr.bf16.mxu1 %v7579_v30  ;;  %v1114_v27 = vld [vmem:[#allocation15 + $0x660] sm:$0xff] }
 0x223   : > { %v5988_v40 = vcombine.low %v1110_v26, %v1114_v27  ;;  %v1162_v18 = vld [vmem:[#allocation15 + $0x7e0] sm:$0xff] }
 0x224   : > { %2490 = vmatpush1.bf16.msra.mxu0 %v5924_v33  ;;  %2572 = vmatpush1.bf16.msra.mxu1 %v5926_v34  ;;  %v5989_v33 = vcombine.high %v1110_v26, %v1114_v27  ;;  %v5991_v34 = vcombine.high %v1111_v28, %v1115_v29  ;;  %v6037_v27 = vcombine.high %v1158_v17, %v1162_v18  ;;  %v912_v28 = vld [vmem:[#allocation15 + $0x10] sm:$0xff] }
 0x225   : > { %2491 = vmatprep.subr.bf16.mxu0 %v5933_v35  ;;  %2573 = vmatprep.subr.bf16.mxu1 %v5935_v36  ;;  %v1118_v35 = vld [vmem:[#allocation15 + $0x680] sm:$0xff]  ;;  %v916_v29 = vld [vmem:[#allocation15 + $0x30] sm:$0xff] }
 0x226   : > { %v1122_v36 = vld [vmem:[#allocation15 + $0x6a0] sm:$0xff] }
 0x227   : > { %v5996_v48 = vcombine.low %v1118_v35, %v1122_v36 }
 0x228   : > { %2492 = vmatpush1.bf16.msra.mxu0 %v5932_v42  ;;  %2574 = vmatpush1.bf16.msra.mxu1 %v5934_v43  ;;  %v5997_v42 = vcombine.high %v1118_v35, %v1122_v36  ;;  %v5999_v43 = vcombine.high %v1119_v37, %v1123_v38  ;;  %v5793_v36 = vcombine.high %v912_v28, %v916_v29  ;;  %v920_v38 = vld [vmem:[#allocation15 + $0x50] sm:$0xff] }
 0x229   : > { %2493 = vmatprep.subr.bf16.mxu0 %v5941_v44  ;;  %2575 = vmatprep.subr.bf16.mxu1 %v5943_v45  ;;  %v1126_v44 = vld [vmem:[#allocation15 + $0x6c0] sm:$0xff] }
 0x22a   : > { %v1130_v45 = vld [vmem:[#allocation15 + $0x6e0] sm:$0xff] }
 0x22b   : > { %v6004_v57 = vcombine.low %v1126_v44, %v1130_v45 }
 0x22c   : > { %2494 = vmatpush1.bf16.msra.mxu0 %v5940_v50  ;;  %2576 = vmatpush1.bf16.msra.mxu1 %v5942_v51  ;;  %v6005_v50 = vcombine.high %v1126_v44, %v1130_v45  ;;  %v6007_v51 = vcombine.high %v1127_v46, %v1131_v47  ;;  %v5792_v44 = vcombine.low %v912_v28, %v916_v29  ;;  %v973_v28 = vld [vmem:[#allocation15 + $0x1f8] sm:$0xff] }
 0x22d   : > { %2495 = vmatprep.subr.bf16.mxu0 %v5949_v52  ;;  %2577 = vmatprep.subr.bf16.mxu1 %v5951_v53  ;;  %v1134_v52 = vld [vmem:[#allocation15 + $0x700] sm:$0xff] }
 0x22e   : > { %v1138_v53 = vld [vmem:[#allocation15 + $0x720] sm:$0xff] }
 0x230   : > { %2496 = vmatpush1.bf16.msra.mxu0 %v5948_v58  ;;  %2578 = vmatpush1.bf16.msra.mxu1 %v5950_v12  ;;  %v6006_v58 = vcombine.low %v1127_v46, %v1131_v47  ;;  %v6013_v12 = vcombine.high %v1134_v52, %v1138_v53 }
 0x231   : > { %2497 = vmatprep.subr.bf16.mxu0 %v5957_v59  ;;  %2579 = vmatprep.subr.bf16.mxu1 %v5959_v60  ;;  %v6015_v59 = vcombine.high %v1135_v54, %v1139_v55  ;;  %v1142_v60 = vld [vmem:[#allocation15 + $0x740] sm:$0xff] }
 0x234   : > { %2498 = vmatpush1.bf16.msra.mxu0 %v5956_v2  ;;  %2580 = vmatpush1.bf16.msra.mxu1 %v5958_v3  ;;  %v6012_v2 = vcombine.low %v1134_v52, %v1138_v53  ;;  %v848_v3 = vld [vmem:[#allocation2 + $0x10] sm:$0xff] }
 0x235   : > { %2499 = vmatprep.subr.bf16.mxu0 %v5965_v4  ;;  %2581 = vmatprep.subr.bf16.mxu1 %v5967_v5  ;;  %v6014_v4 = vcombine.low %v1135_v54, %v1139_v55  ;;  %v6021_v5 = vcombine.high %v1142_v60, %v1146_v61 }
 0x238   : > { %2500 = vmatpush1.bf16.msra.mxu0 %v5964_v10  ;;  %2582 = vmatpush1.bf16.msra.mxu1 %v5966_v11  ;;  %v1155_v10 = vld [vmem:[#allocation15 + $0x7a8] sm:$0xff]  ;;  %v874_v11 = vmul.f32 %v863_v1, %v848_v3  ;;  %v948_v1 = vld [vmem:[#allocation15 + $0x130] sm:$0xff]  ;;  %v949_v3 = vld [vmem:[#allocation15 + $0x138] sm:$0xff] }
 0x239   : > { %2501 = vmatprep.subr.bf16.mxu0 %v5973_v13  ;;  %2583 = vmatprep.subr.bf16.mxu1 %v5975_v14  ;;  %v889_v13 = vrot.slane %v7564_v20, %v862_v56  ;;  %v6020_v14 = vcombine.low %v1142_v60, %v1146_v61  ;;  %v6031_v16 = vcombine.high %v1151_v9, %v1155_v10  ;;  %v936_v56 = vld [vmem:[#allocation15 + $0xd0] sm:$0xff] }
 0x23a   : > { %v6030_v26 = vcombine.low %v1151_v9, %v1155_v10  ;;  %v953_v9 = vld [vmem:[#allocation15 + $0x158] sm:$0xff] }
 0x23b   : > { %v957_v10 = vld [vmem:[#allocation15 + $0x178] sm:$0xff] }
 0x23c   : > { %2502 = vmatpush1.bf16.msra.mxu0 %v5972_v21  ;;  %2584 = vmatpush1.bf16.msra.mxu1 %v5974_v22  ;;  %v1159_v21 = vld [vmem:[#allocation15 + $0x7c8] sm:$0xff] }
 0x23d   : > { %2503 = vmatprep.subr.bf16.mxu0 %v5981_v24  ;;  %2585 = vmatprep.subr.bf16.mxu1 %v5983_v25  ;;  %v1163_v22 = vld [vmem:[#allocation15 + $0x7e8] sm:$0xff]  ;;  %v900_v24 = vadd.f32 %v889_v13, %v874_v11  ;;  %v6028_v25 = vcombine.low %v1150_v7, %v1154_v8  ;;  %v952_v7 = vld [vmem:[#allocation15 + $0x150] sm:$0xff]  ;;  %v5824_v11 = vcombine.low %v944_v0, %v948_v1 }
 0x23e   : > { %v6039_v20 = vcombine.high %v1159_v21, %v1163_v22  ;;  %v6038_v35 = vcombine.low %v1159_v21, %v1163_v22  ;;  %v956_v8 = vld [vmem:[#allocation15 + $0x170] sm:$0xff]  ;;  %v5834_v22 = vcombine.low %v953_v9, %v957_v10 }
 0x23f   : > { %v5832_v21 = vcombine.low %v952_v7, %v956_v8 }
 0x240   : > { %2504 = vmatpush1.bf16.msra.mxu0 %v5980_v31  ;;  %2586 = vmatpush1.bf16.msra.mxu1 %v5982_v32  ;;  %v904_v31 = vmax.f32 %v900_v24, 0.0  ;;  %v913_v32 = vld [vmem:[#allocation15 + $0x18] sm:$0xff] }
 0x241   : > { %2505 = vmatprep.subr.bf16.mxu0 %v5989_v33  ;;  %2587 = vmatprep.subr.bf16.mxu1 %v5991_v34  ;;  %v917_v33 = vld [vmem:[#allocation15 + $0x38] sm:$0xff]  ;;  %v6036_v34 = vcombine.low %v1158_v17, %v1162_v18 }
 0x242   : > { %v5795_v37 = vcombine.high %v913_v32, %v917_v33  ;;  %v5794_v45 = vcombine.low %v913_v32, %v917_v33  ;;  %v961_v17 = vld [vmem:[#allocation15 + $0x198] sm:$0xff] }
 0x243   : > { %v965_v18 = vld [vmem:[#allocation15 + $0x1b8] sm:$0xff] }
 0x244   : > { %2506 = vmatpush1.bf16.msra.mxu0 %v5988_v40  ;;  %2588 = vmatpush1.bf16.msra.mxu1 %v5990_v41  ;;  %v924_v40 = vld [vmem:[#allocation15 + $0x70] sm:$0xff]  ;;  %v7588_v41 = vpack.c.bf16 %v904_v31, %v904_v31  ;;  %v5842_v31 = vcombine.low %v961_v17, %v965_v18 }
 0x245   : > { %2507 = vmatprep.subr.bf16.mxu0 %v5997_v42  ;;  %2589 = vmatprep.subr.bf16.mxu1 %v5999_v43  ;;  %v921_v42 = vld [vmem:[#allocation15 + $0x58] sm:$0xff]  ;;  %v5801_v46 = vcombine.high %v920_v38, %v924_v40  ;;  %v5800_v52 = vcombine.low %v920_v38, %v924_v40 }
 0x246   : > { %v925_v43 = vld [vmem:[#allocation15 + $0x78] sm:$0xff] }
 0x247   : > { %v5803_v47 = vcombine.high %v921_v42, %v925_v43  ;;  %v5802_v53 = vcombine.low %v921_v42, %v925_v43 }
 0x248   : > { %2508 = vmatpush1.bf16.msra.mxu0 %v5996_v48  ;;  %2590 = vmatpush1.bf16.msra.mxu1 %v5998_v49  ;;  %v928_v48 = vld [vmem:[#allocation15 + $0x90] sm:$0xff] }
 0x249   : > { %2509 = vmatprep.subr.bf16.mxu0 %v6005_v50  ;;  %2591 = vmatprep.subr.bf16.mxu1 %v6007_v51  ;;  %v932_v49 = vld [vmem:[#allocation15 + $0xb0] sm:$0xff]  ;;  %v929_v50 = vld [vmem:[#allocation15 + $0x98] sm:$0xff] }
 0x24a   : > { %v933_v51 = vld [vmem:[#allocation15 + $0xb8] sm:$0xff]  ;;  %v5809_v54 = vcombine.high %v928_v48, %v932_v49 }
 0x24b   : > { %v5811_v55 = vcombine.high %v929_v50, %v933_v51  ;;  %v5810_v60 = vcombine.low %v929_v50, %v933_v51 }
 0x24c   : > { %2510 = vmatpush1.bf16.msra.mxu0 %v6004_v57  ;;  %2592 = vmatpush1.bf16.msra.mxu1 %v6006_v58  ;;  %v940_v57 = vld [vmem:[#allocation15 + $0xf0] sm:$0xff]  ;;  %v937_v58 = vld [vmem:[#allocation15 + $0xd8] sm:$0xff] }
 0x24d   : > { %2511 = vmatprep.subr.bf16.mxu0 %v6013_v12  ;;  %2593 = vmatprep.subr.bf16.mxu1 %v6015_v59  ;;  %v941_v12 = vld [vmem:[#allocation15 + $0xf8] sm:$0xff]  ;;  %v5808_v59 = vcombine.low %v928_v48, %v932_v49  ;;  %v5817_v61 = vcombine.high %v936_v56, %v940_v57 }
 0x24e   : > { %v5819_v62 = vcombine.high %v937_v58, %v941_v12 }
 0x250   : > { %2512 = vmatpush1.bf16.msra.mxu0 %v6012_v2  ;;  %2594 = vmatpush1.bf16.msra.mxu1 %v6014_v4  ;;  %v945_v2 = vld [vmem:[#allocation15 + $0x118] sm:$0xff]  ;;  %v5816_v4 = vcombine.low %v936_v56, %v940_v57 }
 0x251   : > { %2513 = vmatprep.subr.bf16.mxu0 %v6021_v5  ;;  %2595 = vmatprep.subr.bf16.mxu1 %v6023_v6  ;;  %v5818_v5 = vcombine.low %v937_v58, %v941_v12  ;;  %v5825_v6 = vcombine.high %v944_v0, %v948_v1  ;;  %v5826_v13 = vcombine.low %v945_v2, %v949_v3 }
 0x254   : > { %2514 = vmatpush1.bf16.msra.mxu0 %v6020_v14  ;;  %2596 = vmatpush1.bf16.msra.mxu1 %v6022_v39  ;;  %v5833_v14 = vcombine.high %v952_v7, %v956_v8  ;;  %v5835_v39 = vcombine.high %v953_v9, %v957_v10 }
 0x255   : > { %2515 = vmatprep.subr.bf16.mxu0 %v6029_v15  ;;  %2597 = vmatprep.subr.bf16.mxu1 %v6031_v16  ;;  %v960_v15 = vld [vmem:[#allocation15 + $0x190] sm:$0xff] }
 0x256   : > { %v964_v16 = vld [vmem:[#allocation15 + $0x1b0] sm:$0xff] }
 0x257   : > { %v5841_v24 = vcombine.high %v960_v15, %v964_v16  ;;  %v5840_v29 = vcombine.low %v960_v15, %v964_v16 }
 0x258   : > { %2516 = vmatpush1.bf16.msra.mxu0 %v6028_v25  ;;  %2598 = vmatpush1.bf16.msra.mxu1 %v6030_v26  ;;  %v5843_v25 = vcombine.high %v961_v17, %v965_v18  ;;  %v968_v26 = vld [vmem:[#allocation15 + $0x1d0] sm:$0xff] }
 0x259   : > { %2517 = vmatprep.subr.bf16.mxu0 %v6037_v27  ;;  %2599 = vmatprep.subr.bf16.mxu1 %v6039_v20  ;;  %v972_v27 = vld [vmem:[#allocation15 + $0x1f0] sm:$0xff]  ;;  %v969_v20 = vld [vmem:[#allocation15 + $0x1d8] sm:$0xff] }
 0x25a   : > { %v5849_v32 = vcombine.high %v968_v26, %v972_v27  ;;  %v5851_v33 = vcombine.high %v969_v20, %v973_v28  ;;  %v5848_v38 = vcombine.low %v968_v26, %v972_v27  ;;  %v5850_v40 = vcombine.low %v969_v20, %v973_v28 }
 0x25c   : > { %2518 = vmatpush1.bf16.msra.mxu0 %v6036_v34  ;;  %2600 = vmatpush1.bf16.msra.mxu1 %v6038_v35  ;;  %v976_v34 = vld [vmem:[#allocation15 + $0x210] sm:$0xff] }
 0x25d   : > { %2610 = vmatprep.subr.bf16.mxu0 %v5793_v36  ;;  %2692 = vmatprep.subr.bf16.mxu1 %v5795_v37  ;;  %v980_v35 = vld [vmem:[#allocation15 + $0x230] sm:$0xff]  ;;  %v977_v36 = vld [vmem:[#allocation15 + $0x218] sm:$0xff] }
 0x25e   : > { %v981_v37 = vld [vmem:[#allocation15 + $0x238] sm:$0xff]  ;;  %v5857_v42 = vcombine.high %v976_v34, %v980_v35  ;;  %v5856_v48 = vcombine.low %v976_v34, %v980_v35 }
 0x25f   : > { %2520 = vmatmul.mubr.bf16.vlgmr.msra.gmra.mrb[0].mxu0 %v7588_v41  ;;  %2602 = vmatmul.mubr.bf16.vlgmr.msra.gmra.mrb[0].mxu1 %v7588_v41  ;;  %v5859_v43 = vcombine.high %v977_v36, %v981_v37  ;;  %v5858_v49 = vcombine.low %v977_v36, %v981_v37 }
 0x260   : > { %2611 = vmatpush1.bf16.msra.mxu0 %v5792_v44  ;;  %2693 = vmatpush1.bf16.msra.mxu1 %v5794_v45  ;;  %v984_v44 = vld [vmem:[#allocation15 + $0x250] sm:$0xff] }
 0x261   : > { %2612 = vmatprep.subr.bf16.mxu0 %v5801_v46  ;;  %2694 = vmatprep.subr.bf16.mxu1 %v5803_v47  ;;  %v988_v45 = vld [vmem:[#allocation15 + $0x270] sm:$0xff]  ;;  %v985_v46 = vld [vmem:[#allocation15 + $0x258] sm:$0xff] }
 0x262   : > { %2642 = vmatprep.mubr.bf16.mxu0 %v7567_v63  ;;  %2724 = vmatprep.mubr.bf16.mxu1 %v7567_v63  ;;  %v5827_v63 = vcombine.high %v945_v2, %v949_v3  ;;  %v989_v47 = vld [vmem:[#allocation15 + $0x278] sm:$0xff]  ;;  %v5865_v50 = vcombine.high %v984_v44, %v988_v45  ;;  %v5864_v56 = vcombine.low %v984_v44, %v988_v45 }
 0x263   : > { %v5867_v51 = vcombine.high %v985_v46, %v989_v47  ;;  %v5866_v57 = vcombine.low %v985_v46, %v989_v47 }
 0x264   : > { %2613 = vmatpush1.bf16.msra.mxu0 %v5800_v52  ;;  %2695 = vmatpush1.bf16.msra.mxu1 %v5802_v53  ;;  %v992_v52 = vld [vmem:[#allocation15 + $0x290] sm:$0xff] }
 0x265   : > { %2614 = vmatprep.subr.bf16.mxu0 %v5809_v54  ;;  %2696 = vmatprep.subr.bf16.mxu1 %v5811_v55  ;;  %v996_v53 = vld [vmem:[#allocation15 + $0x2b0] sm:$0xff]  ;;  %v993_v54 = vld [vmem:[#allocation15 + $0x298] sm:$0xff] }
 0x266   : > { %v997_v55 = vld [vmem:[#allocation15 + $0x2b8] sm:$0xff]  ;;  %v5873_v58 = vcombine.high %v992_v52, %v996_v53  ;;  %v5872_v0 = vcombine.low %v992_v52, %v996_v53 }
 0x267   : > { %v5875_v12 = vcombine.high %v993_v54, %v997_v55  ;;  %v5874_v1 = vcombine.low %v993_v54, %v997_v55 }
 0x268   : > { %2615 = vmatpush1.bf16.msra.mxu0 %v5808_v59  ;;  %2697 = vmatpush1.bf16.msra.mxu1 %v5810_v60  ;;  %v1000_v59 = vld [vmem:[#allocation15 + $0x2d0] sm:$0xff] }
 0x269   : > { %2616 = vmatprep.subr.bf16.mxu0 %v5817_v61  ;;  %2698 = vmatprep.subr.bf16.mxu1 %v5819_v62  ;;  %v1004_v60 = vld [vmem:[#allocation15 + $0x2f0] sm:$0xff]  ;;  %v1001_v61 = vld [vmem:[#allocation15 + $0x2d8] sm:$0xff] }
 0x26a   : > { %v1005_v62 = vld [vmem:[#allocation15 + $0x2f8] sm:$0xff]  ;;  %v5881_v2 = vcombine.high %v1000_v59, %v1004_v60  ;;  %v5880_v7 = vcombine.low %v1000_v59, %v1004_v60 }
 0x26b   : > { %v5883_v3 = vcombine.high %v1001_v61, %v1005_v62  ;;  %v5882_v8 = vcombine.low %v1001_v61, %v1005_v62 }
 0x26c   : > { %2617 = vmatpush1.bf16.msra.mxu0 %v5816_v4  ;;  %2699 = vmatpush1.bf16.msra.mxu1 %v5818_v5  ;;  %v1008_v4 = vld [vmem:[#allocation15 + $0x310] sm:$0xff] }
 0x26d   : > { %2618 = vmatprep.subr.bf16.mxu0 %v5825_v6  ;;  %2700 = vmatprep.subr.bf16.mxu1 %v5827_v63  ;;  %v1012_v5 = vld [vmem:[#allocation15 + $0x330] sm:$0xff]  ;;  %v1009_v6 = vld [vmem:[#allocation15 + $0x318] sm:$0xff] }
 0x26e   : > { %v1013_v63 = vld [vmem:[#allocation15 + $0x338] sm:$0xff]  ;;  %v5889_v9 = vcombine.high %v1008_v4, %v1012_v5  ;;  %v5888_v15 = vcombine.low %v1008_v4, %v1012_v5 }
 0x26f   : > { %v5891_v10 = vcombine.high %v1009_v6, %v1013_v63  ;;  %v5890_v16 = vcombine.low %v1009_v6, %v1013_v63  ;;  %v1072_v63 = vld [vmem:[#allocation15 + $0x510] sm:$0xff] }
 0x270   : > { %2619 = vmatpush1.bf16.msra.mxu0 %v5824_v11  ;;  %2701 = vmatpush1.bf16.msra.mxu1 %v5826_v13  ;;  %v1016_v11 = vld [vmem:[#allocation15 + $0x350] sm:$0xff] }
 0x271   : > { %2620 = vmatprep.subr.bf16.mxu0 %v5833_v14  ;;  %2702 = vmatprep.subr.bf16.mxu1 %v5835_v39  ;;  %v1020_v13 = vld [vmem:[#allocation15 + $0x370] sm:$0xff]  ;;  %v1017_v14 = vld [vmem:[#allocation15 + $0x358] sm:$0xff] }
 0x272   : > { %v1021_v39 = vld [vmem:[#allocation15 + $0x378] sm:$0xff]  ;;  %v5897_v17 = vcombine.high %v1016_v11, %v1020_v13  ;;  %v5896_v26 = vcombine.low %v1016_v11, %v1020_v13 }
 0x273   : > { %v5899_v18 = vcombine.high %v1017_v14, %v1021_v39  ;;  %v5898_v27 = vcombine.low %v1017_v14, %v1021_v39  ;;  %v1080_v14 = vld [vmem:[#allocation15 + $0x550] sm:$0xff] }
 0x274   : > { %2621 = vmatpush1.bf16.msra.mxu0 %v5832_v21  ;;  %2703 = vmatpush1.bf16.msra.mxu1 %v5834_v22  ;;  %v1024_v21 = vld [vmem:[#allocation15 + $0x390] sm:$0xff] }
 0x275   : > { %2622 = vmatprep.subr.bf16.mxu0 %v5841_v24  ;;  %2704 = vmatprep.subr.bf16.mxu1 %v5843_v25  ;;  %v1028_v22 = vld [vmem:[#allocation15 + $0x3b0] sm:$0xff]  ;;  %v1025_v24 = vld [vmem:[#allocation15 + $0x398] sm:$0xff] }
 0x276   : > { %v1029_v25 = vld [vmem:[#allocation15 + $0x3b8] sm:$0xff]  ;;  %v5905_v20 = vcombine.high %v1024_v21, %v1028_v22  ;;  %v5904_v34 = vcombine.low %v1024_v21, %v1028_v22  ;;  %v1084_v39 = vld [vmem:[#allocation15 + $0x570] sm:$0xff] }
 0x277   : > { %v5907_v28 = vcombine.high %v1025_v24, %v1029_v25  ;;  %v5906_v35 = vcombine.low %v1025_v24, %v1029_v25  ;;  %v5961_v21 = vcombine.high %v1080_v14, %v1084_v39  ;;  %v1088_v24 = vld [vmem:[#allocation15 + $0x590] sm:$0xff] }
 0x278   : > { %2623 = vmatpush1.bf16.msra.mxu0 %v5840_v29  ;;  %2705 = vmatpush1.bf16.msra.mxu1 %v5842_v31  ;;  %v1032_v29 = vld [vmem:[#allocation15 + $0x3d0] sm:$0xff] }
 0x279   : > { %2624 = vmatprep.subr.bf16.mxu0 %v5849_v32  ;;  %2706 = vmatprep.subr.bf16.mxu1 %v5851_v33  ;;  %v1036_v31 = vld [vmem:[#allocation15 + $0x3f0] sm:$0xff]  ;;  %v1033_v32 = vld [vmem:[#allocation15 + $0x3d8] sm:$0xff] }
 0x27a   : > { %v1037_v33 = vld [vmem:[#allocation15 + $0x3f8] sm:$0xff]  ;;  %v5913_v36 = vcombine.high %v1032_v29, %v1036_v31  ;;  %v5912_v44 = vcombine.low %v1032_v29, %v1036_v31  ;;  %v1092_v25 = vld [vmem:[#allocation15 + $0x5b0] sm:$0xff] }
 0x27b   : > { %v5915_v37 = vcombine.high %v1033_v32, %v1037_v33  ;;  %v5914_v45 = vcombine.low %v1033_v32, %v1037_v33  ;;  %v5969_v29 = vcombine.high %v1088_v24, %v1092_v25  ;;  %v1096_v32 = vld [vmem:[#allocation15 + $0x5d0] sm:$0xff] }
 0x27c   : > { %2625 = vmatpush1.bf16.msra.mxu0 %v5848_v38  ;;  %2707 = vmatpush1.bf16.msra.mxu1 %v5850_v40  ;;  %v1040_v38 = vld [vmem:[#allocation15 + $0x410] sm:$0xff] }
 0x27d   : > { %2626 = vmatprep.subr.bf16.mxu0 %v5857_v42  ;;  %2708 = vmatprep.subr.bf16.mxu1 %v5859_v43  ;;  %v1044_v40 = vld [vmem:[#allocation15 + $0x430] sm:$0xff]  ;;  %v1041_v42 = vld [vmem:[#allocation15 + $0x418] sm:$0xff] }
 0x27e   : > { %v1045_v43 = vld [vmem:[#allocation15 + $0x438] sm:$0xff]  ;;  %v5921_v46 = vcombine.high %v1040_v38, %v1044_v40  ;;  %v5920_v52 = vcombine.low %v1040_v38, %v1044_v40  ;;  %v1100_v33 = vld [vmem:[#allocation15 + $0x5f0] sm:$0xff] }
 0x27f   : > { %v5923_v47 = vcombine.high %v1041_v42, %v1045_v43  ;;  %v5922_v53 = vcombine.low %v1041_v42, %v1045_v43  ;;  %v5977_v38 = vcombine.high %v1096_v32, %v1100_v33  ;;  %v1104_v42 = vld [vmem:[#allocation15 + $0x610] sm:$0xff] }
 0x280   : > { %2627 = vmatpush1.bf16.msra.mxu0 %v5856_v48  ;;  %2709 = vmatpush1.bf16.msra.mxu1 %v5858_v49  ;;  %v1048_v48 = vld [vmem:[#allocation15 + $0x450] sm:$0xff] }
 0x281   : > { %2628 = vmatprep.subr.bf16.mxu0 %v5865_v50  ;;  %2710 = vmatprep.subr.bf16.mxu1 %v5867_v51  ;;  %v1052_v49 = vld [vmem:[#allocation15 + $0x470] sm:$0xff]  ;;  %v1049_v50 = vld [vmem:[#allocation15 + $0x458] sm:$0xff] }
 0x282   : > { %v1053_v51 = vld [vmem:[#allocation15 + $0x478] sm:$0xff]  ;;  %v5929_v54 = vcombine.high %v1048_v48, %v1052_v49  ;;  %v5928_v59 = vcombine.low %v1048_v48, %v1052_v49  ;;  %v1108_v43 = vld [vmem:[#allocation15 + $0x630] sm:$0xff] }
 0x283   : > { %v5931_v55 = vcombine.high %v1049_v50, %v1053_v51  ;;  %v5930_v60 = vcombine.low %v1049_v50, %v1053_v51  ;;  %v5985_v48 = vcombine.high %v1104_v42, %v1108_v43  ;;  %v1112_v50 = vld [vmem:[#allocation15 + $0x650] sm:$0xff] }
 0x284   : > { %2629 = vmatpush1.bf16.msra.mxu0 %v5864_v56  ;;  %2711 = vmatpush1.bf16.msra.mxu1 %v5866_v57  ;;  %v1056_v56 = vld [vmem:[#allocation15 + $0x490] sm:$0xff] }
 0x285   : > { %2630 = vmatprep.subr.bf16.mxu0 %v5873_v58  ;;  %2712 = vmatprep.subr.bf16.mxu1 %v5875_v12  ;;  %v1060_v57 = vld [vmem:[#allocation15 + $0x4b0] sm:$0xff]  ;;  %v1057_v58 = vld [vmem:[#allocation15 + $0x498] sm:$0xff] }
 0x286   : > { %v1061_v12 = vld [vmem:[#allocation15 + $0x4b8] sm:$0xff]  ;;  %v5937_v61 = vcombine.high %v1056_v56, %v1060_v57  ;;  %v5936_v4 = vcombine.low %v1056_v56, %v1060_v57  ;;  %v1116_v51 = vld [vmem:[#allocation15 + $0x670] sm:$0xff] }
 0x287   : > { %v5939_v62 = vcombine.high %v1057_v58, %v1061_v12  ;;  %v5993_v56 = vcombine.high %v1112_v50, %v1116_v51 }
 0x288   : > { %2631 = vmatpush1.bf16.msra.mxu0 %v5872_v0  ;;  %2713 = vmatpush1.bf16.msra.mxu1 %v5874_v1  ;;  %v1064_v0 = vld [vmem:[#allocation15 + $0x4d0] sm:$0xff] }
 0x289   : > { %2632 = vmatprep.subr.bf16.mxu0 %v5881_v2  ;;  %2714 = vmatprep.subr.bf16.mxu1 %v5883_v3  ;;  %v1068_v1 = vld [vmem:[#allocation15 + $0x4f0] sm:$0xff]  ;;  %v1065_v2 = vld [vmem:[#allocation15 + $0x4d8] sm:$0xff] }
 0x28a   : > { %v1069_v3 = vld [vmem:[#allocation15 + $0x4f8] sm:$0xff]  ;;  %v5945_v5 = vcombine.high %v1064_v0, %v1068_v1 }
 0x28b   : > { %v5947_v6 = vcombine.high %v1065_v2, %v1069_v3  ;;  %v5946_v11 = vcombine.low %v1065_v2, %v1069_v3  ;;  %v1128_v2 = vld [vmem:[#allocation15 + $0x6d0] sm:$0xff] }
 0x28c   : > { %2633 = vmatpush1.bf16.msra.mxu0 %v5880_v7  ;;  %2715 = vmatpush1.bf16.msra.mxu1 %v5882_v8  ;;  %v1076_v7 = vld [vmem:[#allocation15 + $0x530] sm:$0xff]  ;;  %v1073_v8 = vld [vmem:[#allocation15 + $0x518] sm:$0xff] }
 0x28d   : > { %2634 = vmatprep.subr.bf16.mxu0 %v5889_v9  ;;  %2716 = vmatprep.subr.bf16.mxu1 %v5891_v10  ;;  %v1077_v9 = vld [vmem:[#allocation15 + $0x538] sm:$0xff]  ;;  %v5944_v10 = vcombine.low %v1064_v0, %v1068_v1  ;;  %v5953_v13 = vcombine.high %v1072_v63, %v1076_v7  ;;  %v1132_v3 = vld [vmem:[#allocation15 + $0x6f0] sm:$0xff] }
 0x290   : > { %2635 = vmatpush1.bf16.msra.mxu0 %v5888_v15  ;;  %2717 = vmatpush1.bf16.msra.mxu1 %v5890_v16  ;;  %v1081_v15 = vld [vmem:[#allocation15 + $0x558] sm:$0xff] }
 0x291   : > { %2636 = vmatprep.subr.bf16.mxu0 %v5897_v17  ;;  %2718 = vmatprep.subr.bf16.mxu1 %v5899_v18  ;;  %v1085_v16 = vld [vmem:[#allocation15 + $0x578] sm:$0xff]  ;;  %v5952_v17 = vcombine.low %v1072_v63, %v1076_v7  ;;  %v5954_v18 = vcombine.low %v1073_v8, %v1077_v9  ;;  %v6009_v63 = vcombine.high %v1128_v2, %v1132_v3 }
 0x292   : > { %v5963_v22 = vcombine.high %v1081_v15, %v1085_v16 }
 0x294   : > { %2637 = vmatpush1.bf16.msra.mxu0 %v5896_v26  ;;  %2719 = vmatpush1.bf16.msra.mxu1 %v5898_v27  ;;  %v1089_v26 = vld [vmem:[#allocation15 + $0x598] sm:$0xff] }
 0x295   : > { %2638 = vmatprep.subr.bf16.mxu0 %v5905_v20  ;;  %2720 = vmatprep.subr.bf16.mxu1 %v5907_v28  ;;  %v1093_v27 = vld [vmem:[#allocation15 + $0x5b8] sm:$0xff]  ;;  %v5960_v20 = vcombine.low %v1080_v14, %v1084_v39  ;;  %v5962_v28 = vcombine.low %v1081_v15, %v1085_v16  ;;  %v1144_v15 = vld [vmem:[#allocation15 + $0x750] sm:$0xff] }
 0x296   : > { %v5971_v31 = vcombine.high %v1089_v26, %v1093_v27  ;;  %v1148_v16 = vld [vmem:[#allocation15 + $0x770] sm:$0xff] }
 0x298   : > { %2639 = vmatpush1.bf16.msra.mxu0 %v5904_v34  ;;  %2721 = vmatpush1.bf16.msra.mxu1 %v5906_v35  ;;  %v1097_v34 = vld [vmem:[#allocation15 + $0x5d8] sm:$0xff] }
 0x299   : > { %2640 = vmatprep.subr.bf16.mxu0 %v5913_v36  ;;  %2722 = vmatprep.subr.bf16.mxu1 %v5915_v37  ;;  %v1101_v35 = vld [vmem:[#allocation15 + $0x5f8] sm:$0xff]  ;;  %v5968_v36 = vcombine.low %v1088_v24, %v1092_v25  ;;  %v5970_v37 = vcombine.low %v1089_v26, %v1093_v27  ;;  %v6025_v24 = vcombine.high %v1144_v15, %v1148_v16  ;;  %v1152_v26 = vld [vmem:[#allocation15 + $0x790] sm:$0xff] }
 0x29a   : > { %v5979_v40 = vcombine.high %v1097_v34, %v1101_v35  ;;  %v1156_v27 = vld [vmem:[#allocation15 + $0x7b0] sm:$0xff] }
 0x29c   : > { %2641 = vmatpush1.bf16.msra.mxu0 %v5912_v44  ;;  %2723 = vmatpush1.bf16.msra.mxu1 %v5914_v45  ;;  %v1105_v44 = vld [vmem:[#allocation15 + $0x618] sm:$0xff] }
 0x29d   : > { %2651 = vmatprep.subr.bf16.mxu0 %v5921_v46  ;;  %2733 = vmatprep.subr.bf16.mxu1 %v5923_v47  ;;  %v1109_v45 = vld [vmem:[#allocation15 + $0x638] sm:$0xff]  ;;  %v5976_v46 = vcombine.low %v1096_v32, %v1100_v33  ;;  %v5978_v47 = vcombine.low %v1097_v34, %v1101_v35  ;;  %v6033_v32 = vcombine.high %v1152_v26, %v1156_v27  ;;  %v1160_v34 = vld [vmem:[#allocation15 + $0x7d0] sm:$0xff] }
 0x29e   : > { %v5987_v49 = vcombine.high %v1105_v44, %v1109_v45  ;;  %v1164_v35 = vld [vmem:[#allocation15 + $0x7f0] sm:$0xff] }
 0x29f   : > { %2643 = vmatmul.mubr.bf16.vlgmr.msra.gmra.mrb[4].mxu0 %v7577_v19  ;;  %2725 = vmatmul.mubr.bf16.vlgmr.msra.gmra.mrb[4].mxu1 %v7577_v19  ;;  %v5938_v19 = vcombine.low %v1057_v58, %v1061_v12  ;;  %v1120_v58 = vld [vmem:[#allocation15 + $0x690] sm:$0xff] }
 0x2a0   : > { %2652 = vmatpush1.bf16.msra.mxu0 %v5920_v52  ;;  %2734 = vmatpush1.bf16.msra.mxu1 %v5922_v53  ;;  %v1113_v52 = vld [vmem:[#allocation15 + $0x658] sm:$0xff]  ;;  %v1124_v12 = vld [vmem:[#allocation15 + $0x6b0] sm:$0xff] }
 0x2a1   : > { %2653 = vmatprep.subr.bf16.mxu0 %v5929_v54  ;;  %2735 = vmatprep.subr.bf16.mxu1 %v5931_v55  ;;  %v1117_v53 = vld [vmem:[#allocation15 + $0x678] sm:$0xff]  ;;  %v5984_v54 = vcombine.low %v1104_v42, %v1108_v43  ;;  %v5986_v55 = vcombine.low %v1105_v44, %v1109_v45  ;;  %v6001_v0 = vcombine.high %v1120_v58, %v1124_v12 }
 0x2a2   : > { %2683 = vmatprep.mubr.bf16.mxu0 %v7579_v30  ;;  %2765 = vmatprep.mubr.bf16.mxu1 %v7579_v30  ;;  %v5955_v30 = vcombine.high %v1073_v8, %v1077_v9  ;;  %v5995_v57 = vcombine.high %v1113_v52, %v1117_v53  ;;  %v1136_v8 = vld [vmem:[#allocation15 + $0x710] sm:$0xff]  ;;  %v6041_v42 = vcombine.high %v1160_v34, %v1164_v35 }
 0x2a3   : > { %v1140_v9 = vld [vmem:[#allocation15 + $0x730] sm:$0xff]  ;;  %v6040_v44 = vcombine.low %v1160_v34, %v1164_v35 }
 0x2a4   : > { %2654 = vmatpush1.bf16.msra.mxu0 %v5928_v59  ;;  %2736 = vmatpush1.bf16.msra.mxu1 %v5930_v60  ;;  %v1121_v59 = vld [vmem:[#allocation15 + $0x698] sm:$0xff]  ;;  %v6017_v14 = vcombine.high %v1136_v8, %v1140_v9 }
 0x2a5   : > { %2655 = vmatprep.subr.bf16.mxu0 %v5937_v61  ;;  %2737 = vmatprep.subr.bf16.mxu1 %v5939_v62  ;;  %v1125_v60 = vld [vmem:[#allocation15 + $0x6b8] sm:$0xff]  ;;  %v5992_v61 = vcombine.low %v1112_v50, %v1116_v51  ;;  %v5994_v62 = vcombine.low %v1113_v52, %v1117_v53 }
 0x2a6   : > { %v6003_v1 = vcombine.high %v1121_v59, %v1125_v60 }
 0x2a8   : > { %2656 = vmatpush1.bf16.msra.mxu0 %v5936_v4  ;;  %2738 = vmatpush1.bf16.msra.mxu1 %v5938_v19  ;;  %v1129_v4 = vld [vmem:[#allocation15 + $0x6d8] sm:$0xff] }
 0x2a9   : > { %2657 = vmatprep.subr.bf16.mxu0 %v5945_v5  ;;  %2739 = vmatprep.subr.bf16.mxu1 %v5947_v6  ;;  %v1133_v19 = vld [vmem:[#allocation15 + $0x6f8] sm:$0xff]  ;;  %v6000_v5 = vcombine.low %v1120_v58, %v1124_v12  ;;  %v6002_v6 = vcombine.low %v1121_v59, %v1125_v60 }
 0x2aa   : > { %v6011_v7 = vcombine.high %v1129_v4, %v1133_v19 }
 0x2ac   : > { %2658 = vmatpush1.bf16.msra.mxu0 %v5944_v10  ;;  %2740 = vmatpush1.bf16.msra.mxu1 %v5946_v11  ;;  %v1137_v10 = vld [vmem:[#allocation15 + $0x718] sm:$0xff] }
 0x2ad   : > { %2659 = vmatprep.subr.bf16.mxu0 %v5953_v13  ;;  %2741 = vmatprep.subr.bf16.mxu1 %v5955_v30  ;;  %v1141_v11 = vld [vmem:[#allocation15 + $0x738] sm:$0xff]  ;;  %v6008_v13 = vcombine.low %v1128_v2, %v1132_v3  ;;  %v6010_v30 = vcombine.low %v1129_v4, %v1133_v19 }
 0x2ae   : > { %v6019_v39 = vcombine.high %v1137_v10, %v1141_v11 }
 0x2b0   : > { %2660 = vmatpush1.bf16.msra.mxu0 %v5952_v17  ;;  %2742 = vmatpush1.bf16.msra.mxu1 %v5954_v18  ;;  %v1145_v17 = vld [vmem:[#allocation15 + $0x758] sm:$0xff] }
 0x2b1   : > { %2661 = vmatprep.subr.bf16.mxu0 %v5961_v21  ;;  %2743 = vmatprep.subr.bf16.mxu1 %v5963_v22  ;;  %v1149_v18 = vld [vmem:[#allocation15 + $0x778] sm:$0xff]  ;;  %v6016_v21 = vcombine.low %v1136_v8, %v1140_v9  ;;  %v6018_v22 = vcombine.low %v1137_v10, %v1141_v11 }
 0x2b2   : > { %v6027_v25 = vcombine.high %v1145_v17, %v1149_v18 }
 0x2b4   : > { %2662 = vmatpush1.bf16.msra.mxu0 %v5960_v20  ;;  %2744 = vmatpush1.bf16.msra.mxu1 %v5962_v28  ;;  %v1153_v20 = vld [vmem:[#allocation15 + $0x798] sm:$0xff] }
 0x2b5   : > { %2663 = vmatprep.subr.bf16.mxu0 %v5969_v29  ;;  %2745 = vmatprep.subr.bf16.mxu1 %v5971_v31  ;;  %v1157_v28 = vld [vmem:[#allocation15 + $0x7b8] sm:$0xff]  ;;  %v6024_v29 = vcombine.low %v1144_v15, %v1148_v16  ;;  %v6026_v31 = vcombine.low %v1145_v17, %v1149_v18 }
 0x2b6   : > { %v6035_v33 = vcombine.high %v1153_v20, %v1157_v28 }
 0x2b8   : > { %2664 = vmatpush1.bf16.msra.mxu0 %v5968_v36  ;;  %2746 = vmatpush1.bf16.msra.mxu1 %v5970_v37  ;;  %v1161_v36 = vld [vmem:[#allocation15 + $0x7d8] sm:$0xff] }
 0x2b9   : > { %2665 = vmatprep.subr.bf16.mxu0 %v5977_v38  ;;  %2747 = vmatprep.subr.bf16.mxu1 %v5979_v40  ;;  %v1165_v37 = vld [vmem:[#allocation15 + $0x7f8] sm:$0xff]  ;;  %v6032_v38 = vcombine.low %v1152_v26, %v1156_v27  ;;  %v6034_v40 = vcombine.low %v1153_v20, %v1157_v28 }
 0x2ba   : > { %v6043_v43 = vcombine.high %v1161_v36, %v1165_v37  ;;  %v6042_v45 = vcombine.low %v1161_v36, %v1165_v37 }
 0x2bc   : > { %2666 = vmatpush1.bf16.msra.mxu0 %v5976_v46  ;;  %2748 = vmatpush1.bf16.msra.mxu1 %v5978_v47  ;;  %v7263_v46 = vmov 1966171168  }
 0x2bd   : > { %2667 = vmatprep.subr.bf16.mxu0 %v5985_v48  ;;  %2749 = vmatprep.subr.bf16.mxu1 %v5987_v49  ;;  %v2850_v47 = vunpack.c.l.s4 %v7263_v46 }
 0x2bf   : > { %v2851_v48 = vunpack.c.0.s8 %v2850_v47 }
 0x2c0   : > { %2668 = vmatpush1.bf16.msra.mxu0 %v5984_v54  ;;  %2750 = vmatpush1.bf16.msra.mxu1 %v5986_v55 }
 0x2c1   : > { %2669 = vmatprep.subr.bf16.mxu0 %v5993_v56  ;;  %2751 = vmatprep.subr.bf16.mxu1 %v5995_v57  ;;  %v7601_v50 = vsub.s32 %v2851_v48, %v7558_v23 }
 0x2c4   : > { %2670 = vmatpush1.bf16.msra.mxu0 %v5992_v61  ;;  %2752 = vmatpush1.bf16.msra.mxu1 %v5994_v62 }
 0x2c5   : > { %2671 = vmatprep.subr.bf16.mxu0 %v6001_v0  ;;  %2753 = vmatprep.subr.bf16.mxu1 %v6003_v1 }
 0x2c8   : > { %2672 = vmatpush1.bf16.msra.mxu0 %v6000_v5  ;;  %2754 = vmatpush1.bf16.msra.mxu1 %v6002_v6 }
 0x2c9   : > { %2673 = vmatprep.subr.bf16.mxu0 %v6009_v63  ;;  %2755 = vmatprep.subr.bf16.mxu1 %v6011_v7 }
 0x2cc   : > { %2674 = vmatpush1.bf16.msra.mxu0 %v6008_v13  ;;  %2756 = vmatpush1.bf16.msra.mxu1 %v6010_v30 }
 0x2cd   : > { %2675 = vmatprep.subr.bf16.mxu0 %v6017_v14  ;;  %2757 = vmatprep.subr.bf16.mxu1 %v6019_v39 }
 0x2d0   : > { %2676 = vmatpush1.bf16.msra.mxu0 %v6016_v21  ;;  %2758 = vmatpush1.bf16.msra.mxu1 %v6018_v22 }
 0x2d1   : > { %2677 = vmatprep.subr.bf16.mxu0 %v6025_v24  ;;  %2759 = vmatprep.subr.bf16.mxu1 %v6027_v25 }
 0x2d4   : > { %2678 = vmatpush1.bf16.msra.mxu0 %v6024_v29  ;;  %2760 = vmatpush1.bf16.msra.mxu1 %v6026_v31 }
 0x2d5   : > { %2679 = vmatprep.subr.bf16.mxu0 %v6033_v32  ;;  %2761 = vmatprep.subr.bf16.mxu1 %v6035_v33 }
 0x2d8   : > { %2680 = vmatpush1.bf16.msra.mxu0 %v6032_v38  ;;  %2762 = vmatpush1.bf16.msra.mxu1 %v6034_v40 }
 0x2d9   : > { %2681 = vmatprep.subr.bf16.mxu0 %v6041_v42  ;;  %2763 = vmatprep.subr.bf16.mxu1 %v6043_v43 }
 0x2dc   : > { %2682 = vmatpush1.bf16.msra.mxu0 %v6040_v44  ;;  %2764 = vmatpush1.bf16.msra.mxu1 %v6042_v45 }
 0x2df   : > { %2684 = vmatmul.mubr.bf16.vlgmr.msra.gmra.mrb[4].mxu0 %v7588_v41  ;;  %2766 = vmatmul.mubr.bf16.vlgmr.msra.gmra.mrb[4].mxu1 %v7588_v41 }
 0x332   : > { %v2521_v49 = vpop.f32.mrb[0].mxu0  ;;  %v2603_v53 = vpop.f32.mrb[0].mxu1 }
 0x333   : > { %2774 = vst [vmem:[#allocation2] sm:$0xff] %v2521_v49  ;;  %v2789_v51 = vrot.slane %v2521_v49, 4  ;;  %v2898_v52 = vmul.f32 %v2521_v49, %v2521_v49  ;;  %v2523_v54 = vpop.f32.mrb[1].mxu0  ;;  %2776 = vst [vmem:[#allocation2 + $0x10] sm:$0xff] %v2603_v53  ;;  %v2801_v55 = vrot.slane %v2603_v53, 4  ;;  %v2900_v56 = vmul.f32 %v2603_v53, %v2603_v53  ;;  %v2605_v12 = vpop.f32.mrb[1].mxu1 }
 0x334   : > { %2775 = vst [vmem:[#allocation2 + $0x8] sm:$0xff] %v2523_v54  ;;  %v2795_v57 = vrot.slane %v2523_v54, 4  ;;  %v2899_v58 = vmul.f32 %v2523_v54, %v2523_v54  ;;  %v2525_v41 = vpop.f32.mrb[2].mxu0  ;;  %2777 = vst [vmem:[#allocation2 + $0x18] sm:$0xff] %v2605_v12  ;;  %v2807_v61 = vrot.slane %v2605_v12, 4  ;;  %v2901_v62 = vmul.f32 %v2605_v12, %v2605_v12  ;;  %v2607_v23 = vpop.f32.mrb[2].mxu1 }
 0x335   : > { %v2790_v59 = vadd.f32 %v2789_v51, %v2521_v49  ;;  %v2906_v60 = vrot.slane %v2898_v52, 4  ;;  %v2526_v0 = vpop.f32.mrb[3].mxu0  ;;  %v2802_v1 = vadd.f32 %v2801_v55, %v2603_v53  ;;  %v2918_v2 = vrot.slane %v2900_v56, 4  ;;  %v2608_v19 = vpop.f32.mrb[3].mxu1 }
 0x336   : > { %v2796_v3 = vadd.f32 %v2795_v57, %v2523_v54  ;;  %v2912_v4 = vrot.slane %v2899_v58, 4  ;;  %v2808_v63 = vadd.f32 %v2807_v61, %v2605_v12  ;;  %v2924_v7 = vrot.slane %v2901_v62, 4 }
 0x337   : > { %v2791_v5 = vrot.slane %v2790_v59, 2  ;;  %v2907_v6 = vadd.f32 %v2906_v60, %v2898_v52  ;;  %v2803_v8 = vrot.slane %v2802_v1, 2  ;;  %v2919_v9 = vadd.f32 %v2918_v2, %v2900_v56 }
 0x338   : > { %v2797_v10 = vrot.slane %v2796_v3, 2  ;;  %v2913_v11 = vadd.f32 %v2912_v4, %v2899_v58  ;;  %v2809_v14 = vrot.slane %v2808_v63, 2  ;;  %v2925_v39 = vadd.f32 %v2924_v7, %v2901_v62 }
 0x339   : > { %v2792_v13 = vadd.f32 %v2791_v5, %v2790_v59  ;;  %v2908_v30 = vrot.slane %v2907_v6, 2  ;;  %v2804_v15 = vadd.f32 %v2803_v8, %v2802_v1  ;;  %v2920_v16 = vrot.slane %v2919_v9, 2 }
 0x33a   : > { %v2798_v17 = vadd.f32 %v2797_v10, %v2796_v3  ;;  %v2914_v18 = vrot.slane %v2913_v11, 2  ;;  %v2810_v24 = vadd.f32 %v2809_v14, %v2808_v63  ;;  %v2926_v25 = vrot.slane %v2925_v39, 2 }
 0x33b   : > { %v2793_v21 = vrot.slane %v2792_v13, 1  ;;  %v2909_v22 = vadd.f32 %v2908_v30, %v2907_v6  ;;  %v2805_v26 = vrot.slane %v2804_v15, 1  ;;  %v2921_v27 = vadd.f32 %v2920_v16, %v2919_v9 }
 0x33c   : > { %v2799_v20 = vrot.slane %v2798_v17, 1  ;;  %v2915_v28 = vadd.f32 %v2914_v18, %v2913_v11  ;;  %v2811_v32 = vrot.slane %v2810_v24, 1  ;;  %v2927_v33 = vadd.f32 %v2926_v25, %v2925_v39 }
 0x33d   : > { %v2794_v29 = vadd.f32 %v2793_v21, %v2792_v13  ;;  %v2910_v31 = vrot.slane %v2909_v22, 1  ;;  %v2806_v34 = vadd.f32 %v2805_v26, %v2804_v15  ;;  %v2922_v35 = vrot.slane %v2921_v27, 1 }
 0x33e   : > { %v2800_v36 = vadd.f32 %v2799_v20, %v2798_v17  ;;  %v2916_v37 = vrot.slane %v2915_v28, 1  ;;  %v2812_v40 = vadd.f32 %v2811_v32, %v2810_v24  ;;  %v2928_v42 = vrot.slane %v2927_v33, 1 }
 0x33f   : > { %v2911_v38 = vadd.f32 %v2910_v31, %v2909_v22  ;;  %v2923_v43 = vadd.f32 %v2922_v35, %v2921_v27 }
 0x340   : > { %v2845_v44 = vcombine.low %v2794_v29, %v2800_v36  ;;  %v2917_v45 = vadd.f32 %v2916_v37, %v2915_v28  ;;  %v2846_v46 = vcombine.low %v2806_v34, %v2812_v40  ;;  %v2929_v47 = vadd.f32 %v2928_v42, %v2927_v33 }
 0x342   : > { %v2855_v48 = vrot.slane %v2845_v44, %v7601_v50  ;;  %v2962_v49 = vcombine.low %v2911_v38, %v2917_v45  ;;  %v2862_v51 = vrot.slane %v2846_v46, %v7601_v50  ;;  %v2963_v52 = vcombine.low %v2923_v43, %v2929_v47 }
 0x344   : > { %v2972_v53 = vrot.slane %v2962_v49, %v7601_v50  ;;  %v2877_v54 = vcombine.low %v2855_v48, %v2862_v51  ;;  %v2979_v55 = vrot.slane %v2963_v52, %v7601_v50 }
 0x346   : > { %v7608_v56 = vrot.slane %v2877_v54, %v7601_v50  ;;  %v2994_v57 = vcombine.low %v2972_v53, %v2979_v55 }
 0x348   : > { %v7611_v58 = vrot.slane %v2994_v57, %v7601_v50 }
 0x3b2   : > { %v2685_v12 = vpop.f32.mrb[4].mxu0  ;;  %v2767_v60 = vpop.f32.mrb[4].mxu1 }
 0x3b3   : > { %2778 = vst [vmem:[#allocation2 + $0x20] sm:$0xff] %v2685_v12  ;;  %v2813_v41 = vrot.slane %v2685_v12, 4  ;;  %v2902_v59 = vmul.f32 %v2685_v12, %v2685_v12  ;;  %v2687_v61 = vpop.f32.mrb[5].mxu0  ;;  %2780 = vst [vmem:[#allocation2 + $0x30] sm:$0xff] %v2767_v60  ;;  %v2825_v62 = vrot.slane %v2767_v60, 4  ;;  %v2904_v23 = vmul.f32 %v2767_v60, %v2767_v60  ;;  %v2769_v2 = vpop.f32.mrb[5].mxu1 }
 0x3b4   : > { %2779 = vst [vmem:[#allocation2 + $0x28] sm:$0xff] %v2687_v61  ;;  %v2819_v0 = vrot.slane %v2687_v61, 4  ;;  %v2903_v1 = vmul.f32 %v2687_v61, %v2687_v61  ;;  %v2689_v3 = vpop.f32.mrb[6].mxu0  ;;  %2781 = vst [vmem:[#allocation2 + $0x38] sm:$0xff] %v2769_v2  ;;  %v2831_v5 = vrot.slane %v2769_v2, 4  ;;  %v2905_v6 = vmul.f32 %v2769_v2, %v2769_v2  ;;  %v2771_v63 = vpop.f32.mrb[6].mxu1 }
 0x3b5   : > { %v2814_v4 = vadd.f32 %v2813_v41, %v2685_v12  ;;  %v2930_v19 = vrot.slane %v2902_v59, 4  ;;  %v2690_v7 = vpop.f32.mrb[7].mxu0  ;;  %v2826_v8 = vadd.f32 %v2825_v62, %v2767_v60  ;;  %v2942_v9 = vrot.slane %v2904_v23, 4  ;;  %v2772_v13 = vpop.f32.mrb[7].mxu1 }
 0x3b6   : > { %v2820_v10 = vadd.f32 %v2819_v0, %v2687_v61  ;;  %v2936_v11 = vrot.slane %v2903_v1, 4  ;;  %v2832_v39 = vadd.f32 %v2831_v5, %v2769_v2  ;;  %v2948_v15 = vrot.slane %v2905_v6, 4 }
 0x3b7   : > { %v2815_v30 = vrot.slane %v2814_v4, 2  ;;  %v2931_v14 = vadd.f32 %v2930_v19, %v2902_v59  ;;  %v2827_v16 = vrot.slane %v2826_v8, 2  ;;  %v2943_v17 = vadd.f32 %v2942_v9, %v2904_v23  ;;  %v3023_v9 = vld [vmem:[%s7740_s5] sm:$0xff] }
 0x3b8   : > { %v2821_v18 = vrot.slane %v2820_v10, 2  ;;  %v2937_v21 = vadd.f32 %v2936_v11, %v2903_v1  ;;  %v2833_v25 = vrot.slane %v2832_v39, 2  ;;  %v2949_v26 = vadd.f32 %v2948_v15, %v2905_v6 }
 0x3b9   : > { %v2816_v22 = vadd.f32 %v2815_v30, %v2814_v4  ;;  %v2932_v24 = vrot.slane %v2931_v14, 2  ;;  %v2828_v27 = vadd.f32 %v2827_v16, %v2826_v8  ;;  %v2944_v20 = vrot.slane %v2943_v17, 2 }
 0x3ba   : > { %v2822_v28 = vadd.f32 %v2821_v18, %v2820_v10  ;;  %v2938_v29 = vrot.slane %v2937_v21, 2  ;;  %v2834_v33 = vadd.f32 %v2833_v25, %v2832_v39  ;;  %v2950_v34 = vrot.slane %v2949_v26, 2 }
 0x3bb   : > { %v2817_v31 = vrot.slane %v2816_v22, 1  ;;  %v2933_v32 = vadd.f32 %v2932_v24, %v2931_v14  ;;  %v2829_v35 = vrot.slane %v2828_v27, 1  ;;  %v2945_v36 = vadd.f32 %v2944_v20, %v2943_v17 }
 0x3bc   : > { %v2823_v37 = vrot.slane %v2822_v28, 1  ;;  %v2939_v38 = vadd.f32 %v2938_v29, %v2937_v21  ;;  %v2835_v43 = vrot.slane %v2834_v33, 1  ;;  %v2951_v44 = vadd.f32 %v2950_v34, %v2949_v26 }
 0x3bd   : > { %v2818_v40 = vadd.f32 %v2817_v31, %v2816_v22  ;;  %v2934_v42 = vrot.slane %v2933_v32, 1  ;;  %v2830_v45 = vadd.f32 %v2829_v35, %v2828_v27  ;;  %v2946_v46 = vrot.slane %v2945_v36, 1 }
 0x3be   : > { %v2824_v47 = vadd.f32 %v2823_v37, %v2822_v28  ;;  %v2940_v48 = vrot.slane %v2939_v38, 1  ;;  %v2836_v51 = vadd.f32 %v2835_v43, %v2834_v33  ;;  %v2952_v52 = vrot.slane %v2951_v44, 1 }
 0x3bf   : > { %v2935_v49 = vadd.f32 %v2934_v42, %v2933_v32  ;;  %v2947_v53 = vadd.f32 %v2946_v46, %v2945_v36 }
 0x3c0   : > { %v2847_v54 = vcombine.low %v2818_v40, %v2824_v47  ;;  %v2941_v55 = vadd.f32 %v2940_v48, %v2939_v38  ;;  %v2848_v57 = vcombine.low %v2830_v45, %v2836_v51  ;;  %v2953_v12 = vadd.f32 %v2952_v52, %v2951_v44 }
 0x3c2   : > { %v2869_v41 = vrot.slane %v2847_v54, %v7601_v50  ;;  %v2964_v59 = vcombine.low %v2935_v49, %v2941_v55  ;;  %v2876_v60 = vrot.slane %v2848_v57, %v7601_v50  ;;  %v2965_v61 = vcombine.low %v2947_v53, %v2953_v12 }
 0x3c4   : > { %v2986_v62 = vrot.slane %v2964_v59, %v7601_v50  ;;  %v2878_v23 = vcombine.low %v2869_v41, %v2876_v60  ;;  %v2993_v0 = vrot.slane %v2965_v61, %v7601_v50 }
 0x3c6   : > { %v2892_v1 = vrot.slane %v2878_v23, %v7601_v50  ;;  %v2995_v2 = vcombine.low %v2986_v62, %v2993_v0 }
 0x3c8   : > { %v2893_v3 = vcombine.low %v7608_v56, %v2892_v1  ;;  %v3009_v4 = vrot.slane %v2995_v2, %v7601_v50  ;;  %v3028_v50 = vld [vmem:[%s7741_s6] sm:$0xff] }
 0x3ca   : > { %v3010_v19 = vcombine.low %v7611_v58, %v3009_v4  ;;  %2896 = vst [vmem:[#allocation3] sm:$0xff] %v2893_v3  ;;  %v3018_v5 = vmul.f32 0.125, %v2893_v3 }
 0x3cc   : > { %3013 = vst [vmem:[#allocation4] sm:$0xff] %v3010_v19  ;;  %v3020_v6 = vmul.f32 0.125, %v3010_v19  ;;  %v3021_v63 = vmul.f32 %v3018_v5, %v3018_v5 }
 0x3ce   : > { %v3022_v7 = vsub.f32 %v3020_v6, %v3021_v63 }
 0x3d0   : > { %v3024_v8 = vadd.f32 1e-05, %v3022_v7 }
 0x3d2   : > { %6559 = vrsqrt.f32 %v3024_v8 }
 0x3dc   : > { %v6560_v10 = vpop.eup %6559 }
 0x3dd   : > { %v3026_v11 = vmul.f32 %v6560_v10, %v3023_v9 }
 0x3df   : > { %3027 = vst [vmem:[#allocation5] sm:$0xff] %v3026_v11  ;;  %v3029_v56 = vmul.f32 %v3026_v11, %v3018_v5 }
 0x3e1   : > { %v3030_v58 = vsub.f32 %v3028_v50, %v3029_v56 }
 0x3e3   : > { %3031 = vst [vmem:[#allocation6] sm:$0xff] %v3030_v58 }
 0x3e4 PF: > { %p6044_p10 = scmp.ne.s32.totalorder %s7237_s21, 2 }
 0x3e5   : > { %v6561_v13 = vld [vmem:[#allocation16 + $0x4] ss:$16 sps:$4 sm:$0xff] (!%p6044_p10)   ;;  %v6563_v30 = vld [vmem:[#allocation16 + $0xc] ss:$16 sps:$4 sm:$0xff] (!%p6044_p10)   ;;  %v6565_v14 = vld [vmem:[#allocation16] ss:$16 sps:$4 sm:$0xff] (!%p6044_p10)   ;;  %v3051_v54 = vlaneseq (!%p6044_p10) }
 0x3e6   : > { %3035 = sbr.rel (%p6044_p10) target bundleno = 1523 (0x5f3), region = 124  ;;  %4701 = vmatprep.subr.bf16.mxu0 (!%p6044_p10), %v6561_v13  ;;  %v6566_v39 = vld [vmem:[#allocation16 + $0x8] ss:$16 sps:$4 sm:$0xff] (!%p6044_p10)   ;;  %4865 = vmatprep.subr.bf16.mxu1 (!%p6044_p10), %v6563_v30  ;;  %v6567_v15 = vld [vmem:[#allocation16 + $0x24] ss:$16 sps:$4 sm:$0xff] (!%p6044_p10)   ;;  %s7770_s30 = sld [smem:[#allocation27_spill]] (!%p6044_p10) }
 0x3e7   : > { %4702 = vmatpush1.bf16.msra.mxu0 (!%p6044_p10), %v6565_v14  ;;  %4866 = vmatpush1.bf16.msra.mxu1 (!%p6044_p10), %v6566_v39  ;;  %v6569_v16 = vld [vmem:[#allocation16 + $0x2c] ss:$16 sps:$4 sm:$0xff] (!%p6044_p10)   ;;  %v6571_v17 = vld [vmem:[#allocation16 + $0x20] ss:$16 sps:$4 sm:$0xff] (!%p6044_p10)   ;;  %v6572_v18 = vld [vmem:[#allocation16 + $0x28] ss:$16 sps:$4 sm:$0xff] (!%p6044_p10)  }
 0x3e8   : > { %4703 = vmatprep.subr.bf16.mxu0 (!%p6044_p10), %v6567_v15  ;;  %4867 = vmatprep.subr.bf16.mxu1 (!%p6044_p10), %v6569_v16  ;;  %v6573_v21 = vld [vmem:[#allocation16 + $0x44] ss:$16 sps:$4 sm:$0xff] (!%p6044_p10)   ;;  %v6575_v22 = vld [vmem:[#allocation16 + $0x4c] ss:$16 sps:$4 sm:$0xff] (!%p6044_p10)   ;;  %v6577_v24 = vld [vmem:[#allocation16 + $0x40] ss:$16 sps:$4 sm:$0xff] (!%p6044_p10)  }
 0x3e9   : > { %v6578_v25 = vld [vmem:[#allocation16 + $0x48] ss:$16 sps:$4 sm:$0xff] (!%p6044_p10)   ;;  %v6579_v26 = vld [vmem:[#allocation16 + $0x64] ss:$16 sps:$4 sm:$0xff] (!%p6044_p10)   ;;  %v6581_v27 = vld [vmem:[#allocation16 + $0x6c] ss:$16 sps:$4 sm:$0xff] (!%p6044_p10)  }
 0x3ea   : > { %v6583_v20 = vld [vmem:[#allocation16 + $0x60] ss:$16 sps:$4 sm:$0xff] (!%p6044_p10)   ;;  %v6584_v28 = vld [vmem:[#allocation16 + $0x68] ss:$16 sps:$4 sm:$0xff] (!%p6044_p10)   ;;  %v6585_v29 = vld [vmem:[#allocation16 + $0x84] ss:$16 sps:$4 sm:$0xff] (!%p6044_p10)  }
 0x3eb   : > { %4704 = vmatpush1.bf16.msra.mxu0 (!%p6044_p10), %v6571_v17  ;;  %4868 = vmatpush1.bf16.msra.mxu1 (!%p6044_p10), %v6572_v18  ;;  %v6587_v31 = vld [vmem:[#allocation16 + $0x8c] ss:$16 sps:$4 sm:$0xff] (!%p6044_p10)   ;;  %v6589_v32 = vld [vmem:[#allocation16 + $0x80] ss:$16 sps:$4 sm:$0xff] (!%p6044_p10)   ;;  %v6590_v33 = vld [vmem:[#allocation16 + $0x88] ss:$16 sps:$4 sm:$0xff] (!%p6044_p10)  }
 0x3ec   : > { %4705 = vmatprep.subr.bf16.mxu0 (!%p6044_p10), %v6573_v21  ;;  %4869 = vmatprep.subr.bf16.mxu1 (!%p6044_p10), %v6575_v22  ;;  %v6591_v34 = vld [vmem:[#allocation16 + $0xa4] ss:$16 sps:$4 sm:$0xff] (!%p6044_p10)   ;;  %v6593_v35 = vld [vmem:[#allocation16 + $0xac] ss:$16 sps:$4 sm:$0xff] (!%p6044_p10)   ;;  %v6595_v36 = vld [vmem:[#allocation16 + $0xa0] ss:$16 sps:$4 sm:$0xff] (!%p6044_p10)  }
 0x3ed   : > { %v6596_v37 = vld [vmem:[#allocation16 + $0xa8] ss:$16 sps:$4 sm:$0xff]   ;;  %v6597_v38 = vld [vmem:[#allocation16 + $0xc4] ss:$16 sps:$4 sm:$0xff]   ;;  %v6599_v40 = vld [vmem:[#allocation16 + $0xcc] ss:$16 sps:$4 sm:$0xff]  }
 0x3ee   : > { %v6601_v42 = vld [vmem:[#allocation16 + $0xc0] ss:$16 sps:$4 sm:$0xff]   ;;  %v6602_v43 = vld [vmem:[#allocation16 + $0xc8] ss:$16 sps:$4 sm:$0xff]   ;;  %v6603_v44 = vld [vmem:[#allocation16 + $0xe4] ss:$16 sps:$4 sm:$0xff]  }
 0x3ef   : > { %4706 = vmatpush1.bf16.msra.mxu0 %v6577_v24  ;;  %4870 = vmatpush1.bf16.msra.mxu1 %v6578_v25  ;;  %v6605_v45 = vld [vmem:[#allocation16 + $0xec] ss:$16 sps:$4 sm:$0xff]   ;;  %v6607_v46 = vld [vmem:[#allocation16 + $0xe0] ss:$16 sps:$4 sm:$0xff]   ;;  %v6608_v47 = vld [vmem:[#allocation16 + $0xe8] ss:$16 sps:$4 sm:$0xff]  }
 0x3f0   : > { %4707 = vmatprep.subr.bf16.mxu0 %v6579_v26  ;;  %4871 = vmatprep.subr.bf16.mxu1 %v6581_v27  ;;  %v6609_v48 = vld [vmem:[#allocation16 + $0x104] ss:$16 sps:$4 sm:$0xff]   ;;  %v6611_v49 = vld [vmem:[#allocation16 + $0x10c] ss:$16 sps:$4 sm:$0xff]   ;;  %v6613_v51 = vld [vmem:[#allocation16 + $0x100] ss:$16 sps:$4 sm:$0xff]  }
 0x3f1   : > { %v6614_v52 = vld [vmem:[#allocation16 + $0x108] ss:$16 sps:$4 sm:$0xff]   ;;  %v6615_v53 = vld [vmem:[#allocation16 + $0x124] ss:$16 sps:$4 sm:$0xff]   ;;  %v6617_v55 = vld [vmem:[#allocation16 + $0x12c] ss:$16 sps:$4 sm:$0xff]  }
 0x3f2   : > { %v6619_v57 = vld [vmem:[#allocation16 + $0x120] ss:$16 sps:$4 sm:$0xff]   ;;  %v6620_v12 = vld [vmem:[#allocation16 + $0x128] ss:$16 sps:$4 sm:$0xff]   ;;  %v6621_v41 = vld [vmem:[#allocation16 + $0x144] ss:$16 sps:$4 sm:$0xff]  }
 0x3f3   : > { %4708 = vmatpush1.bf16.msra.mxu0 %v6583_v20  ;;  %4872 = vmatpush1.bf16.msra.mxu1 %v6584_v28  ;;  %v7629_v59 = vshrl.u32 %v3051_v54, 7  ;;  %v6623_v60 = vld [vmem:[#allocation16 + $0x14c] ss:$16 sps:$4 sm:$0xff]   ;;  %v6625_v61 = vld [vmem:[#allocation16 + $0x140] ss:$16 sps:$4 sm:$0xff]   ;;  %vm7664_vm2 = vcmp.lt.s32.totalorder %v3051_v54, 512 }
 0x3f4   : > { %4709 = vmatprep.subr.bf16.mxu0 %v6585_v29  ;;  %4873 = vmatprep.subr.bf16.mxu1 %v6587_v31  ;;  %v6626_v62 = vld [vmem:[#allocation16 + $0x148] ss:$16 sps:$4 sm:$0xff]   ;;  %v6627_v23 = vld [vmem:[#allocation16 + $0x164] ss:$16 sps:$4 sm:$0xff]   ;;  %v6629_v1 = vld [vmem:[#allocation16 + $0x16c] ss:$16 sps:$4 sm:$0xff]  }
 0x3f5   : > { %v3057_v0 = vsub.s32 1, %v7629_v59  ;;  %v6631_v2 = vld [vmem:[#allocation16 + $0x160] ss:$16 sps:$4 sm:$0xff]   ;;  %v7632_v4 = vld [vmem:[#allocation5] sm:$0xff]  ;;  %v3053_v5 = vsub.s32 0, %v7629_v59  ;;  %v3041_v30 = vld [vmem:[#allocation2] sm:$0xff] }
 0x3f6   : > { %v3042_v3 = vld [vmem:[#allocation2 + $0x8] sm:$0xff]  ;;  %v7634_v19 = vld [vmem:[#allocation6] sm:$0xff]  ;;  %v6632_v6 = vld [vmem:[#allocation16 + $0x168] ss:$16 sps:$4 sm:$0xff]  }
 0x3f7   : > { %4710 = vmatpush1.bf16.msra.mxu0 %v6589_v32  ;;  %4874 = vmatpush1.bf16.msra.mxu1 %v6590_v33  ;;  %v6633_v63 = vld [vmem:[#allocation16 + $0x184] ss:$16 sps:$4 sm:$0xff]   ;;  %v3058_v7 = vrot.slane %v7632_v4, %v3057_v0  ;;  %v3108_v8 = vrot.slane %v7634_v19, %v3057_v0  ;;  %v6635_v9 = vld [vmem:[#allocation16 + $0x18c] ss:$16 sps:$4 sm:$0xff]   ;;  %v6637_v10 = vld [vmem:[#allocation16 + $0x180] ss:$16 sps:$4 sm:$0xff]   ;;  %v3054_v58 = vrot.slane %v7632_v4, %v3053_v5 }
 0x3f8   : > { %4711 = vmatprep.subr.bf16.mxu0 %v6591_v34  ;;  %4875 = vmatprep.subr.bf16.mxu1 %v6593_v35  ;;  %v6638_v50 = vld [vmem:[#allocation16 + $0x188] ss:$16 sps:$4 sm:$0xff]   ;;  %v6639_v56 = vld [vmem:[#allocation16 + $0x1a4] ss:$16 sps:$4 sm:$0xff]   ;;  %v6641_v14 = vld [vmem:[#allocation16 + $0x1ac] ss:$16 sps:$4 sm:$0xff]   ;;  %v3104_v18 = vrot.slane %v7634_v19, %v3053_v5 }
 0x3f9   : > { %v3092_v11 = vmul.f32 %v3058_v7, %v3042_v3  ;;  %v6643_v15 = vld [vmem:[#allocation16 + $0x1a0] ss:$16 sps:$4 sm:$0xff]   ;;  %v6644_v16 = vld [vmem:[#allocation16 + $0x1a8] ss:$16 sps:$4 sm:$0xff]   ;;  %v3091_v17 = vmul.f32 %v3054_v58, %v3041_v30  ;;  %v6645_v21 = vld [vmem:[#allocation16 + $0x1c4] ss:$16 sps:$4 sm:$0xff]  }
 0x3fa   : > { %v6647_v24 = vld [vmem:[#allocation16 + $0x1cc] ss:$16 sps:$4 sm:$0xff]   ;;  %v6649_v25 = vld [vmem:[#allocation16 + $0x1c0] ss:$16 sps:$4 sm:$0xff]   ;;  %v6650_v26 = vld [vmem:[#allocation16 + $0x1c8] ss:$16 sps:$4 sm:$0xff]  }
 0x3fb   : > { %4712 = vmatpush1.bf16.msra.mxu0 %v6595_v36  ;;  %4876 = vmatpush1.bf16.msra.mxu1 %v6596_v37  ;;  %v3142_v13 = vadd.f32 %v3108_v8, %v3092_v11  ;;  %v3141_v27 = vadd.f32 %v3104_v18, %v3091_v17  ;;  %v6651_v20 = vld [vmem:[#allocation16 + $0x1e4] ss:$16 sps:$4 sm:$0xff]   ;;  %v6653_v28 = vld [vmem:[#allocation16 + $0x1ec] ss:$16 sps:$4 sm:$0xff]   ;;  %v6655_v29 = vld [vmem:[#allocation16 + $0x1e0] ss:$16 sps:$4 sm:$0xff]  }
 0x3fc   : > { %4713 = vmatprep.subr.bf16.mxu0 %v6597_v38  ;;  %4877 = vmatprep.subr.bf16.mxu1 %v6599_v40  ;;  %v6656_v31 = vld [vmem:[#allocation16 + $0x1e8] ss:$16 sps:$4 sm:$0xff]   ;;  %v6659_v33 = vld [vmem:[#allocation16 + $0x204] ss:$16 sps:$4 sm:$0xff]   ;;  %v6662_v34 = vld [vmem:[#allocation16 + $0x20c] ss:$16 sps:$4 sm:$0xff]  }
 0x3fd   : > { %v3150_v39 = vmax.f32 %v3142_v13, 0.0  ;;  %v3149_v32 = vmax.f32 %v3141_v27, 0.0  ;;  %v6657_v35 = vld [vmem:[#allocation16 + $0x200] ss:$16 sps:$4 sm:$0xff]   ;;  %v6660_v36 = vld [vmem:[#allocation16 + $0x208] ss:$16 sps:$4 sm:$0xff]  }
 0x3fe   : > { %v6665_v38 = vld [vmem:[#allocation16 + $0x224] ss:$16 sps:$4 sm:$0xff]   ;;  %v6668_v40 = vld [vmem:[#allocation16 + $0x22c] ss:$16 sps:$4 sm:$0xff]   ;;  %v6696_v7 = vld [vmem:[#allocation16 + $0x2c8] ss:$16 sps:$4 sm:$0xff]  }
 0x3ff   : > { %4714 = vmatpush1.bf16.msra.mxu0 %v6601_v42  ;;  %4878 = vmatpush1.bf16.msra.mxu1 %v6602_v43  ;;  %v3158_v22 = vpack.c.bf16 %v3150_v39, %v3150_v39  ;;  %v3157_v37 = vpack.c.bf16 %v3149_v32, %v3149_v32  ;;  %v6663_v42 = vld [vmem:[#allocation16 + $0x220] ss:$16 sps:$4 sm:$0xff]   ;;  %v6666_v43 = vld [vmem:[#allocation16 + $0x228] ss:$16 sps:$4 sm:$0xff]   ;;  %v6701_v8 = vld [vmem:[#allocation16 + $0x2e4] ss:$16 sps:$4 sm:$0xff]  }
 0x400   : > { %4715 = vmatprep.subr.bf16.mxu0 %v6603_v44  ;;  %4879 = vmatprep.subr.bf16.mxu1 %v6605_v45  ;;  %v6671_v44 = vld [vmem:[#allocation16 + $0x244] ss:$16 sps:$4 sm:$0xff]   ;;  %v6674_v45 = vld [vmem:[#allocation16 + $0x24c] ss:$16 sps:$4 sm:$0xff]   ;;  %v6708_v39 = vld [vmem:[#allocation16 + $0x308] ss:$16 sps:$4 sm:$0xff]  }
 0x401   : > { %4733 = vmatprep.mubr.bf16.mxu0 %v3158_v22  ;;  %4897 = vmatprep.mubr.bf16.mxu1 %v3158_v22  ;;  %v3044_v5 = vld [vmem:[#allocation2 + $0x18] sm:$0xff]  ;;  %v6710_v13 = vld [vmem:[#allocation16 + $0x30c] ss:$16 sps:$4 sm:$0xff]   ;;  %v6714_v18 = vld [vmem:[#allocation16 + $0x328] ss:$16 sps:$4 sm:$0xff]  }
 0x402   : > { %v6707_v58 = vld [vmem:[#allocation16 + $0x304] ss:$16 sps:$4 sm:$0xff]   ;;  %v6711_v17 = vld [vmem:[#allocation16 + $0x320] ss:$16 sps:$4 sm:$0xff]   ;;  %v6722_v22 = vld [vmem:[#allocation16 + $0x34c] ss:$16 sps:$4 sm:$0xff]  }
 0x403   : > { %4716 = vmatpush1.bf16.msra.mxu0 %v6607_v46  ;;  %4880 = vmatpush1.bf16.msra.mxu1 %v6608_v47  ;;  %v6669_v46 = vld [vmem:[#allocation16 + $0x240] ss:$16 sps:$4 sm:$0xff]   ;;  %v6672_v47 = vld [vmem:[#allocation16 + $0x248] ss:$16 sps:$4 sm:$0xff]   ;;  %v6728_v27 = vld [vmem:[#allocation16 + $0x36c] ss:$16 sps:$4 sm:$0xff]  }
 0x404   : > { %4717 = vmatprep.subr.bf16.mxu0 %v6609_v48  ;;  %4881 = vmatprep.subr.bf16.mxu1 %v6611_v49  ;;  %v6677_v48 = vld [vmem:[#allocation16 + $0x264] ss:$16 sps:$4 sm:$0xff]   ;;  %v6680_v49 = vld [vmem:[#allocation16 + $0x26c] ss:$16 sps:$4 sm:$0xff]  }
 0x405   : > { %v6734_v32 = vld [vmem:[#allocation16 + $0x38c] ss:$16 sps:$4 sm:$0xff]  }
 0x407   : > { %4718 = vmatpush1.bf16.msra.mxu0 %v6613_v51  ;;  %4882 = vmatpush1.bf16.msra.mxu1 %v6614_v52  ;;  %v6675_v51 = vld [vmem:[#allocation16 + $0x260] ss:$16 sps:$4 sm:$0xff]   ;;  %v6678_v52 = vld [vmem:[#allocation16 + $0x268] ss:$16 sps:$4 sm:$0xff]  }
 0x408   : > { %4719 = vmatprep.subr.bf16.mxu0 %v6615_v53  ;;  %4883 = vmatprep.subr.bf16.mxu1 %v6617_v55  ;;  %v6683_v53 = vld [vmem:[#allocation16 + $0x284] ss:$16 sps:$4 sm:$0xff]   ;;  %v6686_v55 = vld [vmem:[#allocation16 + $0x28c] ss:$16 sps:$4 sm:$0xff]  }
 0x40b   : > { %4720 = vmatpush1.bf16.msra.mxu0 %v6619_v57  ;;  %4884 = vmatpush1.bf16.msra.mxu1 %v6620_v12  ;;  %v6681_v57 = vld [vmem:[#allocation16 + $0x280] ss:$16 sps:$4 sm:$0xff]   ;;  %v6684_v12 = vld [vmem:[#allocation16 + $0x288] ss:$16 sps:$4 sm:$0xff]  }
 0x40c   : > { %4721 = vmatprep.subr.bf16.mxu0 %v6621_v41  ;;  %4885 = vmatprep.subr.bf16.mxu1 %v6623_v60  ;;  %v3065_v41 = vsub.s32 3, %v7629_v59  ;;  %v6689_v60 = vld [vmem:[#allocation16 + $0x2a4] ss:$16 sps:$4 sm:$0xff]  }
 0x40e   : > { %v3066_v0 = vrot.slane %v7632_v4, %v3065_v41  ;;  %v3116_v3 = vrot.slane %v7634_v19, %v3065_v41  ;;  %v6755_v41 = vld [vmem:[#allocation16 + $0x404] ss:$16 sps:$4 sm:$0xff]  }
 0x40f   : > { %4722 = vmatpush1.bf16.msra.mxu0 %v6625_v61  ;;  %4886 = vmatpush1.bf16.msra.mxu1 %v6626_v62  ;;  %v6692_v61 = vld [vmem:[#allocation16 + $0x2ac] ss:$16 sps:$4 sm:$0xff]   ;;  %v6687_v62 = vld [vmem:[#allocation16 + $0x2a0] ss:$16 sps:$4 sm:$0xff]  }
 0x410   : > { %4723 = vmatprep.subr.bf16.mxu0 %v6627_v23  ;;  %4887 = vmatprep.subr.bf16.mxu1 %v6629_v1  ;;  %v6690_v23 = vld [vmem:[#allocation16 + $0x2a8] ss:$16 sps:$4 sm:$0xff]   ;;  %v6695_v1 = vld [vmem:[#allocation16 + $0x2c4] ss:$16 sps:$4 sm:$0xff]  }
 0x413   : > { %4724 = vmatpush1.bf16.msra.mxu0 %v6631_v2  ;;  %4888 = vmatpush1.bf16.msra.mxu1 %v6632_v6  ;;  %v6698_v2 = vld [vmem:[#allocation16 + $0x2cc] ss:$16 sps:$4 sm:$0xff]   ;;  %v6693_v6 = vld [vmem:[#allocation16 + $0x2c0] ss:$16 sps:$4 sm:$0xff]  }
 0x414   : > { %4725 = vmatprep.subr.bf16.mxu0 %v6633_v63  ;;  %4889 = vmatprep.subr.bf16.mxu1 %v6635_v9  ;;  %v3094_v63 = vmul.f32 %v3066_v0, %v3044_v5  ;;  %v6704_v9 = vld [vmem:[#allocation16 + $0x2ec] ss:$16 sps:$4 sm:$0xff]   ;;  %v6756_v0 = vld [vmem:[#allocation16 + $0x408] ss:$16 sps:$4 sm:$0xff]   ;;  %v3046_v5 = vld [vmem:[#allocation2 + $0x28] sm:$0xff] }
 0x417   : > { %4726 = vmatpush1.bf16.msra.mxu0 %v6637_v10  ;;  %4890 = vmatpush1.bf16.msra.mxu1 %v6638_v50  ;;  %v3144_v10 = vadd.f32 %v3116_v3, %v3094_v63  ;;  %v6699_v50 = vld [vmem:[#allocation16 + $0x2e0] ss:$16 sps:$4 sm:$0xff]  }
 0x418   : > { %4727 = vmatprep.subr.bf16.mxu0 %v6639_v56  ;;  %4891 = vmatprep.subr.bf16.mxu1 %v6641_v14  ;;  %v6702_v56 = vld [vmem:[#allocation16 + $0x2e8] ss:$16 sps:$4 sm:$0xff]   ;;  %v6705_v14 = vld [vmem:[#allocation16 + $0x300] ss:$16 sps:$4 sm:$0xff]  }
 0x419   : > { %v3152_v11 = vmax.f32 %v3144_v10, 0.0 }
 0x41b   : > { %4728 = vmatpush1.bf16.msra.mxu0 %v6643_v15  ;;  %4892 = vmatpush1.bf16.msra.mxu1 %v6644_v16  ;;  %v3160_v30 = vpack.c.bf16 %v3152_v11, %v3152_v11  ;;  %v6713_v15 = vld [vmem:[#allocation16 + $0x324] ss:$16 sps:$4 sm:$0xff]   ;;  %v6716_v16 = vld [vmem:[#allocation16 + $0x32c] ss:$16 sps:$4 sm:$0xff]   ;;  %v6765_v11 = vld [vmem:[#allocation16 + $0x440] ss:$16 sps:$4 sm:$0xff]  }
 0x41c   : > { %4729 = vmatprep.subr.bf16.mxu0 %v6645_v21  ;;  %4893 = vmatprep.subr.bf16.mxu1 %v6647_v24  ;;  %v6719_v21 = vld [vmem:[#allocation16 + $0x344] ss:$16 sps:$4 sm:$0xff]   ;;  %v6717_v24 = vld [vmem:[#allocation16 + $0x340] ss:$16 sps:$4 sm:$0xff]  }
 0x41f   : > { %4730 = vmatpush1.bf16.msra.mxu0 %v6649_v25  ;;  %4894 = vmatpush1.bf16.msra.mxu1 %v6650_v26  ;;  %v6720_v25 = vld [vmem:[#allocation16 + $0x348] ss:$16 sps:$4 sm:$0xff]   ;;  %v6725_v26 = vld [vmem:[#allocation16 + $0x364] ss:$16 sps:$4 sm:$0xff]  }
 0x420   : > { %4731 = vmatprep.subr.bf16.mxu0 %v6651_v20  ;;  %4895 = vmatprep.subr.bf16.mxu1 %v6653_v28  ;;  %v3061_v20 = vsub.s32 2, %v7629_v59  ;;  %v6723_v28 = vld [vmem:[#allocation16 + $0x360] ss:$16 sps:$4 sm:$0xff]  }
 0x423   : > { %4732 = vmatpush1.bf16.msra.mxu0 %v6655_v29  ;;  %4896 = vmatpush1.bf16.msra.mxu1 %v6656_v31  ;;  %v6726_v29 = vld [vmem:[#allocation16 + $0x368] ss:$16 sps:$4 sm:$0xff]   ;;  %v6731_v31 = vld [vmem:[#allocation16 + $0x384] ss:$16 sps:$4 sm:$0xff]  }
 0x424   : > { %4742 = vmatprep.subr.bf16.mxu0 %v6659_v33  ;;  %4906 = vmatprep.subr.bf16.mxu1 %v6662_v34  ;;  %v6729_v33 = vld [vmem:[#allocation16 + $0x380] ss:$16 sps:$4 sm:$0xff]   ;;  %v3062_v34 = vrot.slane %v7632_v4, %v3061_v20 }
 0x426   : > { %4734 = vmatmul.mubr.bf16.vlgmr.msra.gmra.mrb[0].mxu0 %v3157_v37  ;;  %4898 = vmatmul.mubr.bf16.vlgmr.msra.gmra.mrb[0].mxu1 %v3157_v37  ;;  %v6737_v37 = vld [vmem:[#allocation16 + $0x3a4] ss:$16 sps:$4 sm:$0xff]  }
 0x427   : > { %4743 = vmatpush1.bf16.msra.mxu0 %v6657_v35  ;;  %4907 = vmatpush1.bf16.msra.mxu1 %v6660_v36  ;;  %v6732_v35 = vld [vmem:[#allocation16 + $0x388] ss:$16 sps:$4 sm:$0xff]  }
 0x428   : > { %4744 = vmatprep.subr.bf16.mxu0 %v6665_v38  ;;  %4908 = vmatprep.subr.bf16.mxu1 %v6668_v40  ;;  %v3043_v36 = vld [vmem:[#allocation2 + $0x10] sm:$0xff] }
 0x429   : > { %4774 = vmatprep.mubr.bf16.mxu0 %v3160_v30  ;;  %4938 = vmatprep.mubr.bf16.mxu1 %v3160_v30  ;;  %v6740_v38 = vld [vmem:[#allocation16 + $0x3ac] ss:$16 sps:$4 sm:$0xff]   ;;  %v3093_v40 = vmul.f32 %v3062_v34, %v3043_v36  ;;  %v6771_v30 = vld [vmem:[#allocation16 + $0x460] ss:$16 sps:$4 sm:$0xff]   ;;  %v6804_v36 = vld [vmem:[#allocation16 + $0x508] ss:$16 sps:$4 sm:$0xff]  }
 0x42a   : > { %v6806_v34 = vld [vmem:[#allocation16 + $0x50c] ss:$16 sps:$4 sm:$0xff]  }
 0x42b   : > { %4745 = vmatpush1.bf16.msra.mxu0 %v6663_v42  ;;  %4909 = vmatpush1.bf16.msra.mxu1 %v6666_v43  ;;  %v3112_v42 = vrot.slane %v7634_v19, %v3061_v20  ;;  %v6735_v43 = vld [vmem:[#allocation16 + $0x3a0] ss:$16 sps:$4 sm:$0xff]   ;;  %v6792_v20 = vld [vmem:[#allocation16 + $0x4c8] ss:$16 sps:$4 sm:$0xff]  }
 0x42c   : > { %4746 = vmatprep.subr.bf16.mxu0 %v6671_v44  ;;  %4910 = vmatprep.subr.bf16.mxu1 %v6674_v45  ;;  %v6738_v44 = vld [vmem:[#allocation16 + $0x3a8] ss:$16 sps:$4 sm:$0xff]   ;;  %v6743_v45 = vld [vmem:[#allocation16 + $0x3c4] ss:$16 sps:$4 sm:$0xff]  }
 0x42f   : > { %4747 = vmatpush1.bf16.msra.mxu0 %v6669_v46  ;;  %4911 = vmatpush1.bf16.msra.mxu1 %v6672_v47  ;;  %v6746_v46 = vld [vmem:[#allocation16 + $0x3cc] ss:$16 sps:$4 sm:$0xff]   ;;  %v3143_v47 = vadd.f32 %v3112_v42, %v3093_v40  ;;  %v6807_v40 = vld [vmem:[#allocation16 + $0x520] ss:$16 sps:$4 sm:$0xff]   ;;  %v6810_v42 = vld [vmem:[#allocation16 + $0x528] ss:$16 sps:$4 sm:$0xff]  }
 0x430   : > { %4748 = vmatprep.subr.bf16.mxu0 %v6677_v48  ;;  %4912 = vmatprep.subr.bf16.mxu1 %v6680_v49  ;;  %v6741_v48 = vld [vmem:[#allocation16 + $0x3c0] ss:$16 sps:$4 sm:$0xff]   ;;  %v6744_v49 = vld [vmem:[#allocation16 + $0x3c8] ss:$16 sps:$4 sm:$0xff]  }
 0x433   : > { %4749 = vmatpush1.bf16.msra.mxu0 %v6675_v51  ;;  %4913 = vmatpush1.bf16.msra.mxu1 %v6678_v52  ;;  %v6749_v51 = vld [vmem:[#allocation16 + $0x3e4] ss:$16 sps:$4 sm:$0xff]   ;;  %v6752_v52 = vld [vmem:[#allocation16 + $0x3ec] ss:$16 sps:$4 sm:$0xff]  }
 0x434   : > { %4750 = vmatprep.subr.bf16.mxu0 %v6683_v53  ;;  %4914 = vmatprep.subr.bf16.mxu1 %v6686_v55  ;;  %v3151_v53 = vmax.f32 %v3143_v47, 0.0  ;;  %v3073_v55 = vsub.s32 5, %v7629_v59  ;;  %v6821_v47 = vld [vmem:[#allocation16 + $0x564] ss:$16 sps:$4 sm:$0xff]  }
 0x436   : > { %v3124_v3 = vrot.slane %v7634_v19, %v3073_v55  ;;  %v6776_v19 = vld [vmem:[#allocation16 + $0x46c] ss:$16 sps:$4 sm:$0xff]  }
 0x437   : > { %4751 = vmatpush1.bf16.msra.mxu0 %v6681_v57  ;;  %4915 = vmatpush1.bf16.msra.mxu1 %v6684_v12  ;;  %v6747_v57 = vld [vmem:[#allocation16 + $0x3e0] ss:$16 sps:$4 sm:$0xff]   ;;  %v6750_v12 = vld [vmem:[#allocation16 + $0x3e8] ss:$16 sps:$4 sm:$0xff]  }
 0x438   : > { %4752 = vmatprep.subr.bf16.mxu0 %v6689_v60  ;;  %4916 = vmatprep.subr.bf16.mxu1 %v6692_v61  ;;  %v6758_v60 = vld [vmem:[#allocation16 + $0x40c] ss:$16 sps:$4 sm:$0xff]   ;;  %v3159_v61 = vpack.c.bf16 %v3151_v53, %v3151_v53  ;;  %v6827_v53 = vld [vmem:[#allocation16 + $0x584] ss:$16 sps:$4 sm:$0xff]  }
 0x43b   : > { %4753 = vmatpush1.bf16.msra.mxu0 %v6687_v62  ;;  %4917 = vmatpush1.bf16.msra.mxu1 %v6690_v23  ;;  %v3074_v62 = vrot.slane %v7632_v4, %v3073_v55  ;;  %v6753_v23 = vld [vmem:[#allocation16 + $0x400] ss:$16 sps:$4 sm:$0xff]   ;;  %v6830_v55 = vld [vmem:[#allocation16 + $0x58c] ss:$16 sps:$4 sm:$0xff]  }
 0x43c   : > { %4754 = vmatprep.subr.bf16.mxu0 %v6695_v1  ;;  %4918 = vmatprep.subr.bf16.mxu1 %v6698_v2  ;;  %v6761_v1 = vld [vmem:[#allocation16 + $0x424] ss:$16 sps:$4 sm:$0xff]   ;;  %v6764_v2 = vld [vmem:[#allocation16 + $0x42c] ss:$16 sps:$4 sm:$0xff]  }
 0x43d   : > { %v3096_v63 = vmul.f32 %v3074_v62, %v3046_v5  ;;  %v6833_v62 = vld [vmem:[#allocation16 + $0x5a4] ss:$16 sps:$4 sm:$0xff]  }
 0x43f   : > { %4755 = vmatpush1.bf16.msra.mxu0 %v6693_v6  ;;  %4919 = vmatpush1.bf16.msra.mxu1 %v6696_v7  ;;  %v6759_v6 = vld [vmem:[#allocation16 + $0x420] ss:$16 sps:$4 sm:$0xff]   ;;  %v6762_v7 = vld [vmem:[#allocation16 + $0x428] ss:$16 sps:$4 sm:$0xff]   ;;  %v3146_v10 = vadd.f32 %v3124_v3, %v3096_v63 }
 0x440   : > { %4756 = vmatprep.subr.bf16.mxu0 %v6701_v8  ;;  %4920 = vmatprep.subr.bf16.mxu1 %v6704_v9  ;;  %v6767_v8 = vld [vmem:[#allocation16 + $0x444] ss:$16 sps:$4 sm:$0xff]   ;;  %v6770_v9 = vld [vmem:[#allocation16 + $0x44c] ss:$16 sps:$4 sm:$0xff]   ;;  %v6834_v63 = vld [vmem:[#allocation16 + $0x5a8] ss:$16 sps:$4 sm:$0xff]  }
 0x441   : > { %v7656_v3 = vld [vmem:[#allocation6] sm:$0xff] }
 0x443   : > { %4757 = vmatpush1.bf16.msra.mxu0 %v6699_v50  ;;  %4921 = vmatpush1.bf16.msra.mxu1 %v6702_v56  ;;  %v6768_v50 = vld [vmem:[#allocation16 + $0x448] ss:$16 sps:$4 sm:$0xff]   ;;  %v3154_v56 = vmax.f32 %v3146_v10, 0.0 }
 0x444   : > { %4758 = vmatprep.subr.bf16.mxu0 %v6707_v58  ;;  %4922 = vmatprep.subr.bf16.mxu1 %v6710_v13  ;;  %v6773_v58 = vld [vmem:[#allocation16 + $0x464] ss:$16 sps:$4 sm:$0xff]  }
 0x445   : > { %v3162_v13 = vpack.c.bf16 %v3154_v56, %v3154_v56  ;;  %v6840_v56 = vld [vmem:[#allocation16 + $0x5c8] ss:$16 sps:$4 sm:$0xff]  }
 0x447   : > { %4759 = vmatpush1.bf16.msra.mxu0 %v6705_v14  ;;  %4923 = vmatpush1.bf16.msra.mxu1 %v6708_v39  ;;  %v6774_v14 = vld [vmem:[#allocation16 + $0x468] ss:$16 sps:$4 sm:$0xff]   ;;  %v6779_v39 = vld [vmem:[#allocation16 + $0x484] ss:$16 sps:$4 sm:$0xff]  }
 0x448   : > { %4760 = vmatprep.subr.bf16.mxu0 %v6713_v15  ;;  %4924 = vmatprep.subr.bf16.mxu1 %v6716_v16  ;;  %v6782_v15 = vld [vmem:[#allocation16 + $0x48c] ss:$16 sps:$4 sm:$0xff]   ;;  %v6777_v16 = vld [vmem:[#allocation16 + $0x480] ss:$16 sps:$4 sm:$0xff]  }
 0x44b   : > { %4761 = vmatpush1.bf16.msra.mxu0 %v6711_v17  ;;  %4925 = vmatpush1.bf16.msra.mxu1 %v6714_v18  ;;  %v6780_v17 = vld [vmem:[#allocation16 + $0x488] ss:$16 sps:$4 sm:$0xff]   ;;  %v6785_v18 = vld [vmem:[#allocation16 + $0x4a4] ss:$16 sps:$4 sm:$0xff]  }
 0x44c   : > { %4762 = vmatprep.subr.bf16.mxu0 %v6719_v21  ;;  %4926 = vmatprep.subr.bf16.mxu1 %v6722_v22  ;;  %v6788_v21 = vld [vmem:[#allocation16 + $0x4ac] ss:$16 sps:$4 sm:$0xff]   ;;  %v6783_v22 = vld [vmem:[#allocation16 + $0x4a0] ss:$16 sps:$4 sm:$0xff]  }
 0x44f   : > { %4763 = vmatpush1.bf16.msra.mxu0 %v6717_v24  ;;  %4927 = vmatpush1.bf16.msra.mxu1 %v6720_v25  ;;  %v6786_v24 = vld [vmem:[#allocation16 + $0x4a8] ss:$16 sps:$4 sm:$0xff]   ;;  %v6791_v25 = vld [vmem:[#allocation16 + $0x4c4] ss:$16 sps:$4 sm:$0xff]  }
 0x450   : > { %4764 = vmatprep.subr.bf16.mxu0 %v6725_v26  ;;  %4928 = vmatprep.subr.bf16.mxu1 %v6728_v27  ;;  %v6794_v26 = vld [vmem:[#allocation16 + $0x4cc] ss:$16 sps:$4 sm:$0xff]   ;;  %v6789_v27 = vld [vmem:[#allocation16 + $0x4c0] ss:$16 sps:$4 sm:$0xff]  }
 0x453   : > { %4765 = vmatpush1.bf16.msra.mxu0 %v6723_v28  ;;  %4929 = vmatpush1.bf16.msra.mxu1 %v6726_v29  ;;  %v6797_v28 = vld [vmem:[#allocation16 + $0x4e4] ss:$16 sps:$4 sm:$0xff]   ;;  %v6800_v29 = vld [vmem:[#allocation16 + $0x4ec] ss:$16 sps:$4 sm:$0xff]  }
 0x454   : > { %4766 = vmatprep.subr.bf16.mxu0 %v6731_v31  ;;  %4930 = vmatprep.subr.bf16.mxu1 %v6734_v32  ;;  %v6795_v31 = vld [vmem:[#allocation16 + $0x4e0] ss:$16 sps:$4 sm:$0xff]   ;;  %v6798_v32 = vld [vmem:[#allocation16 + $0x4e8] ss:$16 sps:$4 sm:$0xff]  }
 0x457   : > { %4767 = vmatpush1.bf16.msra.mxu0 %v6729_v33  ;;  %4931 = vmatpush1.bf16.msra.mxu1 %v6732_v35  ;;  %v6803_v33 = vld [vmem:[#allocation16 + $0x504] ss:$16 sps:$4 sm:$0xff]   ;;  %v6801_v35 = vld [vmem:[#allocation16 + $0x500] ss:$16 sps:$4 sm:$0xff]  }
 0x458   : > { %4768 = vmatprep.subr.bf16.mxu0 %v6737_v37  ;;  %4932 = vmatprep.subr.bf16.mxu1 %v6740_v38  ;;  %v6809_v37 = vld [vmem:[#allocation16 + $0x524] ss:$16 sps:$4 sm:$0xff]   ;;  %v6812_v38 = vld [vmem:[#allocation16 + $0x52c] ss:$16 sps:$4 sm:$0xff]  }
 0x45b   : > { %4769 = vmatpush1.bf16.msra.mxu0 %v6735_v43  ;;  %4933 = vmatpush1.bf16.msra.mxu1 %v6738_v44  ;;  %v6815_v43 = vld [vmem:[#allocation16 + $0x544] ss:$16 sps:$4 sm:$0xff]   ;;  %v6818_v44 = vld [vmem:[#allocation16 + $0x54c] ss:$16 sps:$4 sm:$0xff]  }
 0x45c   : > { %4770 = vmatprep.subr.bf16.mxu0 %v6743_v45  ;;  %4934 = vmatprep.subr.bf16.mxu1 %v6746_v46  ;;  %v6813_v45 = vld [vmem:[#allocation16 + $0x540] ss:$16 sps:$4 sm:$0xff]   ;;  %v6816_v46 = vld [vmem:[#allocation16 + $0x548] ss:$16 sps:$4 sm:$0xff]  }
 0x45f   : > { %4771 = vmatpush1.bf16.msra.mxu0 %v6741_v48  ;;  %4935 = vmatpush1.bf16.msra.mxu1 %v6744_v49  ;;  %v6824_v48 = vld [vmem:[#allocation16 + $0x56c] ss:$16 sps:$4 sm:$0xff]   ;;  %v6819_v49 = vld [vmem:[#allocation16 + $0x560] ss:$16 sps:$4 sm:$0xff]  }
 0x460   : > { %4772 = vmatprep.subr.bf16.mxu0 %v6749_v51  ;;  %4936 = vmatprep.subr.bf16.mxu1 %v6752_v52  ;;  %v3069_v51 = vsub.s32 4, %v7629_v59  ;;  %v6822_v52 = vld [vmem:[#allocation16 + $0x568] ss:$16 sps:$4 sm:$0xff]  }
 0x462   : > { %v3120_v5 = vrot.slane %v7656_v3, %v3069_v51 }
 0x463   : > { %4773 = vmatpush1.bf16.msra.mxu0 %v6747_v57  ;;  %4937 = vmatpush1.bf16.msra.mxu1 %v6750_v12  ;;  %v3081_v57 = vsub.s32 7, %v7629_v59  ;;  %v3070_v12 = vrot.slane %v7632_v4, %v3069_v51  ;;  %v6831_v4 = vld [vmem:[#allocation16 + $0x5a0] ss:$16 sps:$4 sm:$0xff]   ;;  %v6888_v51 = vld [vmem:[#allocation16 + $0x6c8] ss:$16 sps:$4 sm:$0xff]  }
 0x464   : > { %4783 = vmatprep.subr.bf16.mxu0 %v6755_v41  ;;  %4947 = vmatprep.subr.bf16.mxu1 %v6758_v60  ;;  %v6825_v41 = vld [vmem:[#allocation16 + $0x580] ss:$16 sps:$4 sm:$0xff]   ;;  %v6828_v60 = vld [vmem:[#allocation16 + $0x588] ss:$16 sps:$4 sm:$0xff]  }
 0x465   : > { %v3132_v10 = vrot.slane %v7656_v3, %v3081_v57 }
 0x466   : > { %4775 = vmatmul.mubr.bf16.vlgmr.msra.gmra.mrb[0].mxu0 %v3159_v61  ;;  %4939 = vmatmul.mubr.bf16.vlgmr.msra.gmra.mrb[0].mxu1 %v3159_v61  ;;  %v3045_v61 = vld [vmem:[#allocation2 + $0x20] sm:$0xff] }
 0x467   : > { %4784 = vmatpush1.bf16.msra.mxu0 %v6753_v23  ;;  %4948 = vmatpush1.bf16.msra.mxu1 %v6756_v0  ;;  %v6836_v23 = vld [vmem:[#allocation16 + $0x5ac] ss:$16 sps:$4 sm:$0xff]  }
 0x468   : > { %4785 = vmatprep.subr.bf16.mxu0 %v6761_v1  ;;  %4949 = vmatprep.subr.bf16.mxu1 %v6764_v2  ;;  %v7653_v0 = vld [vmem:[#allocation5] sm:$0xff]  ;;  %v3095_v2 = vmul.f32 %v3070_v12, %v3045_v61  ;;  %v6899_v12 = vld [vmem:[#allocation16 + $0x704] ss:$16 sps:$4 sm:$0xff]  }
 0x469   : > { %4815 = vmatprep.mubr.bf16.mxu0 %v3162_v13  ;;  %4979 = vmatprep.mubr.bf16.mxu1 %v3162_v13  ;;  %v3082_v1 = vrot.slane %v7653_v0, %v3081_v57  ;;  %v6894_v57 = vld [vmem:[#allocation16 + $0x6e8] ss:$16 sps:$4 sm:$0xff]  }
 0x46a   : > { %v6900_v61 = vld [vmem:[#allocation16 + $0x708] ss:$16 sps:$4 sm:$0xff]  }
 0x46b   : > { %4786 = vmatpush1.bf16.msra.mxu0 %v6759_v6  ;;  %4950 = vmatpush1.bf16.msra.mxu1 %v6762_v7  ;;  %v3048_v6 = vld [vmem:[#allocation2 + $0x38] sm:$0xff] }
 0x46c   : > { %4787 = vmatprep.subr.bf16.mxu0 %v6767_v8  ;;  %4951 = vmatprep.subr.bf16.mxu1 %v6770_v9  ;;  %v6839_v7 = vld [vmem:[#allocation16 + $0x5c4] ss:$16 sps:$4 sm:$0xff]   ;;  %v6842_v8 = vld [vmem:[#allocation16 + $0x5cc] ss:$16 sps:$4 sm:$0xff]   ;;  %v3098_v9 = vmul.f32 %v3082_v1, %v3048_v6  ;;  %v6903_v1 = vld [vmem:[#allocation16 + $0x720] ss:$16 sps:$4 sm:$0xff]  }
 0x46d   : > { %v6914_v6 = vld [vmem:[#allocation16 + $0x74c] ss:$16 sps:$4 sm:$0xff]  }
 0x46e   : > { %v3148_v13 = vadd.f32 %v3132_v10, %v3098_v9  ;;  %v3077_v9 = vsub.s32 6, %v7629_v59  ;;  %v6915_v10 = vld [vmem:[#allocation16 + $0x760] ss:$16 sps:$4 sm:$0xff]  }
 0x46f   : > { %4788 = vmatpush1.bf16.msra.mxu0 %v6765_v11  ;;  %4952 = vmatpush1.bf16.msra.mxu1 %v6768_v50  ;;  %v3145_v11 = vadd.f32 %v3120_v5, %v3095_v2  ;;  %v6837_v50 = vld [vmem:[#allocation16 + $0x5c0] ss:$16 sps:$4 sm:$0xff]   ;;  %v6906_v2 = vld [vmem:[#allocation16 + $0x728] ss:$16 sps:$4 sm:$0xff]   ;;  %v6911_v5 = vld [vmem:[#allocation16 + $0x744] ss:$16 sps:$4 sm:$0xff]  }
 0x470   : > { %4789 = vmatprep.subr.bf16.mxu0 %v6773_v58  ;;  %4953 = vmatprep.subr.bf16.mxu1 %v6776_v19  ;;  %v6845_v58 = vld [vmem:[#allocation16 + $0x5e4] ss:$16 sps:$4 sm:$0xff]   ;;  %v6848_v19 = vld [vmem:[#allocation16 + $0x5ec] ss:$16 sps:$4 sm:$0xff]  }
 0x473   : > { %4790 = vmatpush1.bf16.msra.mxu0 %v6771_v30  ;;  %4954 = vmatpush1.bf16.msra.mxu1 %v6774_v14  ;;  %v3153_v30 = vmax.f32 %v3145_v11, 0.0  ;;  %v6843_v14 = vld [vmem:[#allocation16 + $0x5e0] ss:$16 sps:$4 sm:$0xff]   ;;  %v6918_v11 = vld [vmem:[#allocation16 + $0x768] ss:$16 sps:$4 sm:$0xff]  }
 0x474   : > { %4791 = vmatprep.subr.bf16.mxu0 %v6779_v39  ;;  %4955 = vmatprep.subr.bf16.mxu1 %v6782_v15  ;;  %v6846_v39 = vld [vmem:[#allocation16 + $0x5e8] ss:$16 sps:$4 sm:$0xff]   ;;  %v6851_v15 = vld [vmem:[#allocation16 + $0x604] ss:$16 sps:$4 sm:$0xff]  }
 0x477   : > { %4792 = vmatpush1.bf16.msra.mxu0 %v6777_v16  ;;  %4956 = vmatpush1.bf16.msra.mxu1 %v6780_v17  ;;  %v6854_v16 = vld [vmem:[#allocation16 + $0x60c] ss:$16 sps:$4 sm:$0xff]   ;;  %v3156_v17 = vmax.f32 %v3148_v13, 0.0  ;;  %v6924_v13 = vld [vmem:[#allocation16 + $0x788] ss:$16 sps:$4 sm:$0xff]  }
 0x478   : > { %4793 = vmatprep.subr.bf16.mxu0 %v6785_v18  ;;  %4957 = vmatprep.subr.bf16.mxu1 %v6788_v21  ;;  %v3161_v18 = vpack.c.bf16 %v3153_v30, %v3153_v30  ;;  %v6849_v21 = vld [vmem:[#allocation16 + $0x600] ss:$16 sps:$4 sm:$0xff]   ;;  %v3047_v30 = vld [vmem:[#allocation2 + $0x30] sm:$0xff] }
 0x47b   : > { %4794 = vmatpush1.bf16.msra.mxu0 %v6783_v22  ;;  %4958 = vmatpush1.bf16.msra.mxu1 %v6786_v24  ;;  %v6852_v22 = vld [vmem:[#allocation16 + $0x608] ss:$16 sps:$4 sm:$0xff]   ;;  %v6857_v24 = vld [vmem:[#allocation16 + $0x624] ss:$16 sps:$4 sm:$0xff]  }
 0x47c   : > { %4795 = vmatprep.subr.bf16.mxu0 %v6791_v25  ;;  %4959 = vmatprep.subr.bf16.mxu1 %v6794_v26  ;;  %v6860_v25 = vld [vmem:[#allocation16 + $0x62c] ss:$16 sps:$4 sm:$0xff]   ;;  %v3164_v26 = vpack.c.bf16 %v3156_v17, %v3156_v17  ;;  %v6927_v17 = vld [vmem:[#allocation16 + $0x7a0] ss:$16 sps:$4 sm:$0xff]  }
 0x47f   : > { %4796 = vmatpush1.bf16.msra.mxu0 %v6789_v27  ;;  %4960 = vmatpush1.bf16.msra.mxu1 %v6792_v20  ;;  %v6855_v27 = vld [vmem:[#allocation16 + $0x620] ss:$16 sps:$4 sm:$0xff]   ;;  %v6858_v20 = vld [vmem:[#allocation16 + $0x628] ss:$16 sps:$4 sm:$0xff]  }
 0x480   : > { %4797 = vmatprep.subr.bf16.mxu0 %v6797_v28  ;;  %4961 = vmatprep.subr.bf16.mxu1 %v6800_v29  ;;  %v6863_v28 = vld [vmem:[#allocation16 + $0x644] ss:$16 sps:$4 sm:$0xff]   ;;  %v6866_v29 = vld [vmem:[#allocation16 + $0x64c] ss:$16 sps:$4 sm:$0xff]  }
 0x483   : > { %4798 = vmatpush1.bf16.msra.mxu0 %v6795_v31  ;;  %4962 = vmatpush1.bf16.msra.mxu1 %v6798_v32  ;;  %v6861_v31 = vld [vmem:[#allocation16 + $0x640] ss:$16 sps:$4 sm:$0xff]   ;;  %v6864_v32 = vld [vmem:[#allocation16 + $0x648] ss:$16 sps:$4 sm:$0xff]  }
 0x484   : > { %4799 = vmatprep.subr.bf16.mxu0 %v6803_v33  ;;  %4963 = vmatprep.subr.bf16.mxu1 %v6806_v34  ;;  %v6869_v33 = vld [vmem:[#allocation16 + $0x664] ss:$16 sps:$4 sm:$0xff]   ;;  %v6872_v34 = vld [vmem:[#allocation16 + $0x66c] ss:$16 sps:$4 sm:$0xff]  }
 0x487   : > { %4800 = vmatpush1.bf16.msra.mxu0 %v6801_v35  ;;  %4964 = vmatpush1.bf16.msra.mxu1 %v6804_v36  ;;  %v6867_v35 = vld [vmem:[#allocation16 + $0x660] ss:$16 sps:$4 sm:$0xff]   ;;  %v6870_v36 = vld [vmem:[#allocation16 + $0x668] ss:$16 sps:$4 sm:$0xff]  }
 0x488   : > { %4801 = vmatprep.subr.bf16.mxu0 %v6809_v37  ;;  %4965 = vmatprep.subr.bf16.mxu1 %v6812_v38  ;;  %v6875_v37 = vld [vmem:[#allocation16 + $0x684] ss:$16 sps:$4 sm:$0xff]   ;;  %v6878_v38 = vld [vmem:[#allocation16 + $0x68c] ss:$16 sps:$4 sm:$0xff]  }
 0x48b   : > { %4802 = vmatpush1.bf16.msra.mxu0 %v6807_v40  ;;  %4966 = vmatpush1.bf16.msra.mxu1 %v6810_v42  ;;  %v6873_v40 = vld [vmem:[#allocation16 + $0x680] ss:$16 sps:$4 sm:$0xff]   ;;  %v6876_v42 = vld [vmem:[#allocation16 + $0x688] ss:$16 sps:$4 sm:$0xff]  }
 0x48c   : > { %4803 = vmatprep.subr.bf16.mxu0 %v6815_v43  ;;  %4967 = vmatprep.subr.bf16.mxu1 %v6818_v44  ;;  %v6881_v43 = vld [vmem:[#allocation16 + $0x6a4] ss:$16 sps:$4 sm:$0xff]   ;;  %v6884_v44 = vld [vmem:[#allocation16 + $0x6ac] ss:$16 sps:$4 sm:$0xff]  }
 0x48f   : > { %4804 = vmatpush1.bf16.msra.mxu0 %v6813_v45  ;;  %4968 = vmatpush1.bf16.msra.mxu1 %v6816_v46  ;;  %v6879_v45 = vld [vmem:[#allocation16 + $0x6a0] ss:$16 sps:$4 sm:$0xff]   ;;  %v6882_v46 = vld [vmem:[#allocation16 + $0x6a8] ss:$16 sps:$4 sm:$0xff]  }
 0x490   : > { %4805 = vmatprep.subr.bf16.mxu0 %v6821_v47  ;;  %4969 = vmatprep.subr.bf16.mxu1 %v6824_v48  ;;  %v6887_v47 = vld [vmem:[#allocation16 + $0x6c4] ss:$16 sps:$4 sm:$0xff]   ;;  %v6890_v48 = vld [vmem:[#allocation16 + $0x6cc] ss:$16 sps:$4 sm:$0xff]  }
 0x493   : > { %4806 = vmatpush1.bf16.msra.mxu0 %v6819_v49  ;;  %4970 = vmatpush1.bf16.msra.mxu1 %v6822_v52  ;;  %v6885_v49 = vld [vmem:[#allocation16 + $0x6c0] ss:$16 sps:$4 sm:$0xff]   ;;  %v6893_v52 = vld [vmem:[#allocation16 + $0x6e4] ss:$16 sps:$4 sm:$0xff]  }
 0x494   : > { %4807 = vmatprep.subr.bf16.mxu0 %v6827_v53  ;;  %4971 = vmatprep.subr.bf16.mxu1 %v6830_v55  ;;  %v6896_v53 = vld [vmem:[#allocation16 + $0x6ec] ss:$16 sps:$4 sm:$0xff]   ;;  %v6891_v55 = vld [vmem:[#allocation16 + $0x6e0] ss:$16 sps:$4 sm:$0xff]  }
 0x497   : > { %4808 = vmatpush1.bf16.msra.mxu0 %v6825_v41  ;;  %4972 = vmatpush1.bf16.msra.mxu1 %v6828_v60  ;;  %v6902_v41 = vld [vmem:[#allocation16 + $0x70c] ss:$16 sps:$4 sm:$0xff]   ;;  %v6897_v60 = vld [vmem:[#allocation16 + $0x700] ss:$16 sps:$4 sm:$0xff]  }
 0x498   : > { %4809 = vmatprep.subr.bf16.mxu0 %v6833_v62  ;;  %4973 = vmatprep.subr.bf16.mxu1 %v6836_v23  ;;  %v6905_v62 = vld [vmem:[#allocation16 + $0x724] ss:$16 sps:$4 sm:$0xff]   ;;  %v6908_v23 = vld [vmem:[#allocation16 + $0x72c] ss:$16 sps:$4 sm:$0xff]  }
 0x49b   : > { %4810 = vmatpush1.bf16.msra.mxu0 %v6831_v4  ;;  %4974 = vmatpush1.bf16.msra.mxu1 %v6834_v63  ;;  %v6909_v4 = vld [vmem:[#allocation16 + $0x740] ss:$16 sps:$4 sm:$0xff]   ;;  %v6912_v63 = vld [vmem:[#allocation16 + $0x748] ss:$16 sps:$4 sm:$0xff]  }
 0x49c   : > { %4811 = vmatprep.subr.bf16.mxu0 %v6839_v7  ;;  %4975 = vmatprep.subr.bf16.mxu1 %v6842_v8  ;;  %v6917_v7 = vld [vmem:[#allocation16 + $0x764] ss:$16 sps:$4 sm:$0xff]   ;;  %v6920_v8 = vld [vmem:[#allocation16 + $0x76c] ss:$16 sps:$4 sm:$0xff]  }
 0x49f   : > { %4812 = vmatpush1.bf16.msra.mxu0 %v6837_v50  ;;  %4976 = vmatpush1.bf16.msra.mxu1 %v6840_v56  ;;  %v6923_v50 = vld [vmem:[#allocation16 + $0x784] ss:$16 sps:$4 sm:$0xff]   ;;  %v6926_v56 = vld [vmem:[#allocation16 + $0x78c] ss:$16 sps:$4 sm:$0xff]  }
 0x4a0   : > { %4813 = vmatprep.subr.bf16.mxu0 %v6845_v58  ;;  %4977 = vmatprep.subr.bf16.mxu1 %v6848_v19  ;;  %v3078_v58 = vrot.slane %v7653_v0, %v3077_v9  ;;  %v6921_v19 = vld [vmem:[#allocation16 + $0x780] ss:$16 sps:$4 sm:$0xff]   ;;  %v6938_v0 = vld [vmem:[#allocation16 + $0x7cc] ss:$16 sps:$4 sm:$0xff]  }
 0x4a3   : > { %4814 = vmatpush1.bf16.msra.mxu0 %v6843_v14  ;;  %4978 = vmatpush1.bf16.msra.mxu1 %v6846_v39  ;;  %v6929_v14 = vld [vmem:[#allocation16 + $0x7a4] ss:$16 sps:$4 sm:$0xff]   ;;  %v6932_v39 = vld [vmem:[#allocation16 + $0x7ac] ss:$16 sps:$4 sm:$0xff]  }
 0x4a4   : > { %4824 = vmatprep.subr.bf16.mxu0 %v6851_v15  ;;  %4988 = vmatprep.subr.bf16.mxu1 %v6854_v16  ;;  %v3097_v15 = vmul.f32 %v3078_v58, %v3047_v30  ;;  %v3128_v16 = vrot.slane %v7656_v3, %v3077_v9  ;;  %v6939_v3 = vld [vmem:[#allocation16 + $0x7e0] ss:$16 sps:$4 sm:$0xff]  }
 0x4a6   : > { %4816 = vmatmul.mubr.bf16.vlgmr.msra.gmra.mrb[0].mxu0 %v3161_v18  ;;  %4980 = vmatmul.mubr.bf16.vlgmr.msra.gmra.mrb[0].mxu1 %v3161_v18  ;;  %v6930_v18 = vld [vmem:[#allocation16 + $0x7a8] ss:$16 sps:$4 sm:$0xff]  }
 0x4a7   : > { %4825 = vmatpush1.bf16.msra.mxu0 %v6849_v21  ;;  %4989 = vmatpush1.bf16.msra.mxu1 %v6852_v22  ;;  %v6935_v21 = vld [vmem:[#allocation16 + $0x7c4] ss:$16 sps:$4 sm:$0xff]   ;;  %v3147_v22 = vadd.f32 %v3128_v16, %v3097_v15 }
 0x4a8   : > { %4826 = vmatprep.subr.bf16.mxu0 %v6857_v24  ;;  %4990 = vmatprep.subr.bf16.mxu1 %v6860_v25  ;;  %v6933_v24 = vld [vmem:[#allocation16 + $0x7c0] ss:$16 sps:$4 sm:$0xff]   ;;  %v6936_v25 = vld [vmem:[#allocation16 + $0x7c8] ss:$16 sps:$4 sm:$0xff]  }
 0x4a9   : > { %4856 = vmatprep.mubr.bf16.mxu0 %v3164_v26  ;;  %5020 = vmatprep.mubr.bf16.mxu1 %v3164_v26  ;;  %v6941_v26 = vld [vmem:[#allocation16 + $0x7e4] ss:$16 sps:$4 sm:$0xff]  }
 0x4ab   : > { %4827 = vmatpush1.bf16.msra.mxu0 %v6855_v27  ;;  %4991 = vmatpush1.bf16.msra.mxu1 %v6858_v20  ;;  %v6944_v27 = vld [vmem:[#allocation16 + $0x7ec] ss:$16 sps:$4 sm:$0xff]   ;;  %v3155_v20 = vmax.f32 %v3147_v22, 0.0 }
 0x4ac   : > { %4828 = vmatprep.subr.bf16.mxu0 %v6863_v28  ;;  %4992 = vmatprep.subr.bf16.mxu1 %v6866_v29  ;;  %v6942_v28 = vld [vmem:[#allocation16 + $0x7e8] ss:$16 sps:$4 sm:$0xff]  }
 0x4ad   : > { %v3163_v29 = vpack.c.bf16 %v3155_v20, %v3155_v20 }
 0x4af   : > { %4829 = vmatpush1.bf16.msra.mxu0 %v6861_v31  ;;  %4993 = vmatpush1.bf16.msra.mxu1 %v6864_v32  ;;  %v7264_v32 = vmov 0.0  }
 0x4b0   : > { %4830 = vmatprep.subr.bf16.mxu0 %v6869_v33  ;;  %4994 = vmatprep.subr.bf16.mxu1 %v6872_v34  ;;  %5041 = vst.msk [vmem:[#allocation3] sm:$0xf] %vm7664_vm2, %v7264_v32  ;;  %5042 = vst.msk [vmem:[#allocation4] sm:$0xf] %vm7664_vm2, %v7264_v32  ;;  %v7265_v33 = vmov 1966171168  }
 0x4b1   : > { %v5075_v34 = vunpack.c.l.s4 %v7265_v33 }
 0x4b3   : > { %4831 = vmatpush1.bf16.msra.mxu0 %v6867_v35  ;;  %4995 = vmatpush1.bf16.msra.mxu1 %v6870_v36  ;;  %v5076_v35 = vunpack.c.0.s8 %v5075_v34 }
 0x4b4   : > { %4832 = vmatprep.subr.bf16.mxu0 %v6875_v37  ;;  %4996 = vmatprep.subr.bf16.mxu1 %v6878_v38 }
 0x4b5   : > { %v7673_v38 = vsub.s32 %v5076_v35, %v7629_v59 }
 0x4b7   : > { %4833 = vmatpush1.bf16.msra.mxu0 %v6873_v40  ;;  %4997 = vmatpush1.bf16.msra.mxu1 %v6876_v42 }
 0x4b8   : > { %4834 = vmatprep.subr.bf16.mxu0 %v6881_v43  ;;  %4998 = vmatprep.subr.bf16.mxu1 %v6884_v44 }
 0x4bb   : > { %4835 = vmatpush1.bf16.msra.mxu0 %v6879_v45  ;;  %4999 = vmatpush1.bf16.msra.mxu1 %v6882_v46 }
 0x4bc   : > { %4836 = vmatprep.subr.bf16.mxu0 %v6887_v47  ;;  %5000 = vmatprep.subr.bf16.mxu1 %v6890_v48 }
 0x4bf   : > { %4837 = vmatpush1.bf16.msra.mxu0 %v6885_v49  ;;  %5001 = vmatpush1.bf16.msra.mxu1 %v6888_v51 }
 0x4c0   : > { %4838 = vmatprep.subr.bf16.mxu0 %v6893_v52  ;;  %5002 = vmatprep.subr.bf16.mxu1 %v6896_v53 }
 0x4c3   : > { %4839 = vmatpush1.bf16.msra.mxu0 %v6891_v55  ;;  %5003 = vmatpush1.bf16.msra.mxu1 %v6894_v57 }
 0x4c4   : > { %4840 = vmatprep.subr.bf16.mxu0 %v6899_v12  ;;  %5004 = vmatprep.subr.bf16.mxu1 %v6902_v41 }
 0x4c7   : > { %4841 = vmatpush1.bf16.msra.mxu0 %v6897_v60  ;;  %5005 = vmatpush1.bf16.msra.mxu1 %v6900_v61 }
 0x4c8   : > { %4842 = vmatprep.subr.bf16.mxu0 %v6905_v62  ;;  %5006 = vmatprep.subr.bf16.mxu1 %v6908_v23 }
 0x4cb   : > { %4843 = vmatpush1.bf16.msra.mxu0 %v6903_v1  ;;  %5007 = vmatpush1.bf16.msra.mxu1 %v6906_v2 }
 0x4cc   : > { %4844 = vmatprep.subr.bf16.mxu0 %v6911_v5  ;;  %5008 = vmatprep.subr.bf16.mxu1 %v6914_v6 }
 0x4cf   : > { %4845 = vmatpush1.bf16.msra.mxu0 %v6909_v4  ;;  %5009 = vmatpush1.bf16.msra.mxu1 %v6912_v63 }
 0x4d0   : > { %4846 = vmatprep.subr.bf16.mxu0 %v6917_v7  ;;  %5010 = vmatprep.subr.bf16.mxu1 %v6920_v8 }
 0x4d3   : > { %4847 = vmatpush1.bf16.msra.mxu0 %v6915_v10  ;;  %5011 = vmatpush1.bf16.msra.mxu1 %v6918_v11 }
 0x4d4   : > { %4848 = vmatprep.subr.bf16.mxu0 %v6923_v50  ;;  %5012 = vmatprep.subr.bf16.mxu1 %v6926_v56 }
 0x4d7   : > { %4849 = vmatpush1.bf16.msra.mxu0 %v6921_v19  ;;  %5013 = vmatpush1.bf16.msra.mxu1 %v6924_v13 }
 0x4d8   : > { %4850 = vmatprep.subr.bf16.mxu0 %v6929_v14  ;;  %5014 = vmatprep.subr.bf16.mxu1 %v6932_v39 }
 0x4db   : > { %4851 = vmatpush1.bf16.msra.mxu0 %v6927_v17  ;;  %5015 = vmatpush1.bf16.msra.mxu1 %v6930_v18 }
 0x4dc   : > { %4852 = vmatprep.subr.bf16.mxu0 %v6935_v21  ;;  %5016 = vmatprep.subr.bf16.mxu1 %v6938_v0 }
 0x4df   : > { %4853 = vmatpush1.bf16.msra.mxu0 %v6933_v24  ;;  %5017 = vmatpush1.bf16.msra.mxu1 %v6936_v25 }
 0x4e0   : > { %4854 = vmatprep.subr.bf16.mxu0 %v6941_v26  ;;  %5018 = vmatprep.subr.bf16.mxu1 %v6944_v27 }
 0x4e3   : > { %4855 = vmatpush1.bf16.msra.mxu0 %v6939_v3  ;;  %5019 = vmatpush1.bf16.msra.mxu1 %v6942_v28 }
 0x4e6   : > { %4857 = vmatmul.mubr.bf16.vlgmr.msra.gmra.mrb[0].mxu0 %v3163_v29  ;;  %5021 = vmatmul.mubr.bf16.vlgmr.msra.gmra.mrb[0].mxu1 %v3163_v29 }
 0x5b9   : > { %v4858_v36 = vpop.f32.mrb[0].mxu0  ;;  %v5022_v37 = vpop.f32.mrb[0].mxu1 }
 0x5ba   : > { %5029 = vst [vmem:[#allocation2] sm:$0xff] %v4858_v36  ;;  %v5044_v54 = vrot.slane %v4858_v36, 4  ;;  %v5104_v40 = vmul.f32 %v4858_v36, %v4858_v36  ;;  %5031 = vst [vmem:[#allocation2 + $0x10] sm:$0xff] %v5022_v37  ;;  %v5056_v42 = vrot.slane %v5022_v37, 4  ;;  %v5106_v43 = vmul.f32 %v5022_v37, %v5022_v37  ;;  %v4860_v44 = vpop.f32.mrb[1].mxu0  ;;  %v5024_v45 = vpop.f32.mrb[1].mxu1 }
 0x5bb   : > { %5030 = vst [vmem:[#allocation2 + $0x8] sm:$0xff] %v4860_v44  ;;  %v5050_v46 = vrot.slane %v4860_v44, 4  ;;  %v5105_v47 = vmul.f32 %v4860_v44, %v4860_v44  ;;  %5032 = vst [vmem:[#allocation2 + $0x18] sm:$0xff] %v5024_v45  ;;  %v5062_v48 = vrot.slane %v5024_v45, 4  ;;  %v5107_v49 = vmul.f32 %v5024_v45, %v5024_v45  ;;  %v4862_v51 = vpop.f32.mrb[2].mxu0  ;;  %v5026_v52 = vpop.f32.mrb[2].mxu1 }
 0x5bc   : > { %v5045_v53 = vadd.f32 %v5044_v54, %v4858_v36  ;;  %v5108_v55 = vrot.slane %v5104_v40, 4  ;;  %v5057_v59 = vadd.f32 %v5056_v42, %v5022_v37  ;;  %v5120_v57 = vrot.slane %v5106_v43, 4  ;;  %v4863_v12 = vpop.f32.mrb[3].mxu0  ;;  %v5027_v41 = vpop.f32.mrb[3].mxu1 }
 0x5bd   : > { %v5051_v60 = vadd.f32 %v5050_v46, %v4860_v44  ;;  %v5114_v61 = vrot.slane %v5105_v47, 4  ;;  %v5063_v62 = vadd.f32 %v5062_v48, %v5024_v45  ;;  %v5126_v23 = vrot.slane %v5107_v49, 4  ;;  %v5043_v45 = vld [vmem:[#allocation3] sm:$0xf]  ;;  %v5103_v48 = vld [vmem:[#allocation4] sm:$0xf] }
 0x5be   : > { %v5046_v1 = vrot.slane %v5045_v53, 2  ;;  %v5109_v2 = vadd.f32 %v5108_v55, %v5104_v40  ;;  %v5058_v5 = vrot.slane %v5057_v59, 2  ;;  %v5121_v6 = vadd.f32 %v5120_v57, %v5106_v43 }
 0x5bf   : > { %v5052_v4 = vrot.slane %v5051_v60, 2  ;;  %v5115_v63 = vadd.f32 %v5114_v61, %v5105_v47  ;;  %v5064_v7 = vrot.slane %v5063_v62, 2  ;;  %v5127_v8 = vadd.f32 %v5126_v23, %v5107_v49  ;;  %v5172_v61 = vld [vmem:[%s7743_s8] sm:$0xf] }
 0x5c0   : > { %v5047_v9 = vadd.f32 %v5046_v1, %v5045_v53  ;;  %v5110_v10 = vrot.slane %v5109_v2, 2  ;;  %v5059_v11 = vadd.f32 %v5058_v5, %v5057_v59  ;;  %v5122_v50 = vrot.slane %v5121_v6, 2  ;;  %v5177_v23 = vld [vmem:[%s7770_s30] sm:$0xf] }
 0x5c1   : > { %v5053_v56 = vadd.f32 %v5052_v4, %v5051_v60  ;;  %v5116_v58 = vrot.slane %v5115_v63, 2  ;;  %v5065_v19 = vadd.f32 %v5064_v7, %v5063_v62  ;;  %v5128_v13 = vrot.slane %v5127_v8, 2 }
 0x5c2   : > { %v5048_v30 = vrot.slane %v5047_v9, 1  ;;  %v5111_v14 = vadd.f32 %v5110_v10, %v5109_v2  ;;  %v5060_v39 = vrot.slane %v5059_v11, 1  ;;  %v5123_v15 = vadd.f32 %v5122_v50, %v5121_v6 }
 0x5c3   : > { %v5054_v16 = vrot.slane %v5053_v56, 1  ;;  %v5117_v17 = vadd.f32 %v5116_v58, %v5115_v63  ;;  %v5066_v18 = vrot.slane %v5065_v19, 1  ;;  %v5129_v21 = vadd.f32 %v5128_v13, %v5127_v8 }
 0x5c4   : > { %v5049_v0 = vadd.f32 %v5048_v30, %v5047_v9  ;;  %v5112_v22 = vrot.slane %v5111_v14, 1  ;;  %v5061_v24 = vadd.f32 %v5060_v39, %v5059_v11  ;;  %v5124_v25 = vrot.slane %v5123_v15, 1 }
 0x5c5   : > { %v5055_v26 = vadd.f32 %v5054_v16, %v5053_v56  ;;  %v5118_v27 = vrot.slane %v5117_v17, 1  ;;  %v5067_v20 = vadd.f32 %v5066_v18, %v5065_v19  ;;  %v5130_v3 = vrot.slane %v5129_v21, 1 }
 0x5c6   : > { %v5113_v28 = vadd.f32 %v5112_v22, %v5111_v14  ;;  %v5125_v29 = vadd.f32 %v5124_v25, %v5123_v15 }
 0x5c7   : > { %v5072_v32 = vcombine.low %v5049_v0, %v5055_v26  ;;  %v5119_v33 = vadd.f32 %v5118_v27, %v5117_v17  ;;  %v5073_v34 = vcombine.low %v5061_v24, %v5067_v20  ;;  %v5131_v35 = vadd.f32 %v5130_v3, %v5129_v21 }
 0x5c9   : > { %v5080_v36 = vrot.slane %v5072_v32, %v7673_v38  ;;  %v5136_v37 = vcombine.low %v5113_v28, %v5119_v33  ;;  %v5087_v54 = vrot.slane %v5073_v34, %v7673_v38  ;;  %v5137_v40 = vcombine.low %v5125_v29, %v5131_v35 }
 0x5cb   : > { %v5144_v42 = vrot.slane %v5136_v37, %v7673_v38  ;;  %v5088_v43 = vcombine.low %v5080_v36, %v5087_v54  ;;  %v5151_v44 = vrot.slane %v5137_v40, %v7673_v38 }
 0x5cd   : > { %v5095_v46 = vrot.slane %v5088_v43, %v7673_v38  ;;  %v5152_v47 = vcombine.low %v5144_v42, %v5151_v44 }
 0x5cf   : > { %v5097_v49 = vadd.f32 %v5095_v46, %v5043_v45  ;;  %v5159_v51 = vrot.slane %v5152_v47, %v7673_v38 }
 0x5d1   : > { %5102 = vst.msk [vmem:[#allocation3] sm:$0xf] %vm7664_vm2, %v5097_v49  ;;  %v5161_v52 = vadd.f32 %v5159_v51, %v5103_v48 }
 0x5d3   : > { %5162 = vst.msk [vmem:[#allocation4] sm:$0xf] %vm7664_vm2, %v5161_v52 }
 0x5d8   : > { %v5166_v53 = vld [vmem:[#allocation3] sm:$0xf] }
 0x5d9   : > { %v5167_v55 = vmul.f32 0.125, %v5166_v53 }
 0x5da   : > { %v5168_v59 = vld [vmem:[#allocation4] sm:$0xf] }
 0x5db   : > { %v5169_v57 = vmul.f32 0.125, %v5168_v59  ;;  %v5170_v12 = vmul.f32 %v5167_v55, %v5167_v55 }
 0x5dd   : > { %v5171_v41 = vsub.f32 %v5169_v57, %v5170_v12 }
 0x5df   : > { %v5173_v60 = vadd.f32 1e-05, %v5171_v41 }
 0x5e1   : > { %6945 = vrsqrt.f32 %v5173_v60 }
 0x5eb   : > { %v6946_v38 = vpop.eup %6945 }
 0x5ec   : > { %v5175_v62 = vmul.f32 %v6946_v38, %v5172_v61 }
 0x5ee   : > { %5176 = vst.msk [vmem:[#allocation5] sm:$0xf] %vm7664_vm2, %v5175_v62  ;;  %v5178_v1 = vmul.f32 %v5175_v62, %v5167_v55 }
 0x5f0   : > { %v5179_v2 = vsub.f32 %v5177_v23, %v5178_v1 }
 0x5f2   : > { %5180 = vst.msk [vmem:[#allocation6] sm:$0xf] %vm7664_vm2, %v5179_v2 }
 0x5f3 PF: > { %p6301_p11 = scmp.ne.s32.totalorder %s7237_s21, 3 }
 0x5f4   : > { %v6949_v5 = vld [vmem:[#allocation18 + $0x40] sm:$0xff] (!%p6301_p11)   ;;  %v6953_v7 = vld [vmem:[#allocation18 + $0x48] sm:$0xff] (!%p6301_p11)   ;;  %v6957_v31 = vld [vmem:[#allocation18 + $0x50] sm:$0xff] (!%p6301_p11)   ;;  %v5196_v17 = vlaneseq (!%p6301_p11)  ;;  %s7771_s9 = sld [smem:[#allocation28_spill]] (!%p6301_p11) }
 0x5f5   : > { %5184 = sbr.rel (%p6301_p11) target bundleno = 1778 (0x6f2), region = 136  ;;  %v6950_v6 = vld [vmem:[#allocation18 + $0xc0] sm:$0xff] (!%p6301_p11)   ;;  %6339 = vmatprep.subr.bf16.mxu0 (!%p6301_p11), %v6949_v5  ;;  %v6954_v8 = vld [vmem:[#allocation18 + $0xc8] sm:$0xff] (!%p6301_p11)   ;;  %v6958_v11 = vld [vmem:[#allocation18 + $0xd0] sm:$0xff] (!%p6301_p11)  }
 0x5f6   : > { %v6951_v4 = vld [vmem:[#allocation18] sm:$0xff] (!%p6301_p11)   ;;  %6361 = vmatprep.subr.bf16.mxu1 (!%p6301_p11), %v6950_v6  ;;  %v6955_v9 = vld [vmem:[#allocation18 + $0x8] sm:$0xff] (!%p6301_p11)   ;;  %v6959_v50 = vld [vmem:[#allocation18 + $0x10] sm:$0xff] (!%p6301_p11)   ;;  %v5197_v24 = vshrl.u32 (!%p6301_p11), %v5196_v17, 7 }
 0x5f7   : > { %v6952_v63 = vld [vmem:[#allocation18 + $0x80] sm:$0xff] (!%p6301_p11)   ;;  %6340 = vmatpush3.bf16.msra.mxu0 (!%p6301_p11), %v6951_v4  ;;  %v6956_v10 = vld [vmem:[#allocation18 + $0x88] sm:$0xff] (!%p6301_p11)   ;;  %v6960_v56 = vld [vmem:[#allocation18 + $0x90] sm:$0xff] (!%p6301_p11)  }
 0x5f8   : > { %6362 = vmatpush3.bf16.msra.mxu1 (!%p6301_p11), %v6952_v63  ;;  %6341 = vmatprep.subr.bf16.mxu0 (!%p6301_p11), %v6953_v7  ;;  %v6961_v58 = vld [vmem:[#allocation18 + $0x58] sm:$0xff] (!%p6301_p11)   ;;  %v6965_v14 = vld [vmem:[#allocation18 + $0x60] sm:$0xff] (!%p6301_p11)   ;;  %v6969_v18 = vld [vmem:[#allocation18 + $0x68] sm:$0xff] (!%p6301_p11)   ;;  %v5202_v3 = vsub.s32 (!%p6301_p11), 1, %v5197_v24  ;;  %v5210_v29 = vsub.s32 (!%p6301_p11), 3, %v5197_v24  ;;  %v5198_v33 = vsub.s32 (!%p6301_p11), 0, %v5197_v24 }
 0x5f9   : > { %6363 = vmatprep.subr.bf16.mxu1 (!%p6301_p11), %v6954_v8  ;;  %v6962_v19 = vld [vmem:[#allocation18 + $0xd8] sm:$0xff] (!%p6301_p11)   ;;  %v6966_v39 = vld [vmem:[#allocation18 + $0xe0] sm:$0xff] (!%p6301_p11)   ;;  %v6970_v21 = vld [vmem:[#allocation18 + $0xe8] sm:$0xff] (!%p6301_p11)   ;;  %v5206_v35 = vsub.s32 (!%p6301_p11), 2, %v5197_v24 }
 0x5fa   : > { %v6963_v13 = vld [vmem:[#allocation18 + $0x18] sm:$0xff] (!%p6301_p11)   ;;  %v6967_v15 = vld [vmem:[#allocation18 + $0x20] sm:$0xff] (!%p6301_p11)   ;;  %v6971_v0 = vld [vmem:[#allocation18 + $0x28] sm:$0xff] (!%p6301_p11)  }
 0x5fb   : > { %6342 = vmatpush3.bf16.msra.mxu0 (!%p6301_p11), %v6955_v9  ;;  %v6964_v30 = vld [vmem:[#allocation18 + $0x98] sm:$0xff] (!%p6301_p11)   ;;  %v6968_v16 = vld [vmem:[#allocation18 + $0xa0] sm:$0xff] (!%p6301_p11)   ;;  %v6972_v22 = vld [vmem:[#allocation18 + $0xa8] sm:$0xff] (!%p6301_p11)  }
 0x5fc   : > { %6364 = vmatpush3.bf16.msra.mxu1 %v6956_v10  ;;  %6343 = vmatprep.subr.bf16.mxu0 %v6957_v31  ;;  %v6973_v25 = vld [vmem:[#allocation18 + $0x70] sm:$0xff]   ;;  %v6977_v28 = vld [vmem:[#allocation18 + $0x78] sm:$0xff]   ;;  %v5220_v40 = vld [vmem:[#allocation6] sm:$0xf] }
 0x5fd   : > { %6365 = vmatprep.subr.bf16.mxu1 %v6958_v11  ;;  %v6974_v26 = vld [vmem:[#allocation18 + $0xf0] sm:$0xff]   ;;  %v6978_v32 = vld [vmem:[#allocation18 + $0xf8] sm:$0xff]   ;;  %v5229_v43 = vrot.slane %v5220_v40, %v5202_v3  ;;  %v5193_v44 = vld [vmem:[#allocation2 + $0x18] sm:$0xff]  ;;  %v5237_v46 = vrot.slane %v5220_v40, %v5210_v29  ;;  %v5225_v51 = vrot.slane %v5220_v40, %v5198_v33  ;;  %v5233_v53 = vrot.slane %v5220_v40, %v5206_v35 }
 0x5fe   : > { %v6975_v27 = vld [vmem:[#allocation18 + $0x30] sm:$0xff]   ;;  %v6979_v34 = vld [vmem:[#allocation18 + $0x38] sm:$0xff]   ;;  %v5190_v47 = vld [vmem:[#allocation2] sm:$0xff] }
 0x5ff   : > { %6344 = vmatpush3.bf16.msra.mxu0 %v6959_v50  ;;  %v6976_v20 = vld [vmem:[#allocation18 + $0xb0] sm:$0xff]   ;;  %v6980_v36 = vld [vmem:[#allocation18 + $0xb8] sm:$0xff]   ;;  %v6302_v9 = vld [vmem:[%s7771_s9] ss:$0 sm:$0xff] }
 0x600   : > { %6366 = vmatpush3.bf16.msra.mxu1 %v6960_v56  ;;  %6345 = vmatprep.subr.bf16.mxu0 %v6961_v58  ;;  %v5191_v37 = vld [vmem:[#allocation2 + $0x8] sm:$0xff]  ;;  %v5194_v54 = vld [vmem:[#allocation5] sm:$0xf] }
 0x601   : > { %6367 = vmatprep.subr.bf16.mxu1 %v6962_v19  ;;  %v5203_v42 = vrot.slane %v5194_v54, %v5202_v3  ;;  %v5211_v45 = vrot.slane %v5194_v54, %v5210_v29  ;;  %v5192_v48 = vld [vmem:[#allocation2 + $0x10] sm:$0xff]  ;;  %v5199_v49 = vrot.slane %v5194_v54, %v5198_v33  ;;  %v5207_v52 = vrot.slane %v5194_v54, %v5206_v35 }
 0x603   : > { %6346 = vmatpush3.bf16.msra.mxu0 %v6963_v13  ;;  %v5217_v55 = vmul.f32 %v5203_v42, %v5191_v37  ;;  %v5219_v59 = vmul.f32 %v5211_v45, %v5193_v44  ;;  %v5216_v57 = vmul.f32 %v5199_v49, %v5190_v47  ;;  %v5218_v12 = vmul.f32 %v5207_v52, %v5192_v48 }
 0x604   : > { %6368 = vmatpush3.bf16.msra.mxu1 %v6964_v30  ;;  %6347 = vmatprep.subr.bf16.mxu0 %v6965_v14 }
 0x605   : > { %6369 = vmatprep.subr.bf16.mxu1 %v6966_v39  ;;  %v5243_v41 = vadd.f32 %v5229_v43, %v5217_v55  ;;  %v5245_v60 = vadd.f32 %v5237_v46, %v5219_v59  ;;  %v5242_v61 = vadd.f32 %v5225_v51, %v5216_v57  ;;  %v5244_v38 = vadd.f32 %v5233_v53, %v5218_v12 }
 0x607   : > { %6348 = vmatpush3.bf16.msra.mxu0 %v6967_v15  ;;  %v5247_v62 = vmax.f32 %v5243_v41, 0.0  ;;  %v5249_v23 = vmax.f32 %v5245_v60, 0.0  ;;  %v5246_v1 = vmax.f32 %v5242_v61, 0.0  ;;  %v5248_v2 = vmax.f32 %v5244_v38, 0.0 }
 0x608   : > { %6370 = vmatpush3.bf16.msra.mxu1 %v6968_v16  ;;  %6349 = vmatprep.subr.bf16.mxu0 %v6969_v18 }
 0x609   : > { %6371 = vmatprep.subr.bf16.mxu1 %v6970_v21  ;;  %v5251_v5 = vpack.c.bf16 %v5247_v62, %v5247_v62  ;;  %v5253_v6 = vpack.c.bf16 %v5249_v23, %v5249_v23  ;;  %v5250_v4 = vpack.c.bf16 %v5246_v1, %v5246_v1  ;;  %v5252_v63 = vpack.c.bf16 %v5248_v2, %v5248_v2 }
 0x60b   : > { %6350 = vmatpush3.bf16.msra.mxu0 %v6971_v0  ;;  %5549 = vmatprep.mubr.bf16.mxu0 %v5251_v5 }
 0x60c   : > { %6372 = vmatpush3.bf16.msra.mxu1 %v6972_v22  ;;  %6351 = vmatprep.subr.bf16.mxu0 %v6973_v25 }
 0x60d   : > { %6373 = vmatprep.subr.bf16.mxu1 %v6974_v26  ;;  %5589 = vmatprep.mubr.bf16.mxu1 %v5253_v6 }
 0x60f   : > { %6352 = vmatpush3.bf16.msra.mxu0 %v6975_v27 }
 0x610   : > { %6374 = vmatpush3.bf16.msra.mxu1 %v6976_v20  ;;  %6353 = vmatprep.subr.bf16.mxu0 %v6977_v28 }
 0x611   : > { %6375 = vmatprep.subr.bf16.mxu1 %v6978_v32 }
 0x613   : > { %6354 = vmatpush3.bf16.msra.mxu0 %v6979_v34 }
 0x614   : > { %6376 = vmatpush3.bf16.msra.mxu1 %v6980_v36 }
 0x616   : > { %5550 = vmatmul.mubr.bf16.vlgmr.msra.gmra.mrb[0].mxu0 %v5250_v4 }
 0x617   : > { %5590 = vmatmul.mubr.bf16.vlgmr.msra.gmra.mrb[0].mxu1 %v5252_v63 }
 0x6e9   : > { %v6355_v7 = vpop.f32.mrb[0].mxu0 }
 0x6ea   : > { %v6377_v8 = vpop.f32.mrb[0].mxu1  ;;  %v6356_v10 = vpop.f32.mrb[1].mxu0 }
 0x6eb   : > { %v6378_v31 = vpop.f32.mrb[1].mxu1  ;;  %v6357_v11 = vadd.f32 %v6356_v10, %v6355_v7  ;;  %v6358_v56 = vpop.f32.mrb[2].mxu0 }
 0x6ec   : > { %v6379_v50 = vadd.f32 %v6378_v31, %v6377_v8  ;;  %v6380_v58 = vpop.f32.mrb[2].mxu1  ;;  %v6359_v19 = vpop.f32.mrb[3].mxu0 }
 0x6ed   : > { %v6381_v13 = vpop.f32.mrb[3].mxu1  ;;  %v5552_v30 = vadd.f32 %v6357_v11, %v6302_v9 }
 0x6ef   : > { %v5592_v14 = vadd.f32 %v6379_v50, %v5552_v30 }
 0x6f1   : > { %5597 = vst [vmem:[#allocation19] sm:$0xff] %v5592_v14 }
 0x6f2 PF: > { %s7772_s26 = sadd.s32 4294967295, %s7245_s23   ;;  %s7266_s19 = smov [#allocation19]  }
 0x6f3   : > { %p7701_p12 = scmp.eq.s32.totalorder %s7772_s26, 3  ;;  %s5614_s24 = sshll.u32 %s7266_s19, 4  ;;  %s5615_s24 = int_to_ptr.vmem [resolvable:$true] %s5614_s24 }
 0x6f4   : > { %s7177_s25 = scalar_lea.vmem %s5615_s24, 128  ;;  %s7183_s18 = scalar_lea.vmem %s5615_s24, 256 }
 0x6f5   : > { %p7178_p13 = scmp.ne.s32.totalorder %s5615_s24, %s7177_s25  ;;  %p7184_p2 = scmp.lt.s32.totalorder %s5615_s24, %s5615_s24 }
 0x6f6   : > { %p7185_p5 = scmp.lt.s32.totalorder %s7183_s18, %s7177_s25 }
 0x6f7   : > { %p7179_p0 = pnand %p7178_p13, %p7701_p12 }
 0x6f8   : > { %p7186_p3 = por %p7185_p5, %p7184_p2 }
 0x6f9   : > { %p7180_p1 = pneg %p7179_p0 }
 0x6fb   : > { %p7187_p4 = pnand %p7186_p3, %p7180_p1 }
 0x6fd   : > { %7190 = shalt.err (!%p7187_p4)
}
 0x6fe   : > { %s7774_s27 = sld [smem:[#allocation29_spill]] }
 0x704   : > { %s7191_s28 = scalar_lea.hbm %s7774_s27, 128 }
 0x705   : > { %p7192_p7 = scmp.ne.s32.totalorder %s7774_s27, %s7191_s28  ;;  %p7197_p6 = scmp.lt.u32.totalorder %s7191_s28, %s7774_s27 }
 0x707   : > { %p7193_p9 = pnand %p7192_p7, %p7701_p12 }
 0x709   : > { %p7194_p8 = pneg %p7193_p9 }
 0x70b   : > { %p7199_p10 = pnand %p7197_p6, %p7194_p8 }
 0x70d   : > { %7202 = shalt.err (!%p7199_p10)
}
 0x70e   : > { %6452 = dma.vmem_to_hbm [thread:$0]  (%p7701_p12), %s5615_s24, 128, %s7774_s27, [#allocation9]  }
 0x70f PF: > { %p6498_p11 = scmp.ge.s32.totalorder %s7245_s23, 2  ;;  %s7775_s30 = sadd.s32 4294967294, %s7245_s23  }
 0x710   : > { %p6499_p13 = scmp.eq.s32.totalorder %s7775_s30, 3 }
 0x712   : > { %p6479_p0 = pnand %p6499_p13, %p6498_p11 }
 0x714   : > { %7232 = dma.done.wait (!%p6479_p0), [#allocation9], 128  }
 0x715   : > { %7234 = vsyncadd (!%p6479_p0), [#allocation9], 4294967168  ;;  %s31_s23 = sadd.s32 1, %s7245_s23   ;;  %s7776_s21 = sld [smem:[#allocation25_spill]] }
 0x716   : > { %p28_p1 = scmp.ge.s32.totalorder %s31_s23, 6   ;;  %s7777_s22 = sld [smem:[#allocation26_spill]] }
 0x718   :  { %30 = sbr.rel (!%p28_p1) target bundleno = 12 (0xc), region = 181 }
 0x71f   :  { %5632 = vsyncpa [#allocation8], 1 }
 0x720   :  { %5634 = vsyncpa [#allocation8 + $0x1], 1 }
 0x721   :  { %5635 = vsyncpa [#allocation11], 1 }
 0x722   :  { %5636 = vsyncpa [#allocation14], 1 }
 0x723   :  { %5637 = vsyncpa [#allocation17], 1 }
 0x724   :  { %5638 = vsyncpa [#allocation9], 1 }
 0x725   :  { %5640 = vsyncpa [#allocation9 + $0x1], 1 }

</bundles_post_ra>
